<compile_context>
chip_gen: v7x
topology: tpu7x:2x2x1
jax: 0.10.0
libtpu: 0.0.40
codegen_flags: <defaults>
</compile_context>

<pallas_src>
import functools

import numpy as np

import jax
import jax.numpy as jnp
from jax.experimental import pallas as pl
from jax.experimental.pallas import tpu as pltpu

CP = 128  # lane-dense padded channel width


# ----------------------------------------------------------------------------
# Fused forward kernel: conv1 -> conv2 -> conv3 -> dueling head, all in VMEM.
# ----------------------------------------------------------------------------
def _dqn_fused_kernel(xp_ref, w1_ref, b1_ref, w2_ref, b2_ref, w3_ref, b3_ref,
                      wh1_ref, bh1_ref, wh2_ref, bh2_ref, o_ref,
                      *, tb, n_off2, n_pos2):
    f32, bf16 = jnp.float32, jnp.bfloat16
    cp = w1_ref.shape[1]           # padded channel/lane width (128)
    g = n_pos2 * tb                # rows per conv2-offset group

    # ---- conv1 (8x8, stride 4): one long-K lane-dense matmul over the
    # wrapper-prepared patch rows.  Row order is (conv2-offset k, conv2-output
    # position s, batch b), so conv2's im2col is already done.
    h1 = jnp.dot(xp_ref[...], w1_ref[...], preferred_element_type=f32)
    h1 = jnp.maximum(h1 + b1_ref[...], 0.0).astype(bf16)       # (n_off2*g, cp)

    # ---- conv2 (4x4, stride 2): accumulate over 16 kernel offsets; each
    # offset's activations are a contiguous full-width slice of h1.
    h2 = jnp.zeros((g, cp), f32)
    for k in range(n_off2):
        h2 = h2 + jnp.dot(h1[k * g:(k + 1) * g, :],
                          w2_ref[k * cp:(k + 1) * cp, :],
                          preferred_element_type=f32)
    h2 = jnp.maximum(h2 + b2_ref[...], 0.0).astype(bf16)        # rows = (s, b)

    # ---- conv3 (3x3, stride 1 on the 3x3 conv2 output -> 1x1): accumulate
    # over the 9 spatial positions; each is a contiguous per-position slice.
    h3 = jnp.zeros((tb, cp), f32)
    for s in range(n_pos2):
        h3 = h3 + jnp.dot(h2[s * tb:(s + 1) * tb, :],
                          w3_ref[s * cp:(s + 1) * cp, :],
                          preferred_element_type=f32)
    h3 = jnp.maximum(h3 + b3_ref[...], 0.0).astype(bf16)        # (tb, cp)

    # ---- dueling head: [advantage | value] first layers fused into one
    # (cp, 1024) matmul; second layer packed block-diagonally into a 128-lane
    # slab (advantage -> cols 0..A-1, value -> col A, remaining cols == 0).
    hh = jnp.dot(h3, wh1_ref[...], preferred_element_type=f32) + bh1_ref[...]
    hh = jnp.maximum(hh, 0.0).astype(bf16)                       # (tb, 1024)
    o_ref[...] = (jnp.dot(hh, wh2_ref[...], preferred_element_type=f32)
                  + bh2_ref[...]).astype(o_ref.dtype)


# ----------------------------------------------------------------------------
# Parameter init (PyTorch layouts) and one-time packing into kernel operands.
# ----------------------------------------------------------------------------
def init_params(key, in_channels, num_actions, feature_size):
    """Deterministic init mimicking PyTorch default U(-1/sqrt(fan_in), ...)."""
    keys = jax.random.split(key, 14)

    def unif(k, shape, fan_in):
        bound = 1.0 / jnp.sqrt(jnp.float32(fan_in))
        return jax.random.uniform(k, shape, jnp.float32, -bound, bound)

    p = {}
    p["c1_w"] = unif(keys[0], (32, in_channels, 8, 8), in_channels * 8 * 8)
    p["c1_b"] = unif(keys[1], (32,), in_channels * 8 * 8)
    p["c2_w"] = unif(keys[2], (64, 32, 4, 4), 32 * 4 * 4)
    p["c2_b"] = unif(keys[3], (64,), 32 * 4 * 4)
    p["c3_w"] = unif(keys[4], (64, 64, 3, 3), 64 * 3 * 3)
    p["c3_b"] = unif(keys[5], (64,), 64 * 3 * 3)
    p["a1_w"] = unif(keys[6], (512, feature_size), feature_size)
    p["a1_b"] = unif(keys[7], (512,), feature_size)
    p["a2_w"] = unif(keys[8], (num_actions, 512), 512)
    p["a2_b"] = unif(keys[9], (num_actions,), 512)
    p["v1_w"] = unif(keys[10], (512, feature_size), feature_size)
    p["v1_b"] = unif(keys[11], (512,), feature_size)
    p["v2_w"] = unif(keys[12], (1, 512), 512)
    p["v2_b"] = unif(keys[13], (1,), 512)
    return p


def pack_params(params, *, num_actions):
    """One-time repack of PyTorch-layout params into lane-dense kernel slabs.

    No batch / spatial size is baked in; all channel dims are padded to 128.
    """
    w1 = np.asarray(params["c1_w"], np.float32)      # (32, C, 8, 8)
    w2 = np.asarray(params["c2_w"], np.float32)      # (64, 32, 4, 4)
    w3 = np.asarray(params["c3_w"], np.float32)      # (64, 64, 3, 3)
    C = w1.shape[1]

    # conv1: rows ordered (kh, kw, ci); output channels zero-padded to 128.
    w1s = np.zeros((8 * 8 * C, CP), np.float32)
    w1s[:, :32] = np.transpose(w1, (2, 3, 1, 0)).reshape(8 * 8 * C, 32)
    b1 = np.zeros((1, CP), np.float32)
    b1[0, :32] = np.asarray(params["c1_b"], np.float32)

    # conv2: one (128, 128) zero-padded slab per kernel offset k = ki*4 + kj.
    w2t = np.transpose(w2, (2, 3, 1, 0)).reshape(16, 32, 64)
    w2s = np.zeros((16, CP, CP), np.float32)
    w2s[:, :32, :64] = w2t
    w2s = w2s.reshape(16 * CP, CP)
    b2 = np.zeros((1, CP), np.float32)
    b2[0, :64] = np.asarray(params["c2_b"], np.float32)

    # conv3: one (128, 128) zero-padded slab per spatial position s = ki*3+kj
    # (conv3's 3x3 kernel positions coincide with conv2's 3x3 output grid).
    w3t = np.transpose(w3, (2, 3, 1, 0)).reshape(9, 64, 64)
    w3s = np.zeros((9, CP, CP), np.float32)
    w3s[:, :64, :64] = w3t
    w3s = w3s.reshape(9 * CP, CP)
    b3 = np.zeros((1, CP), np.float32)
    b3[0, :64] = np.asarray(params["c3_b"], np.float32)

    # Dueling head: [advantage | value] branches fused.
    a1w = np.asarray(params["a1_w"], np.float32)     # (512, F)
    v1w = np.asarray(params["v1_w"], np.float32)
    a2w = np.asarray(params["a2_w"], np.float32)     # (A, 512)
    v2w = np.asarray(params["v2_w"], np.float32)     # (1, 512)
    Hh, F = a1w.shape
    A = num_actions
    assert F <= CP and A + 1 <= CP
    wh1 = np.zeros((CP, 2 * Hh), np.float32)         # feature rows padded to 128
    wh1[:F, :Hh] = a1w.T
    wh1[:F, Hh:] = v1w.T
    bh1 = np.concatenate([np.asarray(params["a1_b"], np.float32),
                          np.asarray(params["v1_b"], np.float32)])[None, :]
    wh2 = np.zeros((2 * Hh, CP), np.float32)         # block-diagonal second layer
    wh2[:Hh, :A] = a2w.T                             # advantage -> cols 0..A-1
    wh2[Hh:, A] = v2w[0, :]                          # value     -> col A
    bh2 = np.zeros((1, CP), np.float32)
    bh2[0, :A] = np.asarray(params["a2_b"], np.float32)
    bh2[0, A] = np.asarray(params["v2_b"], np.float32)[0]

    bf16, f32 = jnp.bfloat16, jnp.float32
    return {
        "w1s": jnp.asarray(w1s, bf16), "b1": jnp.asarray(b1, f32),
        "w2s": jnp.asarray(w2s, bf16), "b2": jnp.asarray(b2, f32),
        "w3s": jnp.asarray(w3s, bf16), "b3": jnp.asarray(b3, f32),
        "wh1": jnp.asarray(wh1, bf16), "bh1": jnp.asarray(bh1, f32),
        "wh2": jnp.asarray(wh2, bf16), "bh2": jnp.asarray(bh2, f32),
    }


# ----------------------------------------------------------------------------
# Forward pass
# ----------------------------------------------------------------------------
@functools.partial(jax.jit, static_argnames=("num_actions", "batch_tile"))
def dueling_cnn_dqn_forward(x_nchw, packed, *, num_actions, batch_tile=None):
    B, C, H, W = x_nchw.shape
    h1o, w1o = (H - 8) // 4 + 1, (W - 8) // 4 + 1        # conv1 out (k=8, s=4)
    h2o, w2o = (h1o - 4) // 2 + 1, (w1o - 4) // 2 + 1    # conv2 out (k=4, s=2)
    h3o, w3o = h2o - 2, w2o - 2                          # conv3 out (k=3, s=1)
    # TODO(synk): general conv3 output spatial (e.g. real 84x84 Atari -> 7x7)
    # needs the NCHW flatten permutation baked into the head weights.
    assert h3o == 1 and w3o == 1, "fused head assumes conv3 output is 1x1"

    if batch_tile is None:
        batch_tile = 8 if B % 8 == 0 else B
    tb = batch_tile
    assert B % tb == 0 and (tb == B or tb % 8 == 0)
    n_tiles = B // tb
    n_off2, n_pos2 = 16, h2o * w2o                       # 16 offsets, 9 positions
    rows_per_img = n_off2 * n_pos2                       # 144
    k1 = 8 * 8 * C                                       # conv1 patch length (256)

    # ---- conv1 im2col, with conv2's im2col pre-baked into the row ordering.
    # TODO(synk): fold this patch extraction into the kernel (index_map over the
    # conv1 output grid / in-kernel DMA) or fuse it into the producer of x so
    # the input is not re-written through HBM as a separate XLA op.
    r_idx = (4 * np.arange(h1o)[:, None] + np.arange(8)[None, :]).reshape(-1)
    c_idx = (4 * np.arange(w1o)[:, None] + np.arange(8)[None, :]).reshape(-1)
    xg = x_nchw.astype(jnp.float32)[:, :, r_idx, :][:, :, :, c_idx]
    xg = xg.reshape(B, C, h1o, 8, w1o, 8)
    patches = jnp.transpose(xg, (0, 2, 4, 3, 5, 1)).reshape(B, h1o, w1o, k1)
    ki, kj, io, jo = np.meshgrid(np.arange(4), np.arange(4),
                                 np.arange(h2o), np.arange(w2o), indexing="ij")
    i_sel = (2 * io + ki).reshape(-1)                    # conv1 row per (k, s)
    j_sel = (2 * jo + kj).reshape(-1)
    xp = patches[:, i_sel, j_sel, :]                     # (B, 144, k1), rows (k, s)
    xp = (xp.reshape(n_tiles, tb, rows_per_img, k1)
            .transpose(0, 2, 1, 3)                       # within tile: (k, s, b)
            .reshape(n_tiles * rows_per_img * tb, k1)
            .astype(jnp.bfloat16))

    operands = (xp, packed["w1s"], packed["b1"], packed["w2s"], packed["b2"],
                packed["w3s"], packed["b3"], packed["wh1"], packed["bh1"],
                packed["wh2"], packed["bh2"])

    def const_spec(a):
        return pl.BlockSpec(a.shape, lambda i, nd=a.ndim: (0,) * nd)

    in_specs = [pl.BlockSpec((rows_per_img * tb, k1), lambda i: (i, 0))]
    in_specs += [const_spec(a) for a in operands[1:]]

    out_pad = pl.pallas_call(
        functools.partial(_dqn_fused_kernel, tb=tb, n_off2=n_off2, n_pos2=n_pos2),
        out_shape=jax.ShapeDtypeStruct((B, CP), jnp.float32),
        grid=(n_tiles,),
        in_specs=in_specs,
        out_specs=pl.BlockSpec((tb, CP), lambda i: (i, 0)),
        compiler_params=pltpu.CompilerParams(
            dimension_semantics=("parallel",),           # v7x: 2 TCs share tiles
            vmem_limit_bytes=32 * 1024 * 1024),          # fits v5e/v6e/v7x budgets
    )(*operands)

    adv = out_pad[:, :num_actions]
    val = out_pad[:, num_actions:num_actions + 1]
    # torch semantics: advantage.mean() reduces over ALL (B, A) elements; done
    # in the wrapper so it stays a GLOBAL mean when batch is grid-parallel.
    return val + adv - jnp.mean(adv)


# ----------------------------------------------------------------------------
# Pure-JAX reference (f32, XLA convs) for a tolerance check.
# ----------------------------------------------------------------------------
def reference_forward(x, params):
    dn = ("NCHW", "OIHW", "NCHW")
    y = x.astype(jnp.float32)
    y = jax.nn.relu(jax.lax.conv_general_dilated(
        y, params["c1_w"], (4, 4), "VALID", dimension_numbers=dn)
        + params["c1_b"][None, :, None, None])
    y = jax.nn.relu(jax.lax.conv_general_dilated(
        y, params["c2_w"], (2, 2), "VALID", dimension_numbers=dn)
        + params["c2_b"][None, :, None, None])
    y = jax.nn.relu(jax.lax.conv_general_dilated(
        y, params["c3_w"], (1, 1), "VALID", dimension_numbers=dn)
        + params["c3_b"][None, :, None, None])
    feat = y.reshape(y.shape[0], -1)
    adv = (jax.nn.relu(feat @ params["a1_w"].T + params["a1_b"])
           @ params["a2_w"].T + params["a2_b"])
    val = (jax.nn.relu(feat @ params["v1_w"].T + params["v1_b"])
           @ params["v2_w"].T + params["v2_b"])
    return val + adv - jnp.mean(adv)


if __name__ == "__main__":
    # Small Atari-like configuration: 4 stacked frames, 36x36 spatial
    # (conv chain: 36 -> 8 -> 3 -> 1 spatial => feature_size = 64).
    B, C, H, W = 2, 4, 36, 36
    NUM_ACTIONS = 6
    FEATURE_SIZE = 64 * 1 * 1

    key = jax.random.PRNGKey(0)
    k_x, k_p = jax.random.split(key)
    x = jax.random.uniform(k_x, (B, C, H, W), jnp.float32)
    params = init_params(k_p, C, NUM_ACTIONS, FEATURE_SIZE)
    packed = pack_params(params, num_actions=NUM_ACTIONS)

    q_values = dueling_cnn_dqn_forward(x, packed, num_actions=NUM_ACTIONS)
    jax.block_until_ready(q_values)

    assert q_values.shape == (B, NUM_ACTIONS)
    assert q_values.dtype == jnp.float32

    # Tolerance check against the f32 reference (kernel matmuls run in bf16).
    q_ref = reference_forward(x, params)
    max_err = float(jnp.max(jnp.abs(q_values - q_ref)))
    assert max_err < 5e-2, f"max abs error vs reference too large: {max_err}"

    print("KERNEL_OK")
</pallas_src>

<mosaic_0001>
module attributes {stable_mosaic.version = 11 : i64} {
  func.func @_dqn_fused_kernel(%arg0: i32, %arg1: memref<288x256xbf16, #tpu.memory_space<vmem>>, %arg2: memref<256x128xbf16, #tpu.memory_space<vmem>>, %arg3: memref<1x128xf32, #tpu.memory_space<vmem>>, %arg4: memref<2048x128xbf16, #tpu.memory_space<vmem>>, %arg5: memref<1x128xf32, #tpu.memory_space<vmem>>, %arg6: memref<1152x128xbf16, #tpu.memory_space<vmem>>, %arg7: memref<1x128xf32, #tpu.memory_space<vmem>>, %arg8: memref<128x1024xbf16, #tpu.memory_space<vmem>>, %arg9: memref<1x1024xf32, #tpu.memory_space<vmem>>, %arg10: memref<1024x128xbf16, #tpu.memory_space<vmem>>, %arg11: memref<1x128xf32, #tpu.memory_space<vmem>>, %arg12: memref<2x128xf32, #tpu.memory_space<vmem>>) attributes {dimension_semantics = [#tpu.dimension_semantics<parallel>], iteration_bounds = array<i64: 1>, scalar_prefetch = 0 : i64, scratch_operands = 0 : i64, tpu.core_type = #tpu.core_type<tc>, window_params = [{transform_indices = @transform_0, window_bounds = array<i64: 288, 256>}, {pipeline_mode = #tpu.pipeline_mode<synchronous>, transform_indices = @transform_1, window_bounds = array<i64: 256, 128>}, {pipeline_mode = #tpu.pipeline_mode<synchronous>, transform_indices = @transform_2, window_bounds = array<i64: 1, 128>}, {pipeline_mode = #tpu.pipeline_mode<synchronous>, transform_indices = @transform_3, window_bounds = array<i64: 2048, 128>}, {pipeline_mode = #tpu.pipeline_mode<synchronous>, transform_indices = @transform_4, window_bounds = array<i64: 1, 128>}, {pipeline_mode = #tpu.pipeline_mode<synchronous>, transform_indices = @transform_5, window_bounds = array<i64: 1152, 128>}, {pipeline_mode = #tpu.pipeline_mode<synchronous>, transform_indices = @transform_6, window_bounds = array<i64: 1, 128>}, {pipeline_mode = #tpu.pipeline_mode<synchronous>, transform_indices = @transform_7, window_bounds = array<i64: 128, 1024>}, {pipeline_mode = #tpu.pipeline_mode<synchronous>, transform_indices = @transform_8, window_bounds = array<i64: 1, 1024>}, {pipeline_mode = #tpu.pipeline_mode<synchronous>, transform_indices = @transform_9, window_bounds = array<i64: 1024, 128>}, {pipeline_mode = #tpu.pipeline_mode<synchronous>, transform_indices = @transform_10, window_bounds = array<i64: 1, 128>}, {transform_indices = @transform_11, window_bounds = array<i64: 2, 128>}]} {
    %c0 = arith.constant 0 : index
    %c0_0 = arith.constant 0 : index
    %0 = vector.load %arg1[%c0, %c0_0] : memref<288x256xbf16, #tpu.memory_space<vmem>>, vector<288x256xbf16>
    %c0_1 = arith.constant 0 : index
    %c0_2 = arith.constant 0 : index
    %1 = vector.load %arg2[%c0_1, %c0_2] : memref<256x128xbf16, #tpu.memory_space<vmem>>, vector<256x128xbf16>
    %cst = arith.constant dense<0.000000e+00> : vector<288x128xf32>
    %2 = tpu.matmul %0, %1, %cst {dimension_numbers = #tpu.dot_dimension_numbers<[1], [0], [0], [1], [0, 0, 1, 1], [], []>} : vector<288x256xbf16>, vector<256x128xbf16>, vector<288x128xf32> -> vector<288x128xf32>
    %c0_3 = arith.constant 0 : index
    %c0_4 = arith.constant 0 : index
    %3 = vector.load %arg3[%c0_3, %c0_4] : memref<1x128xf32, #tpu.memory_space<vmem>>, vector<1x128xf32>
    %4 = vector.broadcast %3 : vector<1x128xf32> to vector<288x128xf32>
    %5 = arith.addf %2, %4 : vector<288x128xf32>
    %cst_5 = arith.constant 0.000000e+00 : f32
    %6 = vector.broadcast %cst_5 : f32 to vector<288x128xf32>
    %7 = arith.maximumf %5, %6 : vector<288x128xf32>
    %8 = arith.truncf %7 : vector<288x128xf32> to vector<288x128xbf16>
    %cst_6 = arith.constant 0.000000e+00 : f32
    %9 = vector.broadcast %cst_6 : f32 to vector<18x128xf32>
    %10 = vector.extract_strided_slice %8 {offsets = [0, 0], sizes = [18, 128], strides = [1, 1]} : vector<288x128xbf16> to vector<18x128xbf16>
    %c0_7 = arith.constant 0 : index
    %c0_8 = arith.constant 0 : index
    %11 = vector.load %arg4[%c0_7, %c0_8] : memref<2048x128xbf16, #tpu.memory_space<vmem>>, vector<128x128xbf16>
    %cst_9 = arith.constant dense<0.000000e+00> : vector<18x128xf32>
    %12 = tpu.matmul %10, %11, %cst_9 {dimension_numbers = #tpu.dot_dimension_numbers<[1], [0], [0], [1], [0, 0, 1, 1], [], []>} : vector<18x128xbf16>, vector<128x128xbf16>, vector<18x128xf32> -> vector<18x128xf32>
    %13 = arith.addf %9, %12 : vector<18x128xf32>
    %14 = vector.extract_strided_slice %8 {offsets = [18, 0], sizes = [18, 128], strides = [1, 1]} : vector<288x128xbf16> to vector<18x128xbf16>
    %c128 = arith.constant 128 : index
    %c0_10 = arith.constant 0 : index
    %15 = vector.load %arg4[%c128, %c0_10] : memref<2048x128xbf16, #tpu.memory_space<vmem>>, vector<128x128xbf16>
    %cst_11 = arith.constant dense<0.000000e+00> : vector<18x128xf32>
    %16 = tpu.matmul %14, %15, %cst_11 {dimension_numbers = #tpu.dot_dimension_numbers<[1], [0], [0], [1], [0, 0, 1, 1], [], []>} : vector<18x128xbf16>, vector<128x128xbf16>, vector<18x128xf32> -> vector<18x128xf32>
    %17 = arith.addf %13, %16 : vector<18x128xf32>
    %18 = vector.extract_strided_slice %8 {offsets = [36, 0], sizes = [18, 128], strides = [1, 1]} : vector<288x128xbf16> to vector<18x128xbf16>
    %c256 = arith.constant 256 : index
    %c0_12 = arith.constant 0 : index
    %19 = vector.load %arg4[%c256, %c0_12] : memref<2048x128xbf16, #tpu.memory_space<vmem>>, vector<128x128xbf16>
    %cst_13 = arith.constant dense<0.000000e+00> : vector<18x128xf32>
    %20 = tpu.matmul %18, %19, %cst_13 {dimension_numbers = #tpu.dot_dimension_numbers<[1], [0], [0], [1], [0, 0, 1, 1], [], []>} : vector<18x128xbf16>, vector<128x128xbf16>, vector<18x128xf32> -> vector<18x128xf32>
    %21 = arith.addf %17, %20 : vector<18x128xf32>
    %22 = vector.extract_strided_slice %8 {offsets = [54, 0], sizes = [18, 128], strides = [1, 1]} : vector<288x128xbf16> to vector<18x128xbf16>
    %c384 = arith.constant 384 : index
    %c0_14 = arith.constant 0 : index
    %23 = vector.load %arg4[%c384, %c0_14] : memref<2048x128xbf16, #tpu.memory_space<vmem>>, vector<128x128xbf16>
    %cst_15 = arith.constant dense<0.000000e+00> : vector<18x128xf32>
    %24 = tpu.matmul %22, %23, %cst_15 {dimension_numbers = #tpu.dot_dimension_numbers<[1], [0], [0], [1], [0, 0, 1, 1], [], []>} : vector<18x128xbf16>, vector<128x128xbf16>, vector<18x128xf32> -> vector<18x128xf32>
    %25 = arith.addf %21, %24 : vector<18x128xf32>
    %26 = vector.extract_strided_slice %8 {offsets = [72, 0], sizes = [18, 128], strides = [1, 1]} : vector<288x128xbf16> to vector<18x128xbf16>
    %c512 = arith.constant 512 : index
    %c0_16 = arith.constant 0 : index
    %27 = vector.load %arg4[%c512, %c0_16] : memref<2048x128xbf16, #tpu.memory_space<vmem>>, vector<128x128xbf16>
    %cst_17 = arith.constant dense<0.000000e+00> : vector<18x128xf32>
    %28 = tpu.matmul %26, %27, %cst_17 {dimension_numbers = #tpu.dot_dimension_numbers<[1], [0], [0], [1], [0, 0, 1, 1], [], []>} : vector<18x128xbf16>, vector<128x128xbf16>, vector<18x128xf32> -> vector<18x128xf32>
    %29 = arith.addf %25, %28 : vector<18x128xf32>
    %30 = vector.extract_strided_slice %8 {offsets = [90, 0], sizes = [18, 128], strides = [1, 1]} : vector<288x128xbf16> to vector<18x128xbf16>
    %c640 = arith.constant 640 : index
    %c0_18 = arith.constant 0 : index
    %31 = vector.load %arg4[%c640, %c0_18] : memref<2048x128xbf16, #tpu.memory_space<vmem>>, vector<128x128xbf16>
    %cst_19 = arith.constant dense<0.000000e+00> : vector<18x128xf32>
    %32 = tpu.matmul %30, %31, %cst_19 {dimension_numbers = #tpu.dot_dimension_numbers<[1], [0], [0], [1], [0, 0, 1, 1], [], []>} : vector<18x128xbf16>, vector<128x128xbf16>, vector<18x128xf32> -> vector<18x128xf32>
    %33 = arith.addf %29, %32 : vector<18x128xf32>
    %34 = vector.extract_strided_slice %8 {offsets = [108, 0], sizes = [18, 128], strides = [1, 1]} : vector<288x128xbf16> to vector<18x128xbf16>
    %c768 = arith.constant 768 : index
    %c0_20 = arith.constant 0 : index
    %35 = vector.load %arg4[%c768, %c0_20] : memref<2048x128xbf16, #tpu.memory_space<vmem>>, vector<128x128xbf16>
    %cst_21 = arith.constant dense<0.000000e+00> : vector<18x128xf32>
    %36 = tpu.matmul %34, %35, %cst_21 {dimension_numbers = #tpu.dot_dimension_numbers<[1], [0], [0], [1], [0, 0, 1, 1], [], []>} : vector<18x128xbf16>, vector<128x128xbf16>, vector<18x128xf32> -> vector<18x128xf32>
    %37 = arith.addf %33, %36 : vector<18x128xf32>
    %38 = vector.extract_strided_slice %8 {offsets = [126, 0], sizes = [18, 128], strides = [1, 1]} : vector<288x128xbf16> to vector<18x128xbf16>
    %c896 = arith.constant 896 : index
    %c0_22 = arith.constant 0 : index
    %39 = vector.load %arg4[%c896, %c0_22] : memref<2048x128xbf16, #tpu.memory_space<vmem>>, vector<128x128xbf16>
    %cst_23 = arith.constant dense<0.000000e+00> : vector<18x128xf32>
    %40 = tpu.matmul %38, %39, %cst_23 {dimension_numbers = #tpu.dot_dimension_numbers<[1], [0], [0], [1], [0, 0, 1, 1], [], []>} : vector<18x128xbf16>, vector<128x128xbf16>, vector<18x128xf32> -> vector<18x128xf32>
    %41 = arith.addf %37, %40 : vector<18x128xf32>
    %42 = vector.extract_strided_slice %8 {offsets = [144, 0], sizes = [18, 128], strides = [1, 1]} : vector<288x128xbf16> to vector<18x128xbf16>
    %c1024 = arith.constant 1024 : index
    %c0_24 = arith.constant 0 : index
    %43 = vector.load %arg4[%c1024, %c0_24] : memref<2048x128xbf16, #tpu.memory_space<vmem>>, vector<128x128xbf16>
    %cst_25 = arith.constant dense<0.000000e+00> : vector<18x128xf32>
    %44 = tpu.matmul %42, %43, %cst_25 {dimension_numbers = #tpu.dot_dimension_numbers<[1], [0], [0], [1], [0, 0, 1, 1], [], []>} : vector<18x128xbf16>, vector<128x128xbf16>, vector<18x128xf32> -> vector<18x128xf32>
    %45 = arith.addf %41, %44 : vector<18x128xf32>
    %46 = vector.extract_strided_slice %8 {offsets = [162, 0], sizes = [18, 128], strides = [1, 1]} : vector<288x128xbf16> to vector<18x128xbf16>
    %c1152 = arith.constant 1152 : index
    %c0_26 = arith.constant 0 : index
    %47 = vector.load %arg4[%c1152, %c0_26] : memref<2048x128xbf16, #tpu.memory_space<vmem>>, vector<128x128xbf16>
    %cst_27 = arith.constant dense<0.000000e+00> : vector<18x128xf32>
    %48 = tpu.matmul %46, %47, %cst_27 {dimension_numbers = #tpu.dot_dimension_numbers<[1], [0], [0], [1], [0, 0, 1, 1], [], []>} : vector<18x128xbf16>, vector<128x128xbf16>, vector<18x128xf32> -> vector<18x128xf32>
    %49 = arith.addf %45, %48 : vector<18x128xf32>
    %50 = vector.extract_strided_slice %8 {offsets = [180, 0], sizes = [18, 128], strides = [1, 1]} : vector<288x128xbf16> to vector<18x128xbf16>
    %c1280 = arith.constant 1280 : index
    %c0_28 = arith.constant 0 : index
    %51 = vector.load %arg4[%c1280, %c0_28] : memref<2048x128xbf16, #tpu.memory_space<vmem>>, vector<128x128xbf16>
    %cst_29 = arith.constant dense<0.000000e+00> : vector<18x128xf32>
    %52 = tpu.matmul %50, %51, %cst_29 {dimension_numbers = #tpu.dot_dimension_numbers<[1], [0], [0], [1], [0, 0, 1, 1], [], []>} : vector<18x128xbf16>, vector<128x128xbf16>, vector<18x128xf32> -> vector<18x128xf32>
    %53 = arith.addf %49, %52 : vector<18x128xf32>
    %54 = vector.extract_strided_slice %8 {offsets = [198, 0], sizes = [18, 128], strides = [1, 1]} : vector<288x128xbf16> to vector<18x128xbf16>
    %c1408 = arith.constant 1408 : index
    %c0_30 = arith.constant 0 : index
    %55 = vector.load %arg4[%c1408, %c0_30] : memref<2048x128xbf16, #tpu.memory_space<vmem>>, vector<128x128xbf16>
    %cst_31 = arith.constant dense<0.000000e+00> : vector<18x128xf32>
    %56 = tpu.matmul %54, %55, %cst_31 {dimension_numbers = #tpu.dot_dimension_numbers<[1], [0], [0], [1], [0, 0, 1, 1], [], []>} : vector<18x128xbf16>, vector<128x128xbf16>, vector<18x128xf32> -> vector<18x128xf32>
    %57 = arith.addf %53, %56 : vector<18x128xf32>
    %58 = vector.extract_strided_slice %8 {offsets = [216, 0], sizes = [18, 128], strides = [1, 1]} : vector<288x128xbf16> to vector<18x128xbf16>
    %c1536 = arith.constant 1536 : index
    %c0_32 = arith.constant 0 : index
    %59 = vector.load %arg4[%c1536, %c0_32] : memref<2048x128xbf16, #tpu.memory_space<vmem>>, vector<128x128xbf16>
    %cst_33 = arith.constant dense<0.000000e+00> : vector<18x128xf32>
    %60 = tpu.matmul %58, %59, %cst_33 {dimension_numbers = #tpu.dot_dimension_numbers<[1], [0], [0], [1], [0, 0, 1, 1], [], []>} : vector<18x128xbf16>, vector<128x128xbf16>, vector<18x128xf32> -> vector<18x128xf32>
    %61 = arith.addf %57, %60 : vector<18x128xf32>
    %62 = vector.extract_strided_slice %8 {offsets = [234, 0], sizes = [18, 128], strides = [1, 1]} : vector<288x128xbf16> to vector<18x128xbf16>
    %c1664 = arith.constant 1664 : index
    %c0_34 = arith.constant 0 : index
    %63 = vector.load %arg4[%c1664, %c0_34] : memref<2048x128xbf16, #tpu.memory_space<vmem>>, vector<128x128xbf16>
    %cst_35 = arith.constant dense<0.000000e+00> : vector<18x128xf32>
    %64 = tpu.matmul %62, %63, %cst_35 {dimension_numbers = #tpu.dot_dimension_numbers<[1], [0], [0], [1], [0, 0, 1, 1], [], []>} : vector<18x128xbf16>, vector<128x128xbf16>, vector<18x128xf32> -> vector<18x128xf32>
    %65 = arith.addf %61, %64 : vector<18x128xf32>
    %66 = vector.extract_strided_slice %8 {offsets = [252, 0], sizes = [18, 128], strides = [1, 1]} : vector<288x128xbf16> to vector<18x128xbf16>
    %c1792 = arith.constant 1792 : index
    %c0_36 = arith.constant 0 : index
    %67 = vector.load %arg4[%c1792, %c0_36] : memref<2048x128xbf16, #tpu.memory_space<vmem>>, vector<128x128xbf16>
    %cst_37 = arith.constant dense<0.000000e+00> : vector<18x128xf32>
    %68 = tpu.matmul %66, %67, %cst_37 {dimension_numbers = #tpu.dot_dimension_numbers<[1], [0], [0], [1], [0, 0, 1, 1], [], []>} : vector<18x128xbf16>, vector<128x128xbf16>, vector<18x128xf32> -> vector<18x128xf32>
    %69 = arith.addf %65, %68 : vector<18x128xf32>
    %70 = vector.extract_strided_slice %8 {offsets = [270, 0], sizes = [18, 128], strides = [1, 1]} : vector<288x128xbf16> to vector<18x128xbf16>
    %c1920 = arith.constant 1920 : index
    %c0_38 = arith.constant 0 : index
    %71 = vector.load %arg4[%c1920, %c0_38] : memref<2048x128xbf16, #tpu.memory_space<vmem>>, vector<128x128xbf16>
    %cst_39 = arith.constant dense<0.000000e+00> : vector<18x128xf32>
    %72 = tpu.matmul %70, %71, %cst_39 {dimension_numbers = #tpu.dot_dimension_numbers<[1], [0], [0], [1], [0, 0, 1, 1], [], []>} : vector<18x128xbf16>, vector<128x128xbf16>, vector<18x128xf32> -> vector<18x128xf32>
    %73 = arith.addf %69, %72 : vector<18x128xf32>
    %c0_40 = arith.constant 0 : index
    %c0_41 = arith.constant 0 : index
    %74 = vector.load %arg5[%c0_40, %c0_41] : memref<1x128xf32, #tpu.memory_space<vmem>>, vector<1x128xf32>
    %75 = vector.broadcast %74 : vector<1x128xf32> to vector<18x128xf32>
    %76 = arith.addf %73, %75 : vector<18x128xf32>
    %cst_42 = arith.constant 0.000000e+00 : f32
    %77 = vector.broadcast %cst_42 : f32 to vector<18x128xf32>
    %78 = arith.maximumf %76, %77 : vector<18x128xf32>
    %79 = arith.truncf %78 : vector<18x128xf32> to vector<18x128xbf16>
    %cst_43 = arith.constant 0.000000e+00 : f32
    %80 = vector.broadcast %cst_43 : f32 to vector<2x128xf32>
    %81 = vector.extract_strided_slice %79 {offsets = [0, 0], sizes = [2, 128], strides = [1, 1]} : vector<18x128xbf16> to vector<2x128xbf16>
    %c0_44 = arith.constant 0 : index
    %c0_45 = arith.constant 0 : index
    %82 = vector.load %arg6[%c0_44, %c0_45] : memref<1152x128xbf16, #tpu.memory_space<vmem>>, vector<128x128xbf16>
    %cst_46 = arith.constant dense<0.000000e+00> : vector<2x128xf32>
    %83 = tpu.matmul %81, %82, %cst_46 {dimension_numbers = #tpu.dot_dimension_numbers<[1], [0], [0], [1], [0, 0, 1, 1], [], []>} : vector<2x128xbf16>, vector<128x128xbf16>, vector<2x128xf32> -> vector<2x128xf32>
    %84 = arith.addf %80, %83 : vector<2x128xf32>
    %85 = vector.extract_strided_slice %79 {offsets = [2, 0], sizes = [2, 128], strides = [1, 1]} : vector<18x128xbf16> to vector<2x128xbf16>
    %c128_47 = arith.constant 128 : index
    %c0_48 = arith.constant 0 : index
    %86 = vector.load %arg6[%c128_47, %c0_48] : memref<1152x128xbf16, #tpu.memory_space<vmem>>, vector<128x128xbf16>
    %cst_49 = arith.constant dense<0.000000e+00> : vector<2x128xf32>
    %87 = tpu.matmul %85, %86, %cst_49 {dimension_numbers = #tpu.dot_dimension_numbers<[1], [0], [0], [1], [0, 0, 1, 1], [], []>} : vector<2x128xbf16>, vector<128x128xbf16>, vector<2x128xf32> -> vector<2x128xf32>
    %88 = arith.addf %84, %87 : vector<2x128xf32>
    %89 = vector.extract_strided_slice %79 {offsets = [4, 0], sizes = [2, 128], strides = [1, 1]} : vector<18x128xbf16> to vector<2x128xbf16>
    %c256_50 = arith.constant 256 : index
    %c0_51 = arith.constant 0 : index
    %90 = vector.load %arg6[%c256_50, %c0_51] : memref<1152x128xbf16, #tpu.memory_space<vmem>>, vector<128x128xbf16>
    %cst_52 = arith.constant dense<0.000000e+00> : vector<2x128xf32>
    %91 = tpu.matmul %89, %90, %cst_52 {dimension_numbers = #tpu.dot_dimension_numbers<[1], [0], [0], [1], [0, 0, 1, 1], [], []>} : vector<2x128xbf16>, vector<128x128xbf16>, vector<2x128xf32> -> vector<2x128xf32>
    %92 = arith.addf %88, %91 : vector<2x128xf32>
    %93 = vector.extract_strided_slice %79 {offsets = [6, 0], sizes = [2, 128], strides = [1, 1]} : vector<18x128xbf16> to vector<2x128xbf16>
    %c384_53 = arith.constant 384 : index
    %c0_54 = arith.constant 0 : index
    %94 = vector.load %arg6[%c384_53, %c0_54] : memref<1152x128xbf16, #tpu.memory_space<vmem>>, vector<128x128xbf16>
    %cst_55 = arith.constant dense<0.000000e+00> : vector<2x128xf32>
    %95 = tpu.matmul %93, %94, %cst_55 {dimension_numbers = #tpu.dot_dimension_numbers<[1], [0], [0], [1], [0, 0, 1, 1], [], []>} : vector<2x128xbf16>, vector<128x128xbf16>, vector<2x128xf32> -> vector<2x128xf32>
    %96 = arith.addf %92, %95 : vector<2x128xf32>
    %97 = vector.extract_strided_slice %79 {offsets = [8, 0], sizes = [2, 128], strides = [1, 1]} : vector<18x128xbf16> to vector<2x128xbf16>
    %c512_56 = arith.constant 512 : index
    %c0_57 = arith.constant 0 : index
    %98 = vector.load %arg6[%c512_56, %c0_57] : memref<1152x128xbf16, #tpu.memory_space<vmem>>, vector<128x128xbf16>
    %cst_58 = arith.constant dense<0.000000e+00> : vector<2x128xf32>
    %99 = tpu.matmul %97, %98, %cst_58 {dimension_numbers = #tpu.dot_dimension_numbers<[1], [0], [0], [1], [0, 0, 1, 1], [], []>} : vector<2x128xbf16>, vector<128x128xbf16>, vector<2x128xf32> -> vector<2x128xf32>
    %100 = arith.addf %96, %99 : vector<2x128xf32>
    %101 = vector.extract_strided_slice %79 {offsets = [10, 0], sizes = [2, 128], strides = [1, 1]} : vector<18x128xbf16> to vector<2x128xbf16>
    %c640_59 = arith.constant 640 : index
    %c0_60 = arith.constant 0 : index
    %102 = vector.load %arg6[%c640_59, %c0_60] : memref<1152x128xbf16, #tpu.memory_space<vmem>>, vector<128x128xbf16>
    %cst_61 = arith.constant dense<0.000000e+00> : vector<2x128xf32>
    %103 = tpu.matmul %101, %102, %cst_61 {dimension_numbers = #tpu.dot_dimension_numbers<[1], [0], [0], [1], [0, 0, 1, 1], [], []>} : vector<2x128xbf16>, vector<128x128xbf16>, vector<2x128xf32> -> vector<2x128xf32>
    %104 = arith.addf %100, %103 : vector<2x128xf32>
    %105 = vector.extract_strided_slice %79 {offsets = [12, 0], sizes = [2, 128], strides = [1, 1]} : vector<18x128xbf16> to vector<2x128xbf16>
    %c768_62 = arith.constant 768 : index
    %c0_63 = arith.constant 0 : index
    %106 = vector.load %arg6[%c768_62, %c0_63] : memref<1152x128xbf16, #tpu.memory_space<vmem>>, vector<128x128xbf16>
    %cst_64 = arith.constant dense<0.000000e+00> : vector<2x128xf32>
    %107 = tpu.matmul %105, %106, %cst_64 {dimension_numbers = #tpu.dot_dimension_numbers<[1], [0], [0], [1], [0, 0, 1, 1], [], []>} : vector<2x128xbf16>, vector<128x128xbf16>, vector<2x128xf32> -> vector<2x128xf32>
    %108 = arith.addf %104, %107 : vector<2x128xf32>
    %109 = vector.extract_strided_slice %79 {offsets = [14, 0], sizes = [2, 128], strides = [1, 1]} : vector<18x128xbf16> to vector<2x128xbf16>
    %c896_65 = arith.constant 896 : index
    %c0_66 = arith.constant 0 : index
    %110 = vector.load %arg6[%c896_65, %c0_66] : memref<1152x128xbf16, #tpu.memory_space<vmem>>, vector<128x128xbf16>
    %cst_67 = arith.constant dense<0.000000e+00> : vector<2x128xf32>
    %111 = tpu.matmul %109, %110, %cst_67 {dimension_numbers = #tpu.dot_dimension_numbers<[1], [0], [0], [1], [0, 0, 1, 1], [], []>} : vector<2x128xbf16>, vector<128x128xbf16>, vector<2x128xf32> -> vector<2x128xf32>
    %112 = arith.addf %108, %111 : vector<2x128xf32>
    %113 = vector.extract_strided_slice %79 {offsets = [16, 0], sizes = [2, 128], strides = [1, 1]} : vector<18x128xbf16> to vector<2x128xbf16>
    %c1024_68 = arith.constant 1024 : index
    %c0_69 = arith.constant 0 : index
    %114 = vector.load %arg6[%c1024_68, %c0_69] : memref<1152x128xbf16, #tpu.memory_space<vmem>>, vector<128x128xbf16>
    %cst_70 = arith.constant dense<0.000000e+00> : vector<2x128xf32>
    %115 = tpu.matmul %113, %114, %cst_70 {dimension_numbers = #tpu.dot_dimension_numbers<[1], [0], [0], [1], [0, 0, 1, 1], [], []>} : vector<2x128xbf16>, vector<128x128xbf16>, vector<2x128xf32> -> vector<2x128xf32>
    %116 = arith.addf %112, %115 : vector<2x128xf32>
    %c0_71 = arith.constant 0 : index
    %c0_72 = arith.constant 0 : index
    %117 = vector.load %arg7[%c0_71, %c0_72] : memref<1x128xf32, #tpu.memory_space<vmem>>, vector<1x128xf32>
    %118 = vector.broadcast %117 : vector<1x128xf32> to vector<2x128xf32>
    %119 = arith.addf %116, %118 : vector<2x128xf32>
    %cst_73 = arith.constant 0.000000e+00 : f32
    %120 = vector.broadcast %cst_73 : f32 to vector<2x128xf32>
    %121 = arith.maximumf %119, %120 : vector<2x128xf32>
    %122 = arith.truncf %121 : vector<2x128xf32> to vector<2x128xbf16>
    %c0_74 = arith.constant 0 : index
    %c0_75 = arith.constant 0 : index
    %123 = vector.load %arg8[%c0_74, %c0_75] : memref<128x1024xbf16, #tpu.memory_space<vmem>>, vector<128x1024xbf16>
    %cst_76 = arith.constant dense<0.000000e+00> : vector<2x1024xf32>
    %124 = tpu.matmul %122, %123, %cst_76 {dimension_numbers = #tpu.dot_dimension_numbers<[1], [0], [0], [1], [0, 0, 1, 1], [], []>} : vector<2x128xbf16>, vector<128x1024xbf16>, vector<2x1024xf32> -> vector<2x1024xf32>
    %c0_77 = arith.constant 0 : index
    %c0_78 = arith.constant 0 : index
    %125 = vector.load %arg9[%c0_77, %c0_78] : memref<1x1024xf32, #tpu.memory_space<vmem>>, vector<1x1024xf32>
    %126 = vector.broadcast %125 : vector<1x1024xf32> to vector<2x1024xf32>
    %127 = arith.addf %124, %126 : vector<2x1024xf32>
    %cst_79 = arith.constant 0.000000e+00 : f32
    %128 = vector.broadcast %cst_79 : f32 to vector<2x1024xf32>
    %129 = arith.maximumf %127, %128 : vector<2x1024xf32>
    %130 = arith.truncf %129 : vector<2x1024xf32> to vector<2x1024xbf16>
    %c0_80 = arith.constant 0 : index
    %c0_81 = arith.constant 0 : index
    %131 = vector.load %arg10[%c0_80, %c0_81] : memref<1024x128xbf16, #tpu.memory_space<vmem>>, vector<1024x128xbf16>
    %cst_82 = arith.constant dense<0.000000e+00> : vector<2x128xf32>
    %132 = tpu.matmul %130, %131, %cst_82 {dimension_numbers = #tpu.dot_dimension_numbers<[1], [0], [0], [1], [0, 0, 1, 1], [], []>} : vector<2x1024xbf16>, vector<1024x128xbf16>, vector<2x128xf32> -> vector<2x128xf32>
    %c0_83 = arith.constant 0 : index
    %c0_84 = arith.constant 0 : index
    %133 = vector.load %arg11[%c0_83, %c0_84] : memref<1x128xf32, #tpu.memory_space<vmem>>, vector<1x128xf32>
    %134 = vector.broadcast %133 : vector<1x128xf32> to vector<2x128xf32>
    %135 = arith.addf %132, %134 : vector<2x128xf32>
    %c0_85 = arith.constant 0 : index
    %c0_86 = arith.constant 0 : index
    %136 = vector.load %arg12[%c0_85, %c0_86] : memref<2x128xf32, #tpu.memory_space<vmem>>, vector<2x128xf32>
    tpu.vector_store %arg12[%c0_85, %c0_86], %135 {strides = array<i32>} : memref<2x128xf32, #tpu.memory_space<vmem>>, vector<2x128xf32>,
    return
  }
  func.func @transform_0(%arg0: i32) -> (i32, i32) {
    %c0_i32 = arith.constant 0 : i32
    %c0_i32_0 = arith.constant 0 : i32
    return %arg0, %c0_i32 : i32, i32
  }
  func.func @transform_1(%arg0: i32) -> (i32, i32) {
    %c0_i32 = arith.constant 0 : i32
    %c0_i32_0 = arith.constant 0 : i32
    %c0_i32_1 = arith.constant 0 : i32
    return %c0_i32, %c0_i32_0 : i32, i32
  }
  func.func @transform_2(%arg0: i32) -> (i32, i32) {
    %c0_i32 = arith.constant 0 : i32
    %c0_i32_0 = arith.constant 0 : i32
    %c0_i32_1 = arith.constant 0 : i32
    return %c0_i32, %c0_i32_0 : i32, i32
  }
  func.func @transform_3(%arg0: i32) -> (i32, i32) {
    %c0_i32 = arith.constant 0 : i32
    %c0_i32_0 = arith.constant 0 : i32
    %c0_i32_1 = arith.constant 0 : i32
    return %c0_i32, %c0_i32_0 : i32, i32
  }
  func.func @transform_4(%arg0: i32) -> (i32, i32) {
    %c0_i32 = arith.constant 0 : i32
    %c0_i32_0 = arith.constant 0 : i32
    %c0_i32_1 = arith.constant 0 : i32
    return %c0_i32, %c0_i32_0 : i32, i32
  }
  func.func @transform_5(%arg0: i32) -> (i32, i32) {
    %c0_i32 = arith.constant 0 : i32
    %c0_i32_0 = arith.constant 0 : i32
    %c0_i32_1 = arith.constant 0 : i32
    return %c0_i32, %c0_i32_0 : i32, i32
  }
  func.func @transform_6(%arg0: i32) -> (i32, i32) {
    %c0_i32 = arith.constant 0 : i32
    %c0_i32_0 = arith.constant 0 : i32
    %c0_i32_1 = arith.constant 0 : i32
    return %c0_i32, %c0_i32_0 : i32, i32
  }
  func.func @transform_7(%arg0: i32) -> (i32, i32) {
    %c0_i32 = arith.constant 0 : i32
    %c0_i32_0 = arith.constant 0 : i32
    %c0_i32_1 = arith.constant 0 : i32
    return %c0_i32, %c0_i32_0 : i32, i32
  }
  func.func @transform_8(%arg0: i32) -> (i32, i32) {
    %c0_i32 = arith.constant 0 : i32
    %c0_i32_0 = arith.constant 0 : i32
    %c0_i32_1 = arith.constant 0 : i32
    return %c0_i32, %c0_i32_0 : i32, i32
  }
  func.func @transform_9(%arg0: i32) -> (i32, i32) {
    %c0_i32 = arith.constant 0 : i32
    %c0_i32_0 = arith.constant 0 : i32
    %c0_i32_1 = arith.constant 0 : i32
    return %c0_i32, %c0_i32_0 : i32, i32
  }
  func.func @transform_10(%arg0: i32) -> (i32, i32) {
    %c0_i32 = arith.constant 0 : i32
    %c0_i32_0 = arith.constant 0 : i32
    %c0_i32_1 = arith.constant 0 : i32
    return %c0_i32, %c0_i32_0 : i32, i32
  }
  func.func @transform_11(%arg0: i32) -> (i32, i32) {
    %c0_i32 = arith.constant 0 : i32
    %c0_i32_0 = arith.constant 0 : i32
    return %arg0, %c0_i32 : i32, i32
  }
}

</mosaic_0001>

<bundles_post_ra>
// kernel: dueling_cnn_dqn_forward.1
= control target key start
LH: loop header
LB: loop body
LE: loop exit
PB: predicated region body
PF: predicated region fallthrough
CT: control target
= control target key end

     0   :  { %v6371_v0 = vmov 0   ;;  %vm655_vm0 = vcmask 1046528   ;;  %vm870_vm1 = vcmask 1045504   ;;  %vm992_vm2 = vcmask 1044480   ;;  %s7963_s1 = inlined_call_operand.vmem [shape: bf16[256,128], index: 1, kind: input, shape index: {}]   ;;  %s7964_s0 = inlined_call_operand.vmem [shape: bf16[288,256], index: 0, kind: input, shape index: {}]   ;;  %s7965_s3 = inlined_call_operand.vmem [shape: bf16[2048,128], index: 3, kind: input, shape index: {}]   ;;  %s7966_s2 = inlined_call_operand.vmem [shape: f32[1,128], index: 2, kind: input, shape index: {}]   ;;  %s7967_s5 = inlined_call_operand.vmem [shape: bf16[1152,128], index: 5, kind: input, shape index: {}]   ;;  %s7968_s4 = inlined_call_operand.vmem [shape: f32[1,128], index: 4, kind: input, shape index: {}]   ;;  %s7969_s7 = inlined_call_operand.vmem [shape: bf16[128,1024], index: 7, kind: input, shape index: {}]   ;;  %s7970_s9 = inlined_call_operand.vmem [shape: bf16[1024,128], index: 9, kind: input, shape index: {}]   ;;  %s7971_s6 = inlined_call_operand.vmem [shape: f32[1,128], index: 6, kind: input, shape index: {}]   ;;  %s7972_s8 = inlined_call_operand.vmem [shape: f32[1,1024], index: 8, kind: input, shape index: {}]   ;;  %s7973_s10 = inlined_call_operand.vmem [shape: f32[1,128], index: 10, kind: input, shape index: {}]   ;;  %s7974_s11 = inlined_call_operand.vmem [shape: f32[2,128], index: 11, kind: output, shape index: {}]  }
   0x1   :  { %390 = vmatprep.subr.bf16.mxu0 %v6371_v0  ;;  %v6037_v1 = vld [vmem:[%s7963_s1] sm:$0xff]   ;;  %v6038_v2 = vld [vmem:[%s7963_s1 + $0x8] sm:$0xff]   ;;  %v6039_v3 = vld [vmem:[%s7963_s1 + $0x10] sm:$0xff]   ;;  %vm1114_vm3 = vcmask 1043456   ;;  %vm1236_vm4 = vcmask 1042432   ;;  %vm1358_vm5 = vcmask 1041408  }
   0x2   :  { %391 = vmatpush1.bf16.msra.mxu0 %v6037_v1  ;;  %v6040_v4 = vld [vmem:[%s7963_s1 + $0x18] sm:$0xff]   ;;  %v6041_v5 = vld [vmem:[%s7963_s1 + $0x20] sm:$0xff]   ;;  %v6042_v7 = vld [vmem:[%s7963_s1 + $0x28] sm:$0xff]   ;;  %vm1480_vm6 = vcmask 1040384   ;;  %vm6373_vm7 = vmmov 0  }
   0x3   :  { %392 = vmatprep.subr.bf16.mxu0 %v6371_v0  ;;  %v6055_v6 = vld [vmem:[%s7964_s0 + $0x4] ss:$8 sps:$4 sm:$0xff]   ;;  %v6043_v8 = vld [vmem:[%s7963_s1 + $0x30] sm:$0xff]   ;;  %v6044_v9 = vld [vmem:[%s7963_s1 + $0x38] sm:$0xff]  }
   0x4   :  { %422 = vmatprep.mubr.bf16.mxu0 %v6055_v6  ;;  %v6045_v10 = vld [vmem:[%s7963_s1 + $0x40] sm:$0xff]   ;;  %v6046_v12 = vld [vmem:[%s7963_s1 + $0x48] sm:$0xff]   ;;  %v6047_v13 = vld [vmem:[%s7963_s1 + $0x50] sm:$0xff]  }
   0x5   :  { %v6083_v11 = vld [vmem:[%s7965_s3 + $0x40] sm:$0xff]   ;;  %v6048_v14 = vld [vmem:[%s7963_s1 + $0x58] sm:$0xff]   ;;  %v6050_v16 = vld [vmem:[%s7963_s1 + $0x68] sm:$0xff]  }
   0x6   :  { %393 = vmatpush1.bf16.msra.mxu0 %v6038_v2  ;;  %5534 = vmatprep.subr.bf16.mxu1 %v6083_v11  ;;  %v6049_v15 = vld [vmem:[%s7963_s1 + $0x60] sm:$0xff]   ;;  %v6051_v17 = vld [vmem:[%s7963_s1 + $0x70] sm:$0xff]   ;;  %v6052_v18 = vld [vmem:[%s7963_s1 + $0x78] sm:$0xff]  }
   0x7   :  { %394 = vmatprep.subr.bf16.mxu0 %v6371_v0  ;;  %5535 = vmatpush3.bf16.msra.mxu1 %v6083_v11  ;;  %v6053_v19 = vld [vmem:[%s7964_s0] ss:$8 sps:$4 sm:$0xff]   ;;  %v6056_v20 = vld [vmem:[%s7964_s0 + $0x14] ss:$8 sps:$4 sm:$0xff]   ;;  %v6058_v21 = vld [vmem:[%s7964_s0 + $0x10] ss:$8 sps:$4 sm:$0xff]  }
   0x8   :  { %v6059_v22 = vld [vmem:[%s7964_s0 + $0x24] ss:$8 sps:$4 sm:$0xff]   ;;  %v6061_v23 = vld [vmem:[%s7964_s0 + $0x20] ss:$8 sps:$4 sm:$0xff]   ;;  %v6062_v24 = vld [vmem:[%s7964_s0 + $0x34] ss:$8 sps:$4 sm:$0xff]  }
   0x9   :  { %v6064_v25 = vld [vmem:[%s7964_s0 + $0x30] ss:$8 sps:$4 sm:$0xff]   ;;  %v6065_v26 = vld [vmem:[%s7964_s0 + $0x44] ss:$8 sps:$4 sm:$0xff]   ;;  %v6067_v27 = vld [vmem:[%s7964_s0 + $0x40] ss:$8 sps:$4 sm:$0xff]  }
   0xa   :  { %395 = vmatpush1.bf16.msra.mxu0 %v6039_v3  ;;  %v6068_v28 = vld [vmem:[%s7964_s0 + $0x54] ss:$8 sps:$4 sm:$0xff]   ;;  %v6070_v29 = vld [vmem:[%s7964_s0 + $0x50] ss:$8 sps:$4 sm:$0xff]   ;;  %v6071_v30 = vld [vmem:[%s7964_s0 + $0x64] ss:$8 sps:$4 sm:$0xff]  }
   0xb   :  { %396 = vmatprep.subr.bf16.mxu0 %v6371_v0  ;;  %v6073_v31 = vld [vmem:[%s7964_s0 + $0x60] ss:$8 sps:$4 sm:$0xff]   ;;  %v6074_v32 = vld [vmem:[%s7964_s0 + $0x74] ss:$8 sps:$4 sm:$0xff]   ;;  %v6076_v33 = vld [vmem:[%s7964_s0 + $0x70] ss:$8 sps:$4 sm:$0xff]  }
   0xc   :  { %v6077_v34 = vld [vmem:[%s7964_s0 + $0x84] ss:$8 sps:$4 sm:$0xff]   ;;  %v6079_v35 = vld [vmem:[%s7964_s0 + $0x80] ss:$8 sps:$4 sm:$0xff]   ;;  %v6080_v36 = vld [vmem:[%s7964_s0 + $0x94] ss:$8 sps:$4 sm:$0xff]  }
   0xd   :  { %v6082_v37 = vld [vmem:[%s7964_s0 + $0x90] ss:$8 sps:$4 sm:$0xff]   ;;  %v6084_v38 = vld [vmem:[%s7965_s3 + $0x48] sm:$0xff]   ;;  %v6090_v43 = vld [vmem:[%s7965_s3 + $0x60] sm:$0xff]  }
   0xe   :  { %397 = vmatpush1.bf16.msra.mxu0 %v6040_v4  ;;  %v6085_v39 = vld [vmem:[%s7964_s0 + $0xa4] ss:$8 sps:$4 sm:$0xff]   ;;  %5536 = vmatprep.subr.bf16.mxu1 %v6084_v38  ;;  %v6087_v40 = vld [vmem:[%s7964_s0 + $0xa0] ss:$8 sps:$4 sm:$0xff]   ;;  %v6088_v41 = vld [vmem:[%s7965_s3 + $0x50] sm:$0xff]  }
   0xf   :  { %398 = vmatprep.subr.bf16.mxu0 %v6371_v0  ;;  %5537 = vmatpush3.bf16.msra.mxu1 %v6084_v38  ;;  %v6089_v42 = vld [vmem:[%s7965_s3 + $0x58] sm:$0xff]   ;;  %v6091_v44 = vld [vmem:[%s7965_s3 + $0x68] sm:$0xff]   ;;  %v6095_v47 = vld [vmem:[%s7965_s3 + $0x70] sm:$0xff]  }
  0x10   :  { %5538 = vmatprep.subr.bf16.mxu1 %v6088_v41  ;;  %v6092_v45 = vld [vmem:[%s7964_s0 + $0xb4] ss:$8 sps:$4 sm:$0xff]   ;;  %v6094_v46 = vld [vmem:[%s7964_s0 + $0xb0] ss:$8 sps:$4 sm:$0xff]   ;;  %v6097_v49 = vld [vmem:[%s7964_s0 + $0xc4] ss:$8 sps:$4 sm:$0xff]  }
  0x11   :  { %v6096_v48 = vld [vmem:[%s7965_s3 + $0x78] sm:$0xff]   ;;  %v6099_v50 = vld [vmem:[%s7964_s0 + $0xc0] ss:$8 sps:$4 sm:$0xff]   ;;  %v6111_v54 = vld [vmem:[%s7964_s0 + $0xe4] ss:$8 sps:$4 sm:$0xff]  }
  0x12   :  { %399 = vmatpush1.bf16.msra.mxu0 %v6041_v5  ;;  %v6603_v51 = vld [vmem:[%s7965_s3] sm:$0xff]   ;;  %v6106_v52 = vld [vmem:[%s7964_s0 + $0xd4] ss:$8 sps:$4 sm:$0xff]   ;;  %v6108_v53 = vld [vmem:[%s7964_s0 + $0xd0] ss:$8 sps:$4 sm:$0xff]  }
  0x13   :  { %400 = vmatprep.subr.bf16.mxu0 %v6371_v0  ;;  %5539 = vmatpush3.bf16.msra.mxu1 %v6088_v41  ;;  %v6113_v55 = vld [vmem:[%s7964_s0 + $0xe0] ss:$8 sps:$4 sm:$0xff]   ;;  %v6121_v57 = vld [vmem:[%s7964_s0 + $0xf4] ss:$8 sps:$4 sm:$0xff]   ;;  %v6123_v58 = vld [vmem:[%s7964_s0 + $0xf0] ss:$8 sps:$4 sm:$0xff]  }
  0x14   :  { %5540 = vmatprep.subr.bf16.mxu1 %v6089_v42  ;;  %v6118_v56 = vld [vmem:[%s7965_s3 + $0x180] sm:$0xff]   ;;  %v6130_v61 = vld [vmem:[%s7965_s3 + $0x188] sm:$0xff]   ;;  %v6135_v62 = vld [vmem:[%s7965_s3 + $0x190] sm:$0xff]  }
  0x15   :  { %v6126_v59 = vld [vmem:[%s7964_s0 + $0x104] ss:$8 sps:$4 sm:$0xff]   ;;  %v6128_v60 = vld [vmem:[%s7964_s0 + $0x100] ss:$8 sps:$4 sm:$0xff]   ;;  %v6137_v63 = vld [vmem:[%s7964_s0 + $0x114] ss:$8 sps:$4 sm:$0xff]  }
  0x16   :  { %401 = vmatpush1.bf16.msra.mxu0 %v6042_v7  ;;  %v6139_v1 = vld [vmem:[%s7964_s0 + $0x110] ss:$8 sps:$4 sm:$0xff]   ;;  %v6648_v2 = vld [vmem:[%s7966_s2] ss:$0 sm:$0xff]  ;;  %v6101_v41 = vld [vmem:[%s7965_s3 + $0x8] sm:$0xff]  }
  0x17   :  { %402 = vmatprep.subr.bf16.mxu0 %v6371_v0  ;;  %5541 = vmatpush3.bf16.msra.mxu1 %v6089_v42  ;;  %v6144_v3 = vld [vmem:[%s7965_s3 + $0x198] sm:$0xff]  }
  0x18   :  { %5542 = vmatprep.subr.bf16.mxu1 %v6090_v43 }
  0x1a   :  { %403 = vmatpush1.bf16.msra.mxu0 %v6043_v8 }
  0x1b   :  { %404 = vmatprep.subr.bf16.mxu0 %v6371_v0  ;;  %5543 = vmatpush3.bf16.msra.mxu1 %v6090_v43 }
  0x1c   :  { %5544 = vmatprep.subr.bf16.mxu1 %v6091_v44 }
  0x1e   :  { %405 = vmatpush1.bf16.msra.mxu0 %v6044_v9 }
  0x1f   :  { %406 = vmatprep.subr.bf16.mxu0 %v6371_v0  ;;  %5545 = vmatpush3.bf16.msra.mxu1 %v6091_v44 }
  0x20   :  { %5546 = vmatprep.subr.bf16.mxu1 %v6095_v47 }
  0x22   :  { %407 = vmatpush1.bf16.msra.mxu0 %v6045_v10 }
  0x23   :  { %408 = vmatprep.subr.bf16.mxu0 %v6371_v0  ;;  %5547 = vmatpush3.bf16.msra.mxu1 %v6095_v47 }
  0x24   :  { %5548 = vmatprep.subr.bf16.mxu1 %v6096_v48 }
  0x26   :  { %409 = vmatpush1.bf16.msra.mxu0 %v6046_v12 }
  0x27   :  { %410 = vmatprep.subr.bf16.mxu0 %v6371_v0  ;;  %5549 = vmatpush3.bf16.msra.mxu1 %v6096_v48 }
  0x28   :  { %5554 = vmatprep.subr.bf16.mxu1 %v6603_v51 }
  0x2a   :  { %411 = vmatpush1.bf16.msra.mxu0 %v6047_v13 }
  0x2b   :  { %412 = vmatprep.subr.bf16.mxu0 %v6371_v0 }
  0x2e   :  { %413 = vmatpush1.bf16.msra.mxu0 %v6048_v14 }
  0x2f   :  { %414 = vmatprep.subr.bf16.mxu0 %v6371_v0 }
  0x32   :  { %415 = vmatpush1.bf16.msra.mxu0 %v6049_v15 }
  0x33   :  { %416 = vmatprep.subr.bf16.mxu0 %v6371_v0 }
  0x36   :  { %417 = vmatpush1.bf16.msra.mxu0 %v6050_v16 }
  0x37   :  { %418 = vmatprep.subr.bf16.mxu0 %v6371_v0 }
  0x3a   :  { %419 = vmatpush1.bf16.msra.mxu0 %v6051_v17 }
  0x3b   :  { %420 = vmatprep.subr.bf16.mxu0 %v6371_v0 }
  0x3e   :  { %421 = vmatpush1.bf16.msra.mxu0 %v6052_v18 }
  0x3f   :  { %5654 = vmatprep.subr.bf16.mxu0 %v6118_v56 }
  0x41   :  { %423 = vmatmul.mubr.bf16.vlgmr.msra.gmra.mrb[0].mxu0 %v6053_v19 }
  0x42   :  { %430 = vmatprep.mubr.bf16.mxu0 %v6056_v20  ;;  %5655 = vmatpush3.bf16.msra.mxu0 %v6118_v56 }
  0x43   :  { %5656 = vmatprep.subr.bf16.mxu0 %v6130_v61 }
  0x46   :  { %5657 = vmatpush3.bf16.msra.mxu0 %v6130_v61 }
  0x47   :  { %5658 = vmatprep.subr.bf16.mxu0 %v6135_v62 }
  0x49   :  { %431 = vmatmul.mubr.bf16.gmra.mrb[4].mxu0 %v6058_v21 }
  0x4a   :  { %438 = vmatprep.mubr.bf16.mxu0 %v6059_v22  ;;  %5659 = vmatpush3.bf16.msra.mxu0 %v6135_v62 }
  0x4b   :  { %5660 = vmatprep.subr.bf16.mxu0 %v6144_v3 }
  0x4e   :  { %5661 = vmatpush3.bf16.msra.mxu0 %v6144_v3 }
  0x51   :  { %439 = vmatmul.mubr.bf16.gmra.mrb[8].mxu0 %v6061_v23 }
  0x52   :  { %446 = vmatprep.mubr.bf16.mxu0 %v6062_v24 }
  0x59   :  { %447 = vmatmul.mubr.bf16.gmra.mrb[12].mxu0 %v6064_v25 }
  0x5a   :  { %454 = vmatprep.mubr.bf16.mxu0 %v6065_v26  ;;  %v6149_v26 = vld [vmem:[%s7965_s3 + $0x1a0] sm:$0xff]  }
  0x5b   :  { %5662 = vmatprep.subr.bf16.mxu0 %v6149_v26 }
  0x5c   :  { %5663 = vmatpush3.bf16.msra.mxu0 %v6149_v26  ;;  %v6160_v26 = vld [vmem:[%s7965_s3 + $0x1b0] sm:$0xff]  }
  0x61   :  { %455 = vmatmul.mubr.bf16.gmra.mrb[16].mxu0 %v6067_v27 }
  0x62   :  { %462 = vmatprep.mubr.bf16.mxu0 %v6068_v28 }
  0x69   :  { %463 = vmatmul.mubr.bf16.gmra.mrb[20].mxu0 %v6070_v29 }
  0x6a   :  { %470 = vmatprep.mubr.bf16.mxu0 %v6071_v30 }
  0x71   :  { %471 = vmatmul.mubr.bf16.gmra.mrb[24].mxu0 %v6073_v31 }
  0x72   :  { %478 = vmatprep.mubr.bf16.mxu0 %v6074_v32 }
  0x79   :  { %479 = vmatmul.mubr.bf16.gmra.mrb[28].mxu0 %v6076_v33 }
  0x7a   :  { %486 = vmatprep.mubr.bf16.mxu0 %v6077_v34 }
  0x81   :  { %487 = vmatmul.mubr.bf16.gmra.mrb[32].mxu0 %v6079_v35 }
  0x82   :  { %494 = vmatprep.mubr.bf16.mxu0 %v6080_v36 }
  0x89   :  { %495 = vmatmul.mubr.bf16.gmra.mrb[36].mxu0 %v6082_v37 }
  0x8a   :  { %502 = vmatprep.mubr.bf16.mxu0 %v6085_v39 }
  0x91   :  { %503 = vmatmul.mubr.bf16.gmra.mrb[40].mxu0 %v6087_v40 }
  0x92   :  { %510 = vmatprep.mubr.bf16.mxu0 %v6092_v45  ;;  %v6102_v45 = vld [vmem:[%s7965_s3 + $0x10] sm:$0xff]  }
  0x99   :  { %511 = vmatmul.mubr.bf16.gmra.mrb[44].mxu0 %v6094_v46 }
  0x9a   :  { %518 = vmatprep.mubr.bf16.mxu0 %v6097_v49 }
  0xa1   :  { %519 = vmatmul.mubr.bf16.gmra.mrb[48].mxu0 %v6099_v50 }
  0xa2   :  { %526 = vmatprep.mubr.bf16.mxu0 %v6106_v52 }
  0xa9   :  { %527 = vmatmul.mubr.bf16.gmra.mrb[52].mxu0 %v6108_v53 }
  0xaa   :  { %534 = vmatprep.mubr.bf16.mxu0 %v6111_v54 }
  0xb1   :  { %535 = vmatmul.mubr.bf16.gmra.mrb[56].mxu0 %v6113_v55 }
  0xb2   :  { %542 = vmatprep.mubr.bf16.mxu0 %v6121_v57  ;;  %v6155_v57 = vld [vmem:[%s7965_s3 + $0x1a8] sm:$0xff]  }
  0xb3   :  { %5664 = vmatprep.subr.bf16.mxu0 %v6155_v57 }
  0xb4   :  { %5665 = vmatpush3.bf16.msra.mxu0 %v6155_v57 }
  0xb5   :  { %5666 = vmatprep.subr.bf16.mxu0 %v6160_v26 }
  0xb8   :  { %5667 = vmatpush3.bf16.msra.mxu0 %v6160_v26 }
  0xb9   :  { %543 = vmatmul.mubr.bf16.gmra.mrb[60].mxu0 %v6123_v58 }
  0xba   :  { %550 = vmatprep.mubr.bf16.mxu0 %v6126_v59 }
  0xc1   :  { %551 = vmatmul.mubr.bf16.gmra.mrb[64].mxu0 %v6128_v60  ;;  %v6104_v60 = vld [vmem:[%s7965_s3 + $0x20] sm:$0xff]  }
  0xc2   :  { %558 = vmatprep.mubr.bf16.mxu0 %v6137_v63 }
  0xc9   :  { %559 = vmatmul.mubr.bf16.gmra.mrb[68].mxu0 %v6139_v1 }
 0x114   :  { %v424_v4 = vpop.f32.mrb[0].mxu0 }
 0x115   :  { %v425_v5 = vadd.f32 %v6648_v2, %v424_v4  ;;  %v426_v6 = vpop.f32.mrb[1].mxu0 }
 0x116   :  { %v427_v7 = vpop.f32.mrb[2].mxu0 }
 0x117   :  { %v428_v8 = vadd.f32 %v6648_v2, %v427_v7  ;;  %v429_v9 = vpop.f32.mrb[3].mxu0  ;;  %v567_v10 = vmax.f32 %v425_v5, 0.0  ;;  %v6105_v5 = vld [vmem:[%s7965_s3 + $0x28] sm:$0xff]  }
 0x119   :  { %v568_v11 = vmax.f32 %v428_v8, 0.0 }
 0x11b   :  { %v603_v12 = vpack.c.bf16 %v568_v11, %v567_v10  ;;  %v6109_v11 = vld [vmem:[%s7965_s3 + $0x30] sm:$0xff]  }
 0x11c   :  { %v432_v13 = vpop.f32.mrb[4].mxu0 }
 0x11d   :  { %v433_v14 = vadd.f32 %v6648_v2, %v432_v13  ;;  %v434_v15 = vpop.f32.mrb[5].mxu0 }
 0x11e   :  { %v435_v16 = vpop.f32.mrb[6].mxu0 }
 0x11f   :  { %v436_v17 = vadd.f32 %v6648_v2, %v435_v16  ;;  %v437_v18 = vpop.f32.mrb[7].mxu0  ;;  %v569_v19 = vmax.f32 %v433_v14, 0.0 }
 0x121   :  { %v570_v20 = vmax.f32 %v436_v17, 0.0 }
 0x123   :  { %v6657_v21 = vpack.c.bf16 %v570_v20, %v569_v19  ;;  %v6110_v19 = vld [vmem:[%s7965_s3 + $0x38] sm:$0xff]  }
 0x124   :  { %v440_v22 = vpop.f32.mrb[8].mxu0 }
 0x125   :  { %v441_v23 = vadd.f32 %v6648_v2, %v440_v22  ;;  %v442_v24 = vpop.f32.mrb[9].mxu0  ;;  %v656_v35 = vrot.slane %v6657_v21, 1 }
 0x126   :  { %v443_v25 = vpop.f32.mrb[10].mxu0 }
 0x127   :  { %v444_v27 = vadd.f32 %v6648_v2, %v443_v25  ;;  %v445_v28 = vpop.f32.mrb[11].mxu0  ;;  %v571_v29 = vmax.f32 %v441_v23, 0.0 }
 0x129   :  { %v572_v30 = vmax.f32 %v444_v27, 0.0  ;;  %v6114_v27 = vld [vmem:[%s7965_s3 + $0x80] sm:$0xff]  }
 0x12b   :  { %v605_v31 = vpack.c.bf16 %v572_v30, %v571_v29 }
 0x12c   :  { %v448_v32 = vpop.f32.mrb[12].mxu0 }
 0x12d   :  { %v449_v33 = vadd.f32 %v6648_v2, %v448_v32  ;;  %v450_v34 = vpop.f32.mrb[13].mxu0  ;;  %v657_v36 = vrot.slane %v605_v31, 1  ;;  %v871_v47 = vrot.slane %v605_v31, 2 }
 0x12e   :  { %v451_v37 = vpop.f32.mrb[14].mxu0  ;;  %v6162_v34 = vld [vmem:[%s7965_s3 + $0x1b8] sm:$0xff]  }
 0x12f   :  { %v573_v38 = vmax.f32 %v449_v33, 0.0  ;;  %v452_v39 = vadd.f32 %v6648_v2, %v451_v37  ;;  %v658_v40 = vsel %vm655_vm0, %v656_v35, %v657_v36  ;;  %v453_v42 = vpop.f32.mrb[15].mxu0  ;;  %5668 = vmatprep.subr.bf16.mxu0 %v6162_v34 }
 0x130   :  { %5550 = vmatprep.mubr.bf16.mxu1 %v658_v40  ;;  %5669 = vmatpush3.bf16.msra.mxu0 %v6162_v34  ;;  %v6164_v42 = vld [vmem:[%s7965_s3 + $0x200] sm:$0xff]  }
 0x131   :  { %v574_v43 = vmax.f32 %v452_v39, 0.0  ;;  %5551 = vmatmul.mubr.bf16.vlgmr.msra.gmra.mrb[0].mxu1 %v657_v36  ;;  %v6115_v36 = vld [vmem:[%s7965_s3 + $0x88] sm:$0xff]   ;;  %5694 = vmatprep.subr.bf16.mxu0 %v6164_v42 }
 0x132   :  { %5555 = vmatpush3.bf16.msra.mxu1 %v6603_v51  ;;  %5570 = vmatprep.mubr.bf16.mxu1 %v603_v12  ;;  %v6103_v51 = vld [vmem:[%s7965_s3 + $0x18] sm:$0xff]  }
 0x133   :  { %v6672_v44 = vpack.c.bf16 %v574_v43, %v573_v38  ;;  %5556 = vmatprep.subr.bf16.mxu1 %v6101_v41  ;;  %v6116_v43 = vld [vmem:[%s7965_s3 + $0x90] sm:$0xff]  }
 0x134   :  { %v456_v46 = vpop.f32.mrb[16].mxu0 }
 0x135   :  { %v872_v48 = vrot.slane %v6672_v44, 2  ;;  %v457_v49 = vadd.f32 %v6648_v2, %v456_v46  ;;  %v458_v50 = vpop.f32.mrb[17].mxu0  ;;  %v993_v59 = vrot.slane %v6672_v44, 3  ;;  %v6133_v44 = vld [vmem:[%s7965_s3 + $0xd8] sm:$0xff]  }
 0x136   :  { %5557 = vmatpush3.bf16.msra.mxu1 %v6101_v41  ;;  %v459_v52 = vpop.f32.mrb[18].mxu0  ;;  %v6166_v50 = vld [vmem:[%s7965_s3 + $0x208] sm:$0xff]  }
 0x137   :  { %5558 = vmatprep.subr.bf16.mxu1 %v6102_v45  ;;  %v6685_v53 = vsel %vm870_vm1, %v871_v47, %v872_v48  ;;  %v575_v54 = vmax.f32 %v457_v49, 0.0  ;;  %v460_v55 = vadd.f32 %v6648_v2, %v459_v52  ;;  %v461_v56 = vpop.f32.mrb[19].mxu0 }
 0x139   :  { %v576_v58 = vmax.f32 %v460_v55, 0.0 }
 0x13a   :  { %5559 = vmatpush3.bf16.msra.mxu1 %v6102_v45 }
 0x13b   :  { %5560 = vmatprep.subr.bf16.mxu1 %v6103_v51  ;;  %v6695_v61 = vpack.c.bf16 %v576_v58, %v575_v54  ;;  %v6168_v54 = vld [vmem:[%s7965_s3 + $0x210] sm:$0xff]  }
 0x13c   :  { %v464_v62 = vpop.f32.mrb[20].mxu0 }
 0x13d   :  { %v994_v63 = vrot.slane %v6695_v61, 3  ;;  %v465_v1 = vadd.f32 %v6648_v2, %v464_v62  ;;  %v466_v3 = vpop.f32.mrb[21].mxu0  ;;  %v1115_v12 = vrot.slane %v6695_v61, 4  ;;  %v6146_v61 = vld [vmem:[%s7965_s3 + $0x118] sm:$0xff]  }
 0x13e   :  { %5561 = vmatpush3.bf16.msra.mxu1 %v6103_v51  ;;  %v467_v4 = vpop.f32.mrb[22].mxu0  ;;  %v6119_v51 = vld [vmem:[%s7965_s3 + $0xa0] sm:$0xff]  }
 0x13f   :  { %5562 = vmatprep.subr.bf16.mxu1 %v6104_v60  ;;  %v6705_v6 = vsel %vm992_vm2, %v993_v59, %v994_v63  ;;  %v577_v7 = vmax.f32 %v465_v1, 0.0  ;;  %v468_v8 = vadd.f32 %v6648_v2, %v467_v4  ;;  %v469_v9 = vpop.f32.mrb[23].mxu0  ;;  %v6170_v1 = vld [vmem:[%s7965_s3 + $0x218] sm:$0xff]  }
 0x141   :  { %v578_v10 = vmax.f32 %v468_v8, 0.0  ;;  %v6172_v8 = vld [vmem:[%s7965_s3 + $0x220] sm:$0xff]  }
 0x142   :  { %5563 = vmatpush3.bf16.msra.mxu1 %v6104_v60  ;;  %v6120_v60 = vld [vmem:[%s7965_s3 + $0xa8] sm:$0xff]  }
 0x143   :  { %5564 = vmatprep.subr.bf16.mxu1 %v6105_v5  ;;  %v6712_v13 = vpack.c.bf16 %v578_v10, %v577_v7 }
 0x144   :  { %v472_v14 = vpop.f32.mrb[24].mxu0 }
 0x145   :  { %v1116_v15 = vrot.slane %v6712_v13, 4  ;;  %v473_v16 = vadd.f32 %v6648_v2, %v472_v14  ;;  %v474_v17 = vpop.f32.mrb[25].mxu0  ;;  %v1237_v28 = vrot.slane %v6712_v13, 5  ;;  %v6156_v13 = vld [vmem:[%s7965_s3 + $0x158] sm:$0xff]  }
 0x146   :  { %5565 = vmatpush3.bf16.msra.mxu1 %v6105_v5  ;;  %v475_v18 = vpop.f32.mrb[26].mxu0  ;;  %v6124_v5 = vld [vmem:[%s7965_s3 + $0xb0] sm:$0xff]  }
 0x147   :  { %5566 = vmatprep.subr.bf16.mxu1 %v6109_v11  ;;  %v6722_v20 = vsel %vm1114_vm3, %v1115_v12, %v1116_v15  ;;  %v579_v22 = vmax.f32 %v473_v16, 0.0  ;;  %v476_v23 = vadd.f32 %v6648_v2, %v475_v18  ;;  %v477_v24 = vpop.f32.mrb[27].mxu0  ;;  %v6125_v16 = vld [vmem:[%s7965_s3 + $0xb8] sm:$0xff]   ;;  %v6174_v18 = vld [vmem:[%s7965_s3 + $0x228] sm:$0xff]  }
 0x149   :  { %v580_v25 = vmax.f32 %v476_v23, 0.0 }
 0x14a   :  { %5567 = vmatpush3.bf16.msra.mxu1 %v6109_v11 }
 0x14b   :  { %5568 = vmatprep.subr.bf16.mxu1 %v6110_v19  ;;  %v6732_v29 = vpack.c.bf16 %v580_v25, %v579_v22 }
 0x14c   :  { %v480_v30 = vpop.f32.mrb[28].mxu0 }
 0x14d   :  { %v1238_v31 = vrot.slane %v6732_v29, 5  ;;  %v481_v32 = vadd.f32 %v6648_v2, %v480_v30  ;;  %v482_v33 = vpop.f32.mrb[29].mxu0  ;;  %v1359_v45 = vrot.slane %v6732_v29, 6  ;;  %v6176_v30 = vld [vmem:[%s7965_s3 + $0x230] sm:$0xff]  }
 0x14e   :  { %5569 = vmatpush3.bf16.msra.mxu1 %v6110_v19  ;;  %v483_v35 = vpop.f32.mrb[30].mxu0 }
 0x14f   :  { %5574 = vmatprep.subr.bf16.mxu1 %v6114_v27  ;;  %v6745_v37 = vsel %vm1236_vm4, %v1237_v28, %v1238_v31  ;;  %v581_v38 = vmax.f32 %v481_v32, 0.0  ;;  %v484_v39 = vadd.f32 %v6648_v2, %v483_v35  ;;  %v485_v40 = vpop.f32.mrb[31].mxu0 }
 0x150   :  { %v6178_v40 = vld [vmem:[%s7965_s3 + $0x238] sm:$0xff]  }
 0x151   :  { %5571 = vmatmul.mubr.bf16.vlgmr.msra.gmra.mrb[4].mxu1 %v6657_v21  ;;  %v582_v41 = vmax.f32 %v484_v39, 0.0  ;;  %v6117_v21 = vld [vmem:[%s7965_s3 + $0x98] sm:$0xff]  }
 0x152   :  { %5575 = vmatpush3.bf16.msra.mxu1 %v6114_v27  ;;  %5590 = vmatprep.mubr.bf16.mxu1 %v6685_v53  ;;  %v6129_v27 = vld [vmem:[%s7965_s3 + $0xc0] sm:$0xff]  }
 0x153   :  { %5576 = vmatprep.subr.bf16.mxu1 %v6115_v36  ;;  %v610_v46 = vpack.c.bf16 %v582_v41, %v581_v38  ;;  %v6131_v38 = vld [vmem:[%s7965_s3 + $0xc8] sm:$0xff]   ;;  %v6132_v41 = vld [vmem:[%s7965_s3 + $0xd0] sm:$0xff]  }
 0x154   :  { %v488_v52 = vpop.f32.mrb[32].mxu0 }
 0x155   :  { %v1360_v47 = vrot.slane %v610_v46, 6  ;;  %v489_v53 = vadd.f32 %v6648_v2, %v488_v52  ;;  %v490_v55 = vpop.f32.mrb[33].mxu0  ;;  %v1481_v4 = vrot.slane %v610_v46, 7 }
 0x156   :  { %5577 = vmatpush3.bf16.msra.mxu1 %v6115_v36  ;;  %v491_v56 = vpop.f32.mrb[34].mxu0 }
 0x157   :  { %5578 = vmatprep.subr.bf16.mxu1 %v6116_v43  ;;  %v1361_v49 = vsel %vm1358_vm5, %v1359_v45, %v1360_v47  ;;  %v583_v57 = vmax.f32 %v489_v53, 0.0  ;;  %v492_v58 = vadd.f32 %v6648_v2, %v491_v56  ;;  %v493_v59 = vpop.f32.mrb[35].mxu0 }
 0x158   :  { %5670 = vmatprep.mubr.bf16.mxu0 %v1361_v49 }
 0x159   :  { %5671 = vmatmul.mubr.bf16.vlgmr.msra.gmra.mrb[72].mxu0 %v1360_v47  ;;  %v584_v62 = vmax.f32 %v492_v58, 0.0  ;;  %v6184_v47 = vld [vmem:[%s7965_s3 + $0x290] sm:$0xff]  }
 0x15a   :  { %5579 = vmatpush3.bf16.msra.mxu1 %v6116_v43  ;;  %5695 = vmatpush3.bf16.msra.mxu0 %v6164_v42  ;;  %v6180_v42 = vld [vmem:[%s7965_s3 + $0x280] sm:$0xff]   ;;  %v6140_v58 = vld [vmem:[%s7965_s3 + $0xf0] sm:$0xff]  }
 0x15b   :  { %5580 = vmatprep.subr.bf16.mxu1 %v6117_v21  ;;  %5696 = vmatprep.subr.bf16.mxu0 %v6166_v50  ;;  %v6778_v3 = vpack.c.bf16 %v584_v62, %v583_v57  ;;  %v6134_v43 = vld [vmem:[%s7965_s3 + $0xe0] sm:$0xff]  }
 0x15c   :  { %v496_v9 = vpop.f32.mrb[36].mxu0 }
 0x15d   :  { %v1482_v7 = vrot.slane %v6778_v3, 7  ;;  %v497_v10 = vadd.f32 %v6648_v2, %v496_v9  ;;  %v498_v11 = vpop.f32.mrb[37].mxu0  ;;  %v6187_v3 = vld [vmem:[%s7965_s3 + $0x260] sm:$0xff]  }
 0x15e   :  { %5581 = vmatpush3.bf16.msra.mxu1 %v6117_v21  ;;  %5697 = vmatpush3.bf16.msra.mxu0 %v6166_v50  ;;  %v499_v14 = vpop.f32.mrb[38].mxu0  ;;  %v6141_v11 = vld [vmem:[%s7965_s3 + $0xf8] sm:$0xff]  }
 0x15f   :  { %5582 = vmatprep.subr.bf16.mxu1 %v6119_v51  ;;  %5698 = vmatprep.subr.bf16.mxu0 %v6168_v54  ;;  %v6791_v12 = vsel %vm1480_vm6, %v1481_v4, %v1482_v7  ;;  %v585_v17 = vmax.f32 %v497_v10, 0.0  ;;  %v500_v19 = vadd.f32 %v6648_v2, %v499_v14  ;;  %v501_v22 = vpop.f32.mrb[39].mxu0 }
 0x161   :  { %v586_v23 = vmax.f32 %v500_v19, 0.0  ;;  %v6142_v19 = vld [vmem:[%s7965_s3 + $0x100] sm:$0xff]  }
 0x162   :  { %5583 = vmatpush3.bf16.msra.mxu1 %v6119_v51  ;;  %5699 = vmatpush3.bf16.msra.mxu0 %v6168_v54  ;;  %v6136_v51 = vld [vmem:[%s7965_s3 + $0xe8] sm:$0xff]   ;;  %v6186_v54 = vld [vmem:[%s7965_s3 + $0x298] sm:$0xff]  }
 0x163   :  { %5584 = vmatprep.subr.bf16.mxu1 %v6120_v60  ;;  %5700 = vmatprep.subr.bf16.mxu0 %v6170_v1  ;;  %v612_v28 = vpack.c.bf16 %v586_v23, %v585_v17  ;;  %v6192_v23 = vld [vmem:[%s7965_s3 + $0x2b0] sm:$0xff]  }
 0x164   :  { %v504_v24 = vpop.f32.mrb[40].mxu0 }
 0x165   :  { %v505_v25 = vadd.f32 %v6648_v2, %v504_v24  ;;  %v506_v26 = vpop.f32.mrb[41].mxu0  ;;  %5710 = vmatprep.mubr.bf16.mxu0 %v612_v28  ;;  %v6196_v28 = vld [vmem:[%s7965_s3 + $0x300] sm:$0xff]  }
 0x166   :  { %5585 = vmatpush3.bf16.msra.mxu1 %v6120_v60  ;;  %5701 = vmatpush3.bf16.msra.mxu0 %v6170_v1  ;;  %v507_v32 = vpop.f32.mrb[42].mxu0  ;;  %v6188_v1 = vld [vmem:[%s7965_s3 + $0x2a0] sm:$0xff]   ;;  %v6194_v26 = vld [vmem:[%s7965_s3 + $0x2b8] sm:$0xff]  }
 0x167   :  { %5586 = vmatprep.subr.bf16.mxu1 %v6124_v5  ;;  %5702 = vmatprep.subr.bf16.mxu0 %v6172_v8  ;;  %v587_v33 = vmax.f32 %v505_v25, 0.0  ;;  %v508_v34 = vadd.f32 %v6648_v2, %v507_v32  ;;  %v509_v35 = vpop.f32.mrb[43].mxu0  ;;  %v6143_v25 = vld [vmem:[%s7965_s3 + $0x108] sm:$0xff]  }
 0x169   :  { %v588_v36 = vmax.f32 %v508_v34, 0.0 }
 0x16a   :  { %5587 = vmatpush3.bf16.msra.mxu1 %v6124_v5  ;;  %5703 = vmatpush3.bf16.msra.mxu0 %v6172_v8 }
 0x16b   :  { %5588 = vmatprep.subr.bf16.mxu1 %v6125_v16  ;;  %5704 = vmatprep.subr.bf16.mxu0 %v6174_v18  ;;  %v613_v39 = vpack.c.bf16 %v588_v36, %v587_v33  ;;  %v6200_v33 = vld [vmem:[%s7965_s3 + $0x310] sm:$0xff]  }
 0x16d   :  { %v1718_v56 = vrot.slane %v613_v39, 1 }
 0x16e   :  { %5589 = vmatpush3.bf16.msra.mxu1 %v6125_v16  ;;  %5705 = vmatpush3.bf16.msra.mxu0 %v6174_v18  ;;  %v6190_v16 = vld [vmem:[%s7965_s3 + $0x2a8] sm:$0xff]  }
 0x16f   :  { %5594 = vmatprep.subr.bf16.mxu1 %v6129_v27  ;;  %5706 = vmatprep.subr.bf16.mxu0 %v6176_v30 }
 0x171   :  { %5591 = vmatmul.mubr.bf16.vlgmr.msra.gmra.mrb[8].mxu1 %v872_v48  ;;  %v6182_v48 = vld [vmem:[%s7965_s3 + $0x288] sm:$0xff]  }
 0x172   :  { %5595 = vmatpush3.bf16.msra.mxu1 %v6129_v27  ;;  %5610 = vmatprep.mubr.bf16.mxu1 %v6705_v6  ;;  %v512_v6 = vpop.f32.mrb[44].mxu0  ;;  %v6145_v27 = vld [vmem:[%s7965_s3 + $0x110] sm:$0xff]  }
 0x173   :  { %5596 = vmatprep.subr.bf16.mxu1 %v6131_v38  ;;  %5707 = vmatpush3.bf16.msra.mxu0 %v6176_v30  ;;  %v513_v45 = vadd.f32 %v6648_v2, %v512_v6  ;;  %v514_v46 = vpop.f32.mrb[45].mxu0  ;;  %v6150_v6 = vld [vmem:[%s7965_s3 + $0x130] sm:$0xff]  }
 0x174   :  { %5708 = vmatprep.subr.bf16.mxu0 %v6178_v40  ;;  %v515_v21 = vpop.f32.mrb[46].mxu0 }
 0x175   :  { %v589_v49 = vmax.f32 %v513_v45, 0.0  ;;  %v516_v50 = vadd.f32 %v6648_v2, %v515_v21  ;;  %v517_v52 = vpop.f32.mrb[47].mxu0 }
 0x176   :  { %5597 = vmatpush3.bf16.msra.mxu1 %v6131_v38  ;;  %v520_v57 = vpop.f32.mrb[48].mxu0 }
 0x177   :  { %5598 = vmatprep.subr.bf16.mxu1 %v6132_v41  ;;  %5709 = vmatpush3.bf16.msra.mxu0 %v6178_v40  ;;  %v590_v53 = vmax.f32 %v516_v50, 0.0  ;;  %v521_v60 = vadd.f32 %v6648_v2, %v520_v57  ;;  %v522_v62 = vpop.f32.mrb[49].mxu0  ;;  %v6148_v40 = vld [vmem:[%s7965_s3 + $0x128] sm:$0xff]  }
 0x178   :  { %5734 = vmatprep.subr.bf16.mxu0 %v6180_v42  ;;  %v523_v4 = vpop.f32.mrb[50].mxu0  ;;  %v6206_v57 = vld [vmem:[%s7965_s3 + $0x328] sm:$0xff]   ;;  %v6152_v62 = vld [vmem:[%s7965_s3 + $0x140] sm:$0xff]  }
 0x179   :  { %v6843_v55 = vpack.c.bf16 %v590_v53, %v589_v49  ;;  %v591_v5 = vmax.f32 %v521_v60, 0.0  ;;  %v524_v8 = vadd.f32 %v6648_v2, %v523_v4  ;;  %v525_v9 = vpop.f32.mrb[51].mxu0  ;;  %v6208_v4 = vld [vmem:[%s7965_s3 + $0x330] sm:$0xff]  }
 0x17a   :  { %5599 = vmatpush3.bf16.msra.mxu1 %v6132_v41  ;;  %5711 = vmatmul.mubr.bf16.vlgmr.msra.gmra.mrb[76].mxu0 %v613_v39  ;;  %v6210_v9 = vld [vmem:[%s7965_s3 + $0x338] sm:$0xff]  }
 0x17b   :  { %5600 = vmatprep.subr.bf16.mxu1 %v6133_v44  ;;  %5735 = vmatpush3.bf16.msra.mxu0 %v6180_v42  ;;  %v1719_v59 = vrot.slane %v6843_v55, 1  ;;  %v592_v14 = vmax.f32 %v524_v8, 0.0  ;;  %v1839_v18 = vrot.slane %v6843_v55, 2  ;;  %v6202_v42 = vld [vmem:[%s7965_s3 + $0x318] sm:$0xff]   ;;  %v6153_v8 = vld [vmem:[%s7965_s3 + $0x148] sm:$0xff]   ;;  %v6203_v55 = vld [vmem:[%s7965_s3 + $0x2e0] sm:$0xff]  }
 0x17c   :  { %5736 = vmatprep.subr.bf16.mxu0 %v6182_v48  ;;  %v528_v30 = vpop.f32.mrb[52].mxu0 }
 0x17d   :  { %v6857_v10 = vsel %vm655_vm0, %v1718_v56, %v1719_v59  ;;  %v6865_v17 = vpack.c.bf16 %v592_v14, %v591_v5  ;;  %v529_v32 = vadd.f32 %v6648_v2, %v528_v30  ;;  %v530_v34 = vpop.f32.mrb[53].mxu0  ;;  %v6212_v14 = vld [vmem:[%s7965_s3 + $0x380] sm:$0xff]  }
 0x17e   :  { %5601 = vmatpush3.bf16.msra.mxu1 %v6133_v44  ;;  %v531_v35 = vpop.f32.mrb[54].mxu0  ;;  %v6220_v34 = vld [vmem:[%s7965_s3 + $0x3a0] sm:$0xff]  }
 0x17f   :  { %5602 = vmatprep.subr.bf16.mxu1 %v6134_v43  ;;  %5737 = vmatpush3.bf16.msra.mxu0 %v6182_v48  ;;  %v1840_v22 = vrot.slane %v6865_v17, 2  ;;  %v593_v36 = vmax.f32 %v529_v32, 0.0  ;;  %v532_v38 = vadd.f32 %v6648_v2, %v531_v35  ;;  %v533_v39 = vpop.f32.mrb[55].mxu0  ;;  %v1960_v44 = vrot.slane %v6865_v17, 3 }
 0x180   :  { %5738 = vmatprep.subr.bf16.mxu0 %v6184_v47 }
 0x181   :  { %v1841_v24 = vsel %vm870_vm1, %v1839_v18, %v1840_v22  ;;  %v594_v41 = vmax.f32 %v532_v38, 0.0  ;;  %v6216_v18 = vld [vmem:[%s7965_s3 + $0x390] sm:$0xff]  }
 0x182   :  { %5603 = vmatpush3.bf16.msra.mxu1 %v6134_v43  ;;  %5750 = vmatprep.mubr.bf16.mxu0 %v1841_v24 }
 0x183   :  { %5604 = vmatprep.subr.bf16.mxu1 %v6136_v51  ;;  %5739 = vmatpush3.bf16.msra.mxu0 %v6184_v47  ;;  %v6912_v48 = vpack.c.bf16 %v594_v41, %v593_v36  ;;  %v6204_v47 = vld [vmem:[%s7965_s3 + $0x320] sm:$0xff]  }
 0x184   :  { %5740 = vmatprep.subr.bf16.mxu0 %v6186_v54  ;;  %v536_v43 = vpop.f32.mrb[56].mxu0 }
 0x185   :  { %v1961_v45 = vrot.slane %v6912_v48, 3  ;;  %v537_v46 = vadd.f32 %v6648_v2, %v536_v43  ;;  %v538_v21 = vpop.f32.mrb[57].mxu0 }
 0x186   :  { %5605 = vmatpush3.bf16.msra.mxu1 %v6136_v51  ;;  %v539_v49 = vpop.f32.mrb[58].mxu0 }
 0x187   :  { %5606 = vmatprep.subr.bf16.mxu1 %v6140_v58  ;;  %5741 = vmatpush3.bf16.msra.mxu0 %v6186_v54  ;;  %v595_v50 = vmax.f32 %v537_v46, 0.0  ;;  %v540_v52 = vadd.f32 %v6648_v2, %v539_v49  ;;  %v6926_v51 = vsel %vm992_vm2, %v1960_v44, %v1961_v45  ;;  %v541_v53 = vpop.f32.mrb[59].mxu0  ;;  %v6151_v54 = vld [vmem:[%s7965_s3 + $0x138] sm:$0xff]   ;;  %v6224_v49 = vld [vmem:[%s7965_s3 + $0x3b0] sm:$0xff]  }
 0x188   :  { %5742 = vmatprep.subr.bf16.mxu0 %v6188_v1  ;;  %v6226_v53 = vld [vmem:[%s7965_s3 + $0x3b8] sm:$0xff]  }
 0x189   :  { %v596_v56 = vmax.f32 %v540_v52, 0.0  ;;  %v6165_v52 = vld [vmem:[%s7965_s3 + $0x1c8] sm:$0xff]  }
 0x18a   :  { %5607 = vmatpush3.bf16.msra.mxu1 %v6140_v58  ;;  %v2081_v58 = vrot.slane %v6912_v48, 4  ;;  %v6219_v48 = vld [vmem:[%s7965_s3 + $0x360] sm:$0xff]  }
 0x18b   :  { %5608 = vmatprep.subr.bf16.mxu1 %v6141_v11  ;;  %5743 = vmatpush3.bf16.msra.mxu0 %v6188_v1  ;;  %v6935_v60 = vpack.c.bf16 %v596_v56, %v595_v50  ;;  %v6169_v56 = vld [vmem:[%s7965_s3 + $0x1d8] sm:$0xff]  }
 0x18c   :  { %5744 = vmatprep.subr.bf16.mxu0 %v6190_v16 }
 0x18d   :  { %v2082_v1 = vrot.slane %v6935_v60, 4 }
 0x18e   :  { %5609 = vmatpush3.bf16.msra.mxu1 %v6141_v11  ;;  %v6154_v11 = vld [vmem:[%s7965_s3 + $0x150] sm:$0xff]  }
 0x18f   :  { %5614 = vmatprep.subr.bf16.mxu1 %v6142_v19  ;;  %5745 = vmatpush3.bf16.msra.mxu0 %v6190_v16  ;;  %v2083_v5 = vsel %vm1114_vm3, %v2081_v58, %v2082_v1  ;;  %v544_v16 = vpop.f32.mrb[60].mxu0 }
 0x190   :  { %5746 = vmatprep.subr.bf16.mxu0 %v6192_v23  ;;  %v545_v17 = vadd.f32 %v6648_v2, %v544_v16  ;;  %v6183_v16 = vld [vmem:[%s7965_s3 + $0x250] sm:$0xff]  }
 0x191   :  { %5611 = vmatmul.mubr.bf16.vlgmr.msra.gmra.mrb[12].mxu1 %v994_v63  ;;  %v6198_v63 = vld [vmem:[%s7965_s3 + $0x308] sm:$0xff]  }
 0x192   :  { %5615 = vmatpush3.bf16.msra.mxu1 %v6142_v19  ;;  %5630 = vmatprep.mubr.bf16.mxu1 %v6722_v20  ;;  %v6147_v20 = vld [vmem:[%s7965_s3 + $0x120] sm:$0xff]   ;;  %v546_v19 = vpop.f32.mrb[61].mxu0 }
 0x193   :  { %5616 = vmatprep.subr.bf16.mxu1 %v6143_v25  ;;  %5747 = vmatpush3.bf16.msra.mxu0 %v6192_v23  ;;  %v597_v23 = vmax.f32 %v545_v17, 0.0  ;;  %v6185_v17 = vld [vmem:[%s7965_s3 + $0x258] sm:$0xff]  }
 0x194   :  { %5748 = vmatprep.subr.bf16.mxu0 %v6194_v26 }
 0x196   :  { %5617 = vmatpush3.bf16.msra.mxu1 %v6143_v25 }
 0x197   :  { %5618 = vmatprep.subr.bf16.mxu1 %v6145_v27  ;;  %5749 = vmatpush3.bf16.msra.mxu0 %v6194_v26  ;;  %v6158_v26 = vld [vmem:[%s7965_s3 + $0x168] sm:$0xff]  }
 0x198   :  { %5774 = vmatprep.subr.bf16.mxu0 %v6196_v28 }
 0x19a   :  { %5619 = vmatpush3.bf16.msra.mxu1 %v6145_v27  ;;  %5751 = vmatmul.mubr.bf16.vlgmr.msra.gmra.mrb[80].mxu0 %v1840_v22  ;;  %v547_v22 = vpop.f32.mrb[62].mxu0 }
 0x19b   :  { %5620 = vmatprep.subr.bf16.mxu1 %v6146_v61  ;;  %5775 = vmatpush3.bf16.msra.mxu0 %v6196_v28  ;;  %v548_v24 = vadd.f32 %v6648_v2, %v547_v22  ;;  %v549_v25 = vpop.f32.mrb[63].mxu0  ;;  %v6218_v28 = vld [vmem:[%s7965_s3 + $0x398] sm:$0xff]  }
 0x19c   :  { %5776 = vmatprep.subr.bf16.mxu0 %v6198_v63  ;;  %5790 = vmatprep.mubr.bf16.mxu0 %v2083_v5  ;;  %v552_v30 = vpop.f32.mrb[64].mxu0  ;;  %v6195_v25 = vld [vmem:[%s7965_s3 + $0x2c0] sm:$0xff]  }
 0x19d   :  { %v598_v27 = vmax.f32 %v548_v24, 0.0  ;;  %v554_v35 = vpop.f32.mrb[65].mxu0  ;;  %v6193_v24 = vld [vmem:[%s7965_s3 + $0x278] sm:$0xff]  }
 0x19e   :  { %5621 = vmatpush3.bf16.msra.mxu1 %v6146_v61  ;;  %v2202_v61 = vrot.slane %v6935_v60, 5  ;;  %v555_v36 = vpop.f32.mrb[66].mxu0 }
 0x19f   :  { %5622 = vmatprep.subr.bf16.mxu1 %v6147_v20  ;;  %5777 = vmatpush3.bf16.msra.mxu0 %v6198_v63  ;;  %v6981_v63 = vpack.c.bf16 %v598_v27, %v597_v23  ;;  %v556_v39 = vadd.f32 %v6648_v2, %v555_v36  ;;  %v557_v41 = vpop.f32.mrb[67].mxu0  ;;  %v6199_v27 = vld [vmem:[%s7965_s3 + $0x2d0] sm:$0xff]   ;;  %v6209_v36 = vld [vmem:[%s7965_s3 + $0x2f8] sm:$0xff]  }
 0x1a0   :  { %5778 = vmatprep.subr.bf16.mxu0 %v6200_v33  ;;  %v560_v29 = vpop.f32.mrb[68].mxu0 }
 0x1a1   :  { %v2203_v32 = vrot.slane %v6981_v63, 5  ;;  %v600_v44 = vmax.f32 %v556_v39, 0.0  ;;  %v2323_v43 = vrot.slane %v6981_v63, 6  ;;  %v6211_v39 = vld [vmem:[%s7965_s3 + $0x340] sm:$0xff]  }
 0x1a2   :  { %5623 = vmatpush3.bf16.msra.mxu1 %v6147_v20  ;;  %v6159_v20 = vld [vmem:[%s7965_s3 + $0x170] sm:$0xff]   ;;  %v6231_v63 = vld [vmem:[%s7965_s3 + $0x3e0] sm:$0xff]  }
 0x1a3   :  { %5624 = vmatprep.subr.bf16.mxu1 %v6148_v40  ;;  %5779 = vmatpush3.bf16.msra.mxu0 %v6200_v33  ;;  %v553_v33 = vadd.f32 %v6648_v2, %v552_v30 }
 0x1a4   :  { %5780 = vmatprep.subr.bf16.mxu0 %v6202_v42 }
 0x1a5   :  { %v599_v38 = vmax.f32 %v553_v33, 0.0 }
 0x1a6   :  { %5625 = vmatpush3.bf16.msra.mxu1 %v6148_v40  ;;  %v6995_v40 = vsel %vm1236_vm4, %v2202_v61, %v2203_v32 }
 0x1a7   :  { %5626 = vmatprep.subr.bf16.mxu1 %v6150_v6  ;;  %5781 = vmatpush3.bf16.msra.mxu0 %v6202_v42  ;;  %v6161_v42 = vld [vmem:[%s7965_s3 + $0x178] sm:$0xff]   ;;  %v619_v46 = vpack.c.bf16 %v600_v44, %v599_v38 }
 0x1a8   :  { %5782 = vmatprep.subr.bf16.mxu0 %v6204_v47 }
 0x1a9   :  { %v2324_v21 = vrot.slane %v619_v46, 6 }
 0x1aa   :  { %5627 = vmatpush3.bf16.msra.mxu1 %v6150_v6  ;;  %v6222_v6 = vld [vmem:[%s7965_s3 + $0x3a8] sm:$0xff]  }
 0x1ab   :  { %5628 = vmatprep.subr.bf16.mxu1 %v6151_v54  ;;  %5783 = vmatpush3.bf16.msra.mxu0 %v6204_v47  ;;  %v6163_v47 = vld [vmem:[%s7965_s3 + $0x1c0] sm:$0xff]   ;;  %v2325_v50 = vsel %vm1358_vm5, %v2323_v43, %v2324_v21 }
 0x1ac   :  { %5784 = vmatprep.subr.bf16.mxu0 %v6206_v57 }
 0x1ae   :  { %5629 = vmatpush3.bf16.msra.mxu1 %v6151_v54  ;;  %v6167_v54 = vld [vmem:[%s7965_s3 + $0x1d0] sm:$0xff]  }
 0x1af   :  { %5634 = vmatprep.subr.bf16.mxu1 %v6152_v62  ;;  %5785 = vmatpush3.bf16.msra.mxu0 %v6206_v57  ;;  %v562_v57 = vpop.f32.mrb[69].mxu0 }
 0x1b0   :  { %5786 = vmatprep.subr.bf16.mxu0 %v6208_v4  ;;  %v563_v58 = vpop.f32.mrb[70].mxu0 }
 0x1b1   :  { %5631 = vmatmul.mubr.bf16.vlgmr.msra.gmra.mrb[16].mxu1 %v1116_v15  ;;  %v6214_v15 = vld [vmem:[%s7965_s3 + $0x388] sm:$0xff]  }
 0x1b2   :  { %5635 = vmatpush3.bf16.msra.mxu1 %v6152_v62  ;;  %5650 = vmatprep.mubr.bf16.mxu1 %v6745_v37  ;;  %v6157_v37 = vld [vmem:[%s7965_s3 + $0x160] sm:$0xff]   ;;  %v564_v62 = vadd.f32 %v6648_v2, %v563_v58  ;;  %v6228_v58 = vld [vmem:[%s7965_s3 + $0x3c8] sm:$0xff]  }
 0x1b3   :  { %5636 = vmatprep.subr.bf16.mxu1 %v6153_v8  ;;  %5787 = vmatpush3.bf16.msra.mxu0 %v6208_v4  ;;  %v6173_v4 = vld [vmem:[%s7965_s3 + $0x1e8] sm:$0xff]  }
 0x1b4   :  { %5788 = vmatprep.subr.bf16.mxu0 %v6210_v9  ;;  %v602_v5 = vmax.f32 %v564_v62, 0.0 }
 0x1b6   :  { %5637 = vmatpush3.bf16.msra.mxu1 %v6153_v8  ;;  %v2444_v8 = vrot.slane %v619_v46, 7  ;;  %v6215_v46 = vld [vmem:[%s7965_s3 + $0x350] sm:$0xff]  }
 0x1b7   :  { %5638 = vmatprep.subr.bf16.mxu1 %v6154_v11  ;;  %5789 = vmatpush3.bf16.msra.mxu0 %v6210_v9 }
 0x1b8   :  { %5814 = vmatprep.subr.bf16.mxu0 %v6212_v14 }
 0x1ba   :  { %5639 = vmatpush3.bf16.msra.mxu1 %v6154_v11  ;;  %5791 = vmatmul.mubr.bf16.vlgmr.msra.gmra.mrb[84].mxu0 %v2082_v1  ;;  %v565_v1 = vpop.f32.mrb[71].mxu0  ;;  %v6175_v11 = vld [vmem:[%s7965_s3 + $0x1f0] sm:$0xff]  }
 0x1bb   :  { %5640 = vmatprep.subr.bf16.mxu1 %v6156_v13  ;;  %5815 = vmatpush3.bf16.msra.mxu0 %v6212_v14  ;;  %v6229_v1 = vld [vmem:[%s7965_s3 + $0x3d0] sm:$0xff]  }
 0x1bc   :  { %5816 = vmatprep.subr.bf16.mxu0 %v6214_v15  ;;  %5830 = vmatprep.mubr.bf16.mxu0 %v2325_v50 }
 0x1be   :  { %5641 = vmatpush3.bf16.msra.mxu1 %v6156_v13  ;;  %v6177_v13 = vld [vmem:[%s7965_s3 + $0x1f8] sm:$0xff]  }
 0x1bf   :  { %5642 = vmatprep.subr.bf16.mxu1 %v6157_v37  ;;  %5817 = vmatpush3.bf16.msra.mxu0 %v6214_v15  ;;  %v6179_v15 = vld [vmem:[%s7965_s3 + $0x240] sm:$0xff]  }
 0x1c0   :  { %5818 = vmatprep.subr.bf16.mxu0 %v6216_v18 }
 0x1c2   :  { %5643 = vmatpush3.bf16.msra.mxu1 %v6157_v37  ;;  %v6181_v37 = vld [vmem:[%s7965_s3 + $0x248] sm:$0xff]  }
 0x1c3   :  { %5644 = vmatprep.subr.bf16.mxu1 %v6158_v26  ;;  %5819 = vmatpush3.bf16.msra.mxu0 %v6216_v18 }
 0x1c4   :  { %5820 = vmatprep.subr.bf16.mxu0 %v6218_v28 }
 0x1c6   :  { %5645 = vmatpush3.bf16.msra.mxu1 %v6158_v26  ;;  %v6197_v26 = vld [vmem:[%s7965_s3 + $0x2c8] sm:$0xff]  }
 0x1c7   :  { %5646 = vmatprep.subr.bf16.mxu1 %v6159_v20  ;;  %5821 = vmatpush3.bf16.msra.mxu0 %v6218_v28  ;;  %v6201_v28 = vld [vmem:[%s7965_s3 + $0x2d8] sm:$0xff]  }
 0x1c8   :  { %5822 = vmatprep.subr.bf16.mxu0 %v6220_v34 }
 0x1ca   :  { %5647 = vmatpush3.bf16.msra.mxu1 %v6159_v20 }
 0x1cb   :  { %5648 = vmatprep.subr.bf16.mxu1 %v6161_v42  ;;  %5823 = vmatpush3.bf16.msra.mxu0 %v6220_v34 }
 0x1cc   :  { %5824 = vmatprep.subr.bf16.mxu0 %v6222_v6 }
 0x1ce   :  { %5649 = vmatpush3.bf16.msra.mxu1 %v6161_v42 }
 0x1cf   :  { %5674 = vmatprep.subr.bf16.mxu1 %v6163_v47  ;;  %5825 = vmatpush3.bf16.msra.mxu0 %v6222_v6  ;;  %v6213_v6 = vld [vmem:[%s7965_s3 + $0x348] sm:$0xff]  }
 0x1d0   :  { %5826 = vmatprep.subr.bf16.mxu0 %v6224_v49 }
 0x1d1   :  { %5651 = vmatmul.mubr.bf16.vlgmr.msra.gmra.mrb[20].mxu1 %v1238_v31  ;;  %v6171_v31 = vld [vmem:[%s7965_s3 + $0x1e0] sm:$0xff]  }
 0x1d2   :  { %5675 = vmatpush3.bf16.msra.mxu1 %v6163_v47  ;;  %5690 = vmatprep.mubr.bf16.mxu1 %v6791_v12  ;;  %v561_v12 = vadd.f32 %v6648_v2, %v560_v29  ;;  %v6217_v47 = vld [vmem:[%s7965_s3 + $0x358] sm:$0xff]  }
 0x1d3   :  { %5676 = vmatprep.subr.bf16.mxu1 %v6165_v52  ;;  %5827 = vmatpush3.bf16.msra.mxu0 %v6224_v49 }
 0x1d4   :  { %5828 = vmatprep.subr.bf16.mxu0 %v6226_v53  ;;  %v601_v60 = vmax.f32 %v561_v12, 0.0 }
 0x1d6   :  { %5677 = vmatpush3.bf16.msra.mxu1 %v6165_v52  ;;  %v7034_v9 = vpack.c.bf16 %v602_v5, %v601_v60  ;;  %v6233_v5 = vld [vmem:[%s7965_s3 + $0x3f0] sm:$0xff]  }
 0x1d7   :  { %5678 = vmatprep.subr.bf16.mxu1 %v6167_v54  ;;  %5829 = vmatpush3.bf16.msra.mxu0 %v6226_v53 }
 0x1d8   :  { %v2445_v14 = vrot.slane %v7034_v9, 7 }
 0x1da   :  { %5679 = vmatpush3.bf16.msra.mxu1 %v6167_v54  ;;  %5831 = vmatmul.mubr.bf16.vlgmr.msra.gmra.mrb[88].mxu0 %v2324_v21  ;;  %v7043_v2 = vsel %vm1480_vm6, %v2444_v8, %v2445_v14 }
 0x1db   :  { %5680 = vmatprep.subr.bf16.mxu1 %v6169_v56 }
 0x1de   :  { %5681 = vmatpush3.bf16.msra.mxu1 %v6169_v56  ;;  %v6225_v56 = vld [vmem:[%s7965_s3 + $0x378] sm:$0xff]  }
 0x1df   :  { %5682 = vmatprep.subr.bf16.mxu1 %v6171_v31 }
 0x1e2   :  { %5683 = vmatpush3.bf16.msra.mxu1 %v6171_v31  ;;  %v6227_v31 = vld [vmem:[%s7965_s3 + $0x3c0] sm:$0xff]  }
 0x1e3   :  { %5684 = vmatprep.subr.bf16.mxu1 %v6173_v4 }
 0x1e6   :  { %5685 = vmatpush3.bf16.msra.mxu1 %v6173_v4  ;;  %v6230_v4 = vld [vmem:[%s7965_s3 + $0x3d8] sm:$0xff]  }
 0x1e7   :  { %5686 = vmatprep.subr.bf16.mxu1 %v6175_v11 }
 0x1ea   :  { %5687 = vmatpush3.bf16.msra.mxu1 %v6175_v11 }
 0x1eb   :  { %5688 = vmatprep.subr.bf16.mxu1 %v6177_v13 }
 0x1ee   :  { %5689 = vmatpush3.bf16.msra.mxu1 %v6177_v13 }
 0x1ef   :  { %5714 = vmatprep.subr.bf16.mxu1 %v6179_v15 }
 0x1f1   :  { %5691 = vmatmul.mubr.bf16.vlgmr.msra.gmra.mrb[24].mxu1 %v1482_v7  ;;  %v6189_v7 = vld [vmem:[%s7965_s3 + $0x268] sm:$0xff]  }
 0x1f2   :  { %5715 = vmatpush3.bf16.msra.mxu1 %v6179_v15  ;;  %5730 = vmatprep.mubr.bf16.mxu1 %v6857_v10  ;;  %v6191_v10 = vld [vmem:[%s7965_s3 + $0x270] sm:$0xff]  }
 0x1f3   :  { %5716 = vmatprep.subr.bf16.mxu1 %v6181_v37 }
 0x1f6   :  { %5717 = vmatpush3.bf16.msra.mxu1 %v6181_v37 }
 0x1f7   :  { %5718 = vmatprep.subr.bf16.mxu1 %v6183_v16 }
 0x1fa   :  { %5719 = vmatpush3.bf16.msra.mxu1 %v6183_v16  ;;  %v6234_v16 = vld [vmem:[%s7965_s3 + $0x3f8] sm:$0xff]  }
 0x1fb   :  { %5720 = vmatprep.subr.bf16.mxu1 %v6185_v17 }
 0x1fe   :  { %5721 = vmatpush3.bf16.msra.mxu1 %v6185_v17 }
 0x1ff   :  { %5722 = vmatprep.subr.bf16.mxu1 %v6187_v3 }
 0x202   :  { %5723 = vmatpush3.bf16.msra.mxu1 %v6187_v3 }
 0x203   :  { %5724 = vmatprep.subr.bf16.mxu1 %v6189_v7 }
 0x204   :  { %v5552_v18 = vpop.f32.mrb[0].mxu1 }
 0x205   :  { %v743_v19 = vpop.f32.mrb[1].mxu1 }
 0x206   :  { %5725 = vmatpush3.bf16.msra.mxu1 %v6189_v7  ;;  %v5553_v22 = vpop.f32.mrb[2].mxu1 }
 0x207   :  { %v746_v23 = vpop.f32.mrb[3].mxu1  ;;  %5726 = vmatprep.subr.bf16.mxu1 %v6191_v10 }
 0x20a   :  { %5727 = vmatpush3.bf16.msra.mxu1 %v6191_v10 }
 0x20b   :  { %5728 = vmatprep.subr.bf16.mxu1 %v6193_v24 }
 0x20e   :  { %5729 = vmatpush3.bf16.msra.mxu1 %v6193_v24 }
 0x20f   :  { %5754 = vmatprep.subr.bf16.mxu1 %v6195_v25 }
 0x211   :  { %5731 = vmatmul.mubr.bf16.vlgmr.msra.gmra.mrb[28].mxu1 %v1719_v59  ;;  %v6205_v59 = vld [vmem:[%s7965_s3 + $0x2e8] sm:$0xff]  }
 0x212   :  { %5755 = vmatpush3.bf16.msra.mxu1 %v6195_v25  ;;  %5770 = vmatprep.mubr.bf16.mxu1 %v6926_v51  ;;  %v6207_v51 = vld [vmem:[%s7965_s3 + $0x2f0] sm:$0xff]  }
 0x213   :  { %5756 = vmatprep.subr.bf16.mxu1 %v6197_v26 }
 0x216   :  { %5757 = vmatpush3.bf16.msra.mxu1 %v6197_v26 }
 0x217   :  { %5758 = vmatprep.subr.bf16.mxu1 %v6199_v27 }
 0x21a   :  { %5759 = vmatpush3.bf16.msra.mxu1 %v6199_v27 }
 0x21b   :  { %5760 = vmatprep.subr.bf16.mxu1 %v6201_v28 }
 0x21e   :  { %5761 = vmatpush3.bf16.msra.mxu1 %v6201_v28 }
 0x21f   :  { %5762 = vmatprep.subr.bf16.mxu1 %v6203_v55 }
 0x222   :  { %5763 = vmatpush3.bf16.msra.mxu1 %v6203_v55 }
 0x223   :  { %5764 = vmatprep.subr.bf16.mxu1 %v6205_v59 }
 0x224   :  { %v5572_v61 = vpop.f32.mrb[4].mxu1 }
 0x225   :  { %v848_v20 = vadd.f32 %v5572_v61, %v5552_v18  ;;  %v839_v30 = vpop.f32.mrb[5].mxu1 }
 0x226   :  { %v840_v33 = vadd.f32 %v839_v30, %v743_v19  ;;  %v5573_v34 = vpop.f32.mrb[6].mxu1  ;;  %5765 = vmatpush3.bf16.msra.mxu1 %v6205_v59 }
 0x227   :  { %v842_v35 = vpop.f32.mrb[7].mxu1  ;;  %5766 = vmatprep.subr.bf16.mxu1 %v6207_v51 }
 0x228   :  { %v843_v38 = vadd.f32 %v842_v35, %v746_v23 }
 0x22a   :  { %5767 = vmatpush3.bf16.msra.mxu1 %v6207_v51 }
 0x22b   :  { %5768 = vmatprep.subr.bf16.mxu1 %v6209_v36 }
 0x22c   :  { %v7105_v41 = vpop.f32.mrb[72].mxu0 }
 0x22d   :  { %v7107_v42 = vpop.f32.mrb[73].mxu0 }
 0x22e   :  { %5769 = vmatpush3.bf16.msra.mxu1 %v6209_v36  ;;  %v5673_v44 = vpop.f32.mrb[74].mxu0 }
 0x22f   :  { %5794 = vmatprep.subr.bf16.mxu1 %v6211_v39  ;;  %v7112_v43 = vpop.f32.mrb[75].mxu0  ;;  %v6235_v44 = vld [vmem:[%s7967_s5] sm:$0xff]  }
 0x231   :  { %5771 = vmatmul.mubr.bf16.vlgmr.msra.gmra.mrb[32].mxu1 %v1961_v45  ;;  %v6221_v45 = vld [vmem:[%s7965_s3 + $0x368] sm:$0xff]  }
 0x232   :  { %5795 = vmatpush3.bf16.msra.mxu1 %v6211_v39  ;;  %5810 = vmatprep.mubr.bf16.mxu1 %v6995_v40  ;;  %v6223_v40 = vld [vmem:[%s7965_s3 + $0x370] sm:$0xff]   ;;  %v6372_v39 = vmov 0.0  }
 0x233   :  { %5796 = vmatprep.subr.bf16.mxu1 %v6213_v6  ;;  %5854 = vmatprep.subr.bf16.mxu0 %v6372_v39 }
 0x234   :  { %5870 = vmatprep.mubr.msk.bf16.mxu0 %vm6373_vm7, %v6372_v39 }
 0x236   :  { %5797 = vmatpush3.bf16.msra.mxu1 %v6213_v6  ;;  %v6236_v6 = vld [vmem:[%s7967_s5 + $0x40] sm:$0xff]  }
 0x237   :  { %5798 = vmatprep.subr.bf16.mxu1 %v6215_v46  ;;  %5855 = vmatpush3.bf16.msra.mxu0 %v6236_v6 }
 0x238   :  { %5856 = vmatprep.subr.bf16.mxu0 %v6372_v39 }
 0x23a   :  { %5799 = vmatpush3.bf16.msra.mxu1 %v6215_v46  ;;  %v6238_v46 = vld [vmem:[%s7967_s5 + $0x48] sm:$0xff]  }
 0x23b   :  { %5800 = vmatprep.subr.bf16.mxu1 %v6217_v47  ;;  %5857 = vmatpush3.bf16.msra.mxu0 %v6238_v46 }
 0x23c   :  { %5858 = vmatprep.subr.bf16.mxu0 %v6372_v39 }
 0x23e   :  { %5801 = vmatpush3.bf16.msra.mxu1 %v6217_v47 }
 0x23f   :  { %5802 = vmatprep.subr.bf16.mxu1 %v6219_v48 }
 0x242   :  { %5803 = vmatpush3.bf16.msra.mxu1 %v6219_v48 }
 0x243   :  { %5804 = vmatprep.subr.bf16.mxu1 %v6221_v45 }
 0x244   :  { %v5592_v21 = vpop.f32.mrb[8].mxu1 }
 0x245   :  { %v974_v49 = vadd.f32 %v5592_v21, %v848_v20  ;;  %v958_v50 = vpop.f32.mrb[9].mxu1  ;;  %v6241_v21 = vld [vmem:[%s7967_s5 + $0x18] sm:$0xff]  }
 0x246   :  { %v972_v52 = vadd.f32 %v958_v50, %v840_v33  ;;  %v5593_v53 = vpop.f32.mrb[10].mxu1  ;;  %5805 = vmatpush3.bf16.msra.mxu1 %v6221_v45  ;;  %v6239_v45 = vld [vmem:[%s7967_s5 + $0x10] sm:$0xff]   ;;  %v6243_v50 = vld [vmem:[%s7967_s5 + $0x20] sm:$0xff]  }
 0x247   :  { %v961_v54 = vpop.f32.mrb[11].mxu1  ;;  %5806 = vmatprep.subr.bf16.mxu1 %v6223_v40  ;;  %v6245_v53 = vld [vmem:[%s7967_s5 + $0x28] sm:$0xff]  }
 0x248   :  { %v973_v29 = vadd.f32 %v961_v54, %v843_v38 }
 0x24a   :  { %5807 = vmatpush3.bf16.msra.mxu1 %v6223_v40  ;;  %v6240_v40 = vld [vmem:[%s7967_s5 + $0x50] sm:$0xff]  }
 0x24b   :  { %5808 = vmatprep.subr.bf16.mxu1 %v6225_v56  ;;  %5859 = vmatpush3.bf16.msra.mxu0 %v6240_v40 }
 0x24c   :  { %5860 = vmatprep.subr.bf16.mxu0 %v6372_v39 }
 0x24d   :  { %v7138_v12 = vpop.f32.mrb[76].mxu0 }
 0x24e   :  { %5809 = vmatpush3.bf16.msra.mxu1 %v6225_v56  ;;  %v7140_v57 = vpop.f32.mrb[77].mxu0  ;;  %v6246_v56 = vld [vmem:[%s7967_s5 + $0x68] sm:$0xff]  }
 0x24f   :  { %5834 = vmatprep.subr.bf16.mxu1 %v6227_v31  ;;  %v5713_v60 = vpop.f32.mrb[78].mxu0 }
 0x250   :  { %v7145_v62 = vpop.f32.mrb[79].mxu0 }
 0x251   :  { %5811 = vmatmul.mubr.bf16.vlgmr.msra.gmra.mrb[36].mxu1 %v2203_v32  ;;  %v6232_v32 = vld [vmem:[%s7965_s3 + $0x3e8] sm:$0xff]  }
 0x252   :  { %5835 = vmatpush3.bf16.msra.mxu1 %v6227_v31  ;;  %5850 = vmatprep.mubr.bf16.mxu1 %v7043_v2 }
 0x253   :  { %5836 = vmatprep.subr.bf16.mxu1 %v6228_v58 }
 0x256   :  { %5837 = vmatpush3.bf16.msra.mxu1 %v6228_v58 }
 0x257   :  { %5838 = vmatprep.subr.bf16.mxu1 %v6229_v1 }
 0x25a   :  { %5839 = vmatpush3.bf16.msra.mxu1 %v6229_v1  ;;  %v6247_v1 = vld [vmem:[%s7967_s5 + $0x30] sm:$0xff]  }
 0x25b   :  { %5840 = vmatprep.subr.bf16.mxu1 %v6230_v4 }
 0x25e   :  { %5841 = vmatpush3.bf16.msra.mxu1 %v6230_v4 }
 0x25f   :  { %5842 = vmatprep.subr.bf16.mxu1 %v6231_v63 }
 0x262   :  { %5843 = vmatpush3.bf16.msra.mxu1 %v6231_v63 }
 0x263   :  { %5844 = vmatprep.subr.bf16.mxu1 %v6232_v32 }
 0x264   :  { %v5612_v8 = vpop.f32.mrb[12].mxu1 }
 0x265   :  { %v1096_v11 = vadd.f32 %v5612_v8, %v974_v49  ;;  %v1080_v2 = vpop.f32.mrb[13].mxu1  ;;  %v6242_v49 = vld [vmem:[%s7967_s5 + $0x58] sm:$0xff]   ;;  %v6248_v8 = vld [vmem:[%s7967_s5 + $0x70] sm:$0xff]  }
 0x266   :  { %v1094_v13 = vadd.f32 %v1080_v2, %v972_v52  ;;  %v5613_v15 = vpop.f32.mrb[14].mxu1  ;;  %5845 = vmatpush3.bf16.msra.mxu1 %v6232_v32  ;;  %v6244_v52 = vld [vmem:[%s7967_s5 + $0x60] sm:$0xff]   ;;  %5861 = vmatpush3.bf16.msra.mxu0 %v6242_v49 }
 0x267   :  { %v1083_v37 = vpop.f32.mrb[15].mxu1  ;;  %5846 = vmatprep.subr.bf16.mxu1 %v6233_v5  ;;  %5862 = vmatprep.subr.bf16.mxu0 %v6372_v39 }
 0x268   :  { %v1095_v17 = vadd.f32 %v1083_v37, %v973_v29 }
 0x26a   :  { %5847 = vmatpush3.bf16.msra.mxu1 %v6233_v5  ;;  %5863 = vmatpush3.bf16.msra.mxu0 %v6244_v52  ;;  %v6252_v52 = vld [vmem:[%s7967_s5 + $0x80] sm:$0xff]  }
 0x26b   :  { %5848 = vmatprep.subr.bf16.mxu1 %v6234_v16  ;;  %5864 = vmatprep.subr.bf16.mxu0 %v6372_v39 }
 0x26d   :  { %v7168_v3 = vpop.f32.mrb[80].mxu0 }
 0x26e   :  { %5849 = vmatpush3.bf16.msra.mxu1 %v6234_v16  ;;  %v7170_v7 = vpop.f32.mrb[81].mxu0  ;;  %5865 = vmatpush3.bf16.msra.mxu0 %v6246_v56  ;;  %v6254_v56 = vld [vmem:[%s7967_s5 + $0x88] sm:$0xff]  }
 0x26f   :  { %v5753_v10 = vpop.f32.mrb[82].mxu0  ;;  %5874 = vmatprep.subr.bf16.mxu1 %v6372_v39  ;;  %5866 = vmatprep.subr.bf16.mxu0 %v6372_v39 }
 0x270   :  { %v7172_v18 = vpop.f32.mrb[83].mxu0 }
 0x271   :  { %5851 = vmatmul.mubr.bf16.vlgmr.msra.gmra.mrb[40].mxu1 %v2445_v14 }
 0x272   :  { %5875 = vmatpush3.bf16.msra.mxu1 %v6235_v44  ;;  %5867 = vmatpush3.bf16.msra.mxu0 %v6248_v8  ;;  %v6264_v8 = vld [vmem:[%s7967_s5 + $0xb0] sm:$0xff]  }
 0x273   :  { %5876 = vmatprep.subr.bf16.mxu1 %v6372_v39  ;;  %5868 = vmatprep.subr.bf16.mxu0 %v6372_v39 }
 0x274   :  { %5890 = vmatprep.mubr.msk.bf16.mxu1 %vm6373_vm7, %v6372_v39 }
 0x284   :  { %v5632_v19 = vpop.f32.mrb[16].mxu1 }
 0x285   :  { %v1218_v22 = vadd.f32 %v5632_v19, %v1096_v11  ;;  %v1202_v23 = vpop.f32.mrb[17].mxu1 }
 0x286   :  { %v1216_v24 = vadd.f32 %v1202_v23, %v1094_v13  ;;  %v5633_v25 = vpop.f32.mrb[18].mxu1 }
 0x287   :  { %v1205_v26 = vpop.f32.mrb[19].mxu1 }
 0x288   :  { %v1217_v27 = vadd.f32 %v1205_v26, %v1095_v17 }
 0x28d   :  { %v7176_v28 = vpop.f32.mrb[84].mxu0 }
 0x28e   :  { %v7178_v55 = vpop.f32.mrb[85].mxu0 }
 0x28f   :  { %v5793_v59 = vpop.f32.mrb[86].mxu0 }
 0x290   :  { %v7180_v51 = vpop.f32.mrb[87].mxu0 }
 0x2a4   :  { %v5652_v61 = vpop.f32.mrb[20].mxu1 }
 0x2a5   :  { %v1340_v20 = vadd.f32 %v5652_v61, %v1218_v22  ;;  %v1324_v30 = vpop.f32.mrb[21].mxu1 }
 0x2a6   :  { %v1338_v33 = vadd.f32 %v1324_v30, %v1216_v24  ;;  %v5653_v9 = vpop.f32.mrb[22].mxu1 }
 0x2a7   :  { %v1462_v14 = vadd.f32 %v7105_v41, %v1340_v20  ;;  %v1327_v34 = vpop.f32.mrb[23].mxu1 }
 0x2a8   :  { %v1339_v35 = vadd.f32 %v1327_v34, %v1217_v27  ;;  %v1460_v36 = vadd.f32 %v7107_v42, %v1338_v33  ;;  %v6237_v42 = vld [vmem:[%s7967_s5 + $0x8] sm:$0xff]  }
 0x2a9   :  { %5877 = vmatpush3.bf16.msra.mxu1 %v6237_v42 }
 0x2aa   :  { %v1461_v38 = vadd.f32 %v7112_v43, %v1339_v35  ;;  %5878 = vmatprep.subr.bf16.mxu1 %v6372_v39 }
 0x2ad   :  { %v7193_v41 = vpop.f32.mrb[88].mxu0  ;;  %5879 = vmatpush3.bf16.msra.mxu1 %v6239_v45 }
 0x2ae   :  { %v7198_v43 = vpop.f32.mrb[89].mxu0  ;;  %5880 = vmatprep.subr.bf16.mxu1 %v6372_v39 }
 0x2af   :  { %v5833_v47 = vpop.f32.mrb[90].mxu0 }
 0x2b0   :  { %v7205_v48 = vpop.f32.mrb[91].mxu0 }
 0x2b1   :  { %5881 = vmatpush3.bf16.msra.mxu1 %v6241_v21 }
 0x2b2   :  { %5882 = vmatprep.subr.bf16.mxu1 %v6372_v39 }
 0x2b5   :  { %5883 = vmatpush3.bf16.msra.mxu1 %v6243_v50 }
 0x2b6   :  { %5884 = vmatprep.subr.bf16.mxu1 %v6372_v39 }
 0x2b9   :  { %5885 = vmatpush3.bf16.msra.mxu1 %v6245_v53 }
 0x2ba   :  { %5886 = vmatprep.subr.bf16.mxu1 %v6372_v39 }
 0x2bd   :  { %5887 = vmatpush3.bf16.msra.mxu1 %v6247_v1  ;;  %v6259_v1 = vld [vmem:[%s7967_s5 + $0xe0] sm:$0xff]  }
 0x2be   :  { %5888 = vmatprep.subr.bf16.mxu1 %v6372_v39 }
 0x2c4   :  { %v5692_v54 = vpop.f32.mrb[24].mxu1 }
 0x2c5   :  { %v1584_v29 = vadd.f32 %v5692_v54, %v1462_v14  ;;  %v1568_v31 = vpop.f32.mrb[25].mxu1  ;;  %v6253_v54 = vld [vmem:[%s7967_s5 + $0xc8] sm:$0xff]  }
 0x2c6   :  { %v1582_v58 = vadd.f32 %v1568_v31, %v1460_v36  ;;  %v5693_v60 = vpop.f32.mrb[26].mxu1  ;;  %v6256_v31 = vld [vmem:[%s7967_s5 + $0x90] sm:$0xff]  }
 0x2c7   :  { %v1699_v4 = vadd.f32 %v7138_v12, %v1584_v29  ;;  %v1571_v63 = vpop.f32.mrb[27].mxu1  ;;  %v6249_v12 = vld [vmem:[%s7967_s5 + $0x38] sm:$0xff]   ;;  %v6255_v29 = vld [vmem:[%s7967_s5 + $0xd0] sm:$0xff]  }
 0x2c8   :  { %v1583_v32 = vadd.f32 %v1571_v63, %v1461_v38  ;;  %v1697_v5 = vadd.f32 %v7140_v57, %v1582_v58  ;;  %5889 = vmatpush3.bf16.msra.mxu1 %v6249_v12  ;;  %v6250_v57 = vld [vmem:[%s7967_s5 + $0x78] sm:$0xff]   ;;  %v6261_v63 = vld [vmem:[%s7967_s5 + $0xe8] sm:$0xff]  }
 0x2c9   :  { %5914 = vmatprep.subr.bf16.mxu1 %v6372_v39  ;;  %5869 = vmatpush3.bf16.msra.mxu0 %v6250_v57  ;;  %v6257_v58 = vld [vmem:[%s7967_s5 + $0xd8] sm:$0xff]   ;;  %v6267_v57 = vld [vmem:[%s7967_s5 + $0x140] sm:$0xff]  }
 0x2ca   :  { %v1698_v11 = vadd.f32 %v7145_v62, %v1583_v32  ;;  %5894 = vmatprep.subr.bf16.mxu0 %v6372_v39  ;;  %v6258_v60 = vld [vmem:[%s7967_s5 + $0x98] sm:$0xff]   ;;  %v6262_v32 = vld [vmem:[%s7967_s5 + $0xa8] sm:$0xff]  }
 0x2cb   :  { %v6266_v12 = vld [vmem:[%s7967_s5 + $0xb8] sm:$0xff]  }
 0x2e4   :  { %v5732_v62 = vpop.f32.mrb[28].mxu1 }
 0x2e5   :  { %v1821_v2 = vadd.f32 %v5732_v62, %v1699_v4  ;;  %v1805_v13 = vpop.f32.mrb[29].mxu1  ;;  %v6260_v4 = vld [vmem:[%s7967_s5 + $0xa0] sm:$0xff]  }
 0x2e6   :  { %v1819_v15 = vadd.f32 %v1805_v13, %v1697_v5  ;;  %v5733_v37 = vpop.f32.mrb[30].mxu1  ;;  %v6263_v5 = vld [vmem:[%s7967_s5 + $0xf0] sm:$0xff]  }
 0x2e7   :  { %v1942_v16 = vadd.f32 %v7168_v3, %v1821_v2  ;;  %v1808_v17 = vpop.f32.mrb[31].mxu1  ;;  %v6268_v2 = vld [vmem:[%s7967_s5 + $0x100] sm:$0xff]   ;;  %v6270_v37 = vld [vmem:[%s7967_s5 + $0x108] sm:$0xff]  }
 0x2e8   :  { %v1820_v10 = vadd.f32 %v1808_v17, %v1698_v11  ;;  %v1940_v19 = vadd.f32 %v7170_v7, %v1819_v15  ;;  %v6265_v11 = vld [vmem:[%s7967_s5 + $0xf8] sm:$0xff]   ;;  %v6269_v15 = vld [vmem:[%s7967_s5 + $0x148] sm:$0xff]   ;;  %v6272_v17 = vld [vmem:[%s7967_s5 + $0x110] sm:$0xff]  }
 0x2ea   :  { %v1941_v22 = vadd.f32 %v7172_v18, %v1820_v10  ;;  %v6273_v10 = vld [vmem:[%s7967_s5 + $0x158] sm:$0xff]  }
 0x304   :  { %v5772_v23 = vpop.f32.mrb[32].mxu1 }
 0x305   :  { %v2063_v24 = vadd.f32 %v5772_v23, %v1942_v16  ;;  %v2047_v25 = vpop.f32.mrb[33].mxu1  ;;  %v6271_v16 = vld [vmem:[%s7967_s5 + $0x150] sm:$0xff]   ;;  %v6276_v23 = vld [vmem:[%s7967_s5 + $0x120] sm:$0xff]  }
 0x306   :  { %v2061_v26 = vadd.f32 %v2047_v25, %v1940_v19  ;;  %v5773_v27 = vpop.f32.mrb[34].mxu1  ;;  %v6274_v19 = vld [vmem:[%s7967_s5 + $0x118] sm:$0xff]   ;;  %v6278_v25 = vld [vmem:[%s7967_s5 + $0x128] sm:$0xff]  }
 0x307   :  { %v2184_v59 = vadd.f32 %v7176_v28, %v2063_v24  ;;  %v2050_v61 = vpop.f32.mrb[35].mxu1  ;;  %v6277_v24 = vld [vmem:[%s7967_s5 + $0x168] sm:$0xff]   ;;  %v6280_v27 = vld [vmem:[%s7967_s5 + $0x130] sm:$0xff]  }
 0x308   :  { %v2062_v20 = vadd.f32 %v2050_v61, %v1941_v22  ;;  %v2182_v30 = vadd.f32 %v7178_v55, %v2061_v26  ;;  %v5002_v55 = vld [vmem:[%s7968_s4] ss:$0 sm:$0xff]  ;;  %v6279_v26 = vld [vmem:[%s7967_s5 + $0x170] sm:$0xff]   ;;  %v6282_v61 = vld [vmem:[%s7967_s5 + $0x138] sm:$0xff]  }
 0x309   :  { %v6275_v22 = vld [vmem:[%s7967_s5 + $0x160] sm:$0xff]  }
 0x30a   :  { %v2183_v33 = vadd.f32 %v7180_v51, %v2062_v20  ;;  %v6283_v20 = vld [vmem:[%s7967_s5 + $0x1c0] sm:$0xff]  }
 0x324   :  { %v5812_v3 = vpop.f32.mrb[36].mxu1 }
 0x325   :  { %v2305_v9 = vadd.f32 %v5812_v3, %v2184_v59  ;;  %v2289_v14 = vpop.f32.mrb[37].mxu1  ;;  %v6281_v59 = vld [vmem:[%s7967_s5 + $0x178] sm:$0xff]  }
 0x326   :  { %v2303_v34 = vadd.f32 %v2289_v14, %v2182_v30  ;;  %v5813_v7 = vpop.f32.mrb[38].mxu1  ;;  %v6286_v14 = vld [vmem:[%s7967_s5 + $0x188] sm:$0xff]  }
 0x327   :  { %v2426_v18 = vadd.f32 %v7193_v41, %v2305_v9  ;;  %v2292_v35 = vpop.f32.mrb[39].mxu1  ;;  %v6285_v9 = vld [vmem:[%s7967_s5 + $0x1c8] sm:$0xff]   ;;  %v6288_v7 = vld [vmem:[%s7967_s5 + $0x190] sm:$0xff]  }
 0x328   :  { %v2304_v36 = vadd.f32 %v2292_v35, %v2183_v33  ;;  %v2424_v38 = vadd.f32 %v7198_v43, %v2303_v34  ;;  %v6251_v43 = vld [vmem:[%s7967_s5 + $0xc0] sm:$0xff]   ;;  %v6287_v34 = vld [vmem:[%s7967_s5 + $0x1d0] sm:$0xff]   ;;  %v6290_v35 = vld [vmem:[%s7967_s5 + $0x198] sm:$0xff]  }
 0x329   :  { %v6284_v33 = vld [vmem:[%s7967_s5 + $0x180] sm:$0xff]  }
 0x32a   :  { %v2425_v44 = vadd.f32 %v7205_v48, %v2304_v36  ;;  %v6291_v36 = vld [vmem:[%s7967_s5 + $0x1e0] sm:$0xff]  }
 0x344   :  { %v5852_v28 = vpop.f32.mrb[40].mxu1 }
 0x345   :  { %v2547_v6 = vadd.f32 %v5852_v28, %v2426_v18  ;;  %v2531_v51 = vpop.f32.mrb[41].mxu1  ;;  %v6289_v18 = vld [vmem:[%s7967_s5 + $0x1d8] sm:$0xff]   ;;  %v6294_v28 = vld [vmem:[%s7967_s5 + $0x1a8] sm:$0xff]  }
 0x346   :  { %v2545_v42 = vadd.f32 %v2531_v51, %v2424_v38  ;;  %v5853_v46 = vpop.f32.mrb[42].mxu1  ;;  %v6292_v38 = vld [vmem:[%s7967_s5 + $0x1a0] sm:$0xff]   ;;  %v6297_v51 = vld [vmem:[%s7967_s5 + $0x1f8] sm:$0xff]  }
 0x347   :  { %v7276_v47 = vadd.f32 %v5002_v55, %v2547_v6  ;;  %v2534_v45 = vpop.f32.mrb[43].mxu1  ;;  %v6296_v6 = vld [vmem:[%s7967_s5 + $0x1b0] sm:$0xff]  }
 0x348   :  { %v2555_v40 = vadd.f32 %v5002_v55, %v2545_v42  ;;  %v2546_v41 = vadd.f32 %v2534_v45, %v2425_v44  ;;  %v6293_v44 = vld [vmem:[%s7967_s5 + $0x1e8] sm:$0xff]   ;;  %v6298_v42 = vld [vmem:[%s7967_s5 + $0x1b8] sm:$0xff]   ;;  %v6299_v45 = vld [vmem:[%s7967_s5 + $0x200] sm:$0xff]  }
 0x34a   :  { %v2556_v21 = vadd.f32 %v5002_v55, %v2546_v41  ;;  %v2558_v49 = vmax.f32 %v2555_v40, 0.0  ;;  %v6295_v55 = vld [vmem:[%s7967_s5 + $0x1f0] sm:$0xff]   ;;  %v6300_v41 = vld [vmem:[%s7967_s5 + $0x208] sm:$0xff]  }
 0x34c   :  { %v2559_v50 = vmax.f32 %v2556_v21, 0.0  ;;  %v6301_v21 = vld [vmem:[%s7967_s5 + $0x210] sm:$0xff]  }
 0x34e   :  { %v7281_v48 = vpack.c.bf16 %v2559_v50, %v2558_v49  ;;  %v6302_v49 = vld [vmem:[%s7967_s5 + $0x218] sm:$0xff]   ;;  %v6303_v50 = vld [vmem:[%s7967_s5 + $0x220] sm:$0xff]  }
 0x350   :  { %5891 = vmatmul.mubr.bf16.vlgmr.msra.gmra.mrb[44].mxu1 %v7281_v48  ;;  %v2596_v53 = vrot.slane %v7281_v48, 1  ;;  %v2897_v62 = vrot.slane %v7281_v48, 3  ;;  %v2790_v13 = vrot.slane %v7281_v48, 2  ;;  %v3111_v30 = vrot.slane %v7281_v48, 5 }
 0x351   :  { %5915 = vmatpush3.bf16.msra.mxu1 %v6251_v43  ;;  %5930 = vmatprep.mubr.msk.bf16.mxu1 %vm6373_vm7, %v6372_v39  ;;  %v3004_v3 = vrot.slane %v7281_v48, 4  ;;  %v3325_v46 = vrot.slane %v7281_v48, 7  ;;  %v3218_v40 = vrot.slane %v7281_v48, 6  ;;  %v6304_v43 = vld [vmem:[%s7967_s5 + $0x228] sm:$0xff]   ;;  %v6305_v48 = vld [vmem:[%s7967_s5 + $0x230] sm:$0xff]  }
 0x352   :  { %5871 = vmatmul.mubr.bf16.vlgmr.msra.gmra.mrb[92].mxu0 %v2596_v53  ;;  %5916 = vmatprep.subr.bf16.mxu1 %v6372_v39  ;;  %v2560_v53 = vmax.f32 %v7276_v47, 0.0 }
 0x353   :  { %5895 = vmatpush3.bf16.msra.mxu0 %v6252_v52  ;;  %5910 = vmatprep.mubr.msk.bf16.mxu0 %vm6373_vm7, %v6372_v39  ;;  %v6306_v52 = vld [vmem:[%s7967_s5 + $0x238] sm:$0xff]  }
 0x354   :  { %5896 = vmatprep.subr.bf16.mxu0 %v6372_v39 }
 0x355   :  { %5917 = vmatpush3.bf16.msra.mxu1 %v6253_v54  ;;  %v2562_v54 = vpack.c.bf16 %v2560_v53, %v2560_v53 }
 0x356   :  { %5918 = vmatprep.subr.bf16.mxu1 %v6372_v39 }
 0x357   :  { %5897 = vmatpush3.bf16.msra.mxu0 %v6254_v56  ;;  %v3531_v56 = vld [vmem:[%s7969_s7] sm:$0xff] }
 0x358   :  { %5898 = vmatprep.subr.bf16.mxu0 %v6372_v39 }
 0x359   :  { %5919 = vmatpush3.bf16.msra.mxu1 %v6255_v29  ;;  %v3535_v29 = vld [vmem:[%s7969_s7 + $0x20] sm:$0xff] }
 0x35a   :  { %5920 = vmatprep.subr.bf16.mxu1 %v6372_v39  ;;  %v5076_v47 = vcombine.low %v3531_v56, %v3535_v29 }
 0x35b   :  { %5899 = vmatpush3.bf16.msra.mxu0 %v6256_v31  ;;  %v3532_v31 = vld [vmem:[%s7969_s7 + $0x8] sm:$0xff] }
 0x35c   :  { %5900 = vmatprep.subr.bf16.mxu0 %v6372_v39 }
 0x35d   :  { %5921 = vmatpush3.bf16.msra.mxu1 %v6257_v58  ;;  %v5077_v58 = vcombine.high %v3531_v56, %v3535_v29  ;;  %v3587_v56 = vld [vmem:[%s7969_s7 + $0x1c0] sm:$0xff] }
 0x35e   :  { %5922 = vmatprep.subr.bf16.mxu1 %v6372_v39  ;;  %v3591_v29 = vld [vmem:[%s7969_s7 + $0x1e0] sm:$0xff] }
 0x35f   :  { %5901 = vmatpush3.bf16.msra.mxu0 %v6258_v60  ;;  %v3539_v60 = vld [vmem:[%s7969_s7 + $0x40] sm:$0xff] }
 0x360   :  { %5902 = vmatprep.subr.bf16.mxu0 %v6372_v39 }
 0x361   :  { %5923 = vmatpush3.bf16.msra.mxu1 %v6259_v1  ;;  %v3543_v1 = vld [vmem:[%s7969_s7 + $0x60] sm:$0xff] }
 0x362   :  { %5924 = vmatprep.subr.bf16.mxu1 %v6372_v39 }
 0x363   :  { %5903 = vmatpush3.bf16.msra.mxu0 %v6260_v4 }
 0x364   :  { %5904 = vmatprep.subr.bf16.mxu0 %v6372_v39 }
 0x365   :  { %5925 = vmatpush3.bf16.msra.mxu1 %v6261_v63 }
 0x366   :  { %5926 = vmatprep.subr.bf16.mxu1 %v6372_v39 }
 0x367   :  { %5905 = vmatpush3.bf16.msra.mxu0 %v6262_v32  ;;  %v5085_v32 = vcombine.high %v3539_v60, %v3543_v1 }
 0x368   :  { %5906 = vmatprep.subr.bf16.mxu0 %v6372_v39 }
 0x369   :  { %5927 = vmatpush3.bf16.msra.mxu1 %v6263_v5  ;;  %v3540_v5 = vld [vmem:[%s7969_s7 + $0x48] sm:$0xff] }
 0x36a   :  { %5928 = vmatprep.subr.bf16.mxu1 %v6372_v39 }
 0x36b   :  { %5907 = vmatpush3.bf16.msra.mxu0 %v6264_v8  ;;  %v3544_v8 = vld [vmem:[%s7969_s7 + $0x68] sm:$0xff] }
 0x36c   :  { %5908 = vmatprep.subr.bf16.mxu0 %v6372_v39 }
 0x36d   :  { %5929 = vmatpush3.bf16.msra.mxu1 %v6265_v11  ;;  %v3547_v11 = vld [vmem:[%s7969_s7 + $0x80] sm:$0xff] }
 0x36e   :  { %5954 = vmatprep.subr.bf16.mxu1 %v6372_v39 }
 0x36f   :  { %5909 = vmatpush3.bf16.msra.mxu0 %v6266_v12  ;;  %v5087_v12 = vcombine.high %v3540_v5, %v3544_v8 }
 0x370   :  { %5931 = vmatmul.mubr.bf16.vlgmr.msra.gmra.mrb[48].mxu1 %v2897_v62  ;;  %5934 = vmatprep.subr.bf16.mxu0 %v6372_v39  ;;  %v3548_v62 = vld [vmem:[%s7969_s7 + $0x88] sm:$0xff] }
 0x371   :  { %5955 = vmatpush3.bf16.msra.mxu1 %v6267_v57  ;;  %5970 = vmatprep.mubr.msk.bf16.mxu1 %vm6373_vm7, %v6372_v39  ;;  %v3551_v57 = vld [vmem:[%s7969_s7 + $0xa0] sm:$0xff] }
 0x372   :  { %5911 = vmatmul.mubr.bf16.vlgmr.msra.gmra.mrb[96].mxu0 %v2790_v13  ;;  %5956 = vmatprep.subr.bf16.mxu1 %v6372_v39  ;;  %v5084_v13 = vcombine.low %v3539_v60, %v3543_v1  ;;  %v5132_v1 = vcombine.low %v3587_v56, %v3591_v29 }
 0x373   :  { %5935 = vmatpush3.bf16.msra.mxu0 %v6268_v2  ;;  %5950 = vmatprep.mubr.msk.bf16.mxu0 %vm6373_vm7, %v6372_v39  ;;  %v3552_v2 = vld [vmem:[%s7969_s7 + $0xa8] sm:$0xff] }
 0x374   :  { %5936 = vmatprep.subr.bf16.mxu0 %v6372_v39 }
 0x375   :  { %5957 = vmatpush3.bf16.msra.mxu1 %v6269_v15  ;;  %v5086_v15 = vcombine.low %v3540_v5, %v3544_v8  ;;  %v7631_v5 = vld [vmem:[%s7969_s7 + $0x30] sm:$0xff]  ;;  %v7636_v8 = vld [vmem:[%s7969_s7 + $0x18] sm:$0xff] }
 0x376   :  { %5958 = vmatprep.subr.bf16.mxu1 %v6372_v39 }
 0x377   :  { %5937 = vmatpush3.bf16.msra.mxu0 %v6270_v37  ;;  %v5093_v37 = vcombine.high %v3547_v11, %v3551_v57 }
 0x378   :  { %5938 = vmatprep.subr.bf16.mxu0 %v6372_v39 }
 0x379   :  { %5959 = vmatpush3.bf16.msra.mxu1 %v6271_v16  ;;  %v5095_v16 = vcombine.high %v3548_v62, %v3552_v2 }
 0x37a   :  { %5960 = vmatprep.subr.bf16.mxu1 %v6372_v39 }
 0x37b   :  { %5939 = vmatpush3.bf16.msra.mxu0 %v6272_v17  ;;  %v3555_v17 = vld [vmem:[%s7969_s7 + $0xc0] sm:$0xff] }
 0x37c   :  { %5940 = vmatprep.subr.bf16.mxu0 %v6372_v39 }
 0x37d   :  { %5961 = vmatpush3.bf16.msra.mxu1 %v6273_v10  ;;  %v3559_v10 = vld [vmem:[%s7969_s7 + $0xe0] sm:$0xff] }
 0x37e   :  { %5962 = vmatprep.subr.bf16.mxu1 %v6372_v39 }
 0x37f   :  { %5941 = vmatpush3.bf16.msra.mxu0 %v6274_v19  ;;  %v3556_v19 = vld [vmem:[%s7969_s7 + $0xc8] sm:$0xff] }
 0x380   :  { %5942 = vmatprep.subr.bf16.mxu0 %v6372_v39 }
 0x381   :  { %5963 = vmatpush3.bf16.msra.mxu1 %v6275_v22  ;;  %v3560_v22 = vld [vmem:[%s7969_s7 + $0xe8] sm:$0xff] }
 0x382   :  { %5964 = vmatprep.subr.bf16.mxu1 %v6372_v39 }
 0x383   :  { %5943 = vmatpush3.bf16.msra.mxu0 %v6276_v23  ;;  %v5092_v23 = vcombine.low %v3547_v11, %v3551_v57 }
 0x384   :  { %5944 = vmatprep.subr.bf16.mxu0 %v6372_v39 }
 0x385   :  { %5965 = vmatpush3.bf16.msra.mxu1 %v6277_v24  ;;  %v5094_v24 = vcombine.low %v3548_v62, %v3552_v2 }
 0x386   :  { %5966 = vmatprep.subr.bf16.mxu1 %v6372_v39 }
 0x387   :  { %5945 = vmatpush3.bf16.msra.mxu0 %v6278_v25  ;;  %v5101_v25 = vcombine.high %v3555_v17, %v3559_v10 }
 0x388   :  { %5946 = vmatprep.subr.bf16.mxu0 %v6372_v39 }
 0x389   :  { %5967 = vmatpush3.bf16.msra.mxu1 %v6279_v26  ;;  %v5103_v26 = vcombine.high %v3556_v19, %v3560_v22 }
 0x38a   :  { %5968 = vmatprep.subr.bf16.mxu1 %v6372_v39 }
 0x38b   :  { %5947 = vmatpush3.bf16.msra.mxu0 %v6280_v27  ;;  %v3563_v27 = vld [vmem:[%s7969_s7 + $0x100] sm:$0xff] }
 0x38c   :  { %5948 = vmatprep.subr.bf16.mxu0 %v6372_v39 }
 0x38d   :  { %5969 = vmatpush3.bf16.msra.mxu1 %v6281_v59  ;;  %v3567_v59 = vld [vmem:[%s7969_s7 + $0x120] sm:$0xff] }
 0x38e   :  { %5994 = vmatprep.subr.bf16.mxu1 %v6372_v39 }
 0x38f   :  { %5949 = vmatpush3.bf16.msra.mxu0 %v6282_v61  ;;  %v3564_v61 = vld [vmem:[%s7969_s7 + $0x108] sm:$0xff] }
 0x390   :  { %5971 = vmatmul.mubr.bf16.vlgmr.msra.gmra.mrb[52].mxu1 %v3111_v30  ;;  %5974 = vmatprep.subr.bf16.mxu0 %v6372_v39  ;;  %v5100_v30 = vcombine.low %v3555_v17, %v3559_v10 }
 0x391   :  { %5995 = vmatpush3.bf16.msra.mxu1 %v6283_v20  ;;  %6010 = vmatprep.mubr.msk.bf16.mxu1 %vm6373_vm7, %v6372_v39  ;;  %v3568_v20 = vld [vmem:[%s7969_s7 + $0x128] sm:$0xff] }
 0x392   :  { %5951 = vmatmul.mubr.bf16.vlgmr.msra.gmra.mrb[100].mxu0 %v3004_v3  ;;  %5996 = vmatprep.subr.bf16.mxu1 %v6372_v39  ;;  %v5109_v3 = vcombine.high %v3563_v27, %v3567_v59 }
 0x393   :  { %5975 = vmatpush3.bf16.msra.mxu0 %v6284_v33  ;;  %5990 = vmatprep.mubr.msk.bf16.mxu0 %vm6373_vm7, %v6372_v39  ;;  %v5102_v33 = vcombine.low %v3556_v19, %v3560_v22 }
 0x394   :  { %5976 = vmatprep.subr.bf16.mxu0 %v6372_v39 }
 0x395   :  { %5997 = vmatpush3.bf16.msra.mxu1 %v6285_v9  ;;  %v5111_v9 = vcombine.high %v3564_v61, %v3568_v20 }
 0x396   :  { %5998 = vmatprep.subr.bf16.mxu1 %v6372_v39 }
 0x397   :  { %5977 = vmatpush3.bf16.msra.mxu0 %v6286_v14  ;;  %v3571_v14 = vld [vmem:[%s7969_s7 + $0x140] sm:$0xff] }
 0x398   :  { %5978 = vmatprep.subr.bf16.mxu0 %v6372_v39 }
 0x399   :  { %5999 = vmatpush3.bf16.msra.mxu1 %v6287_v34  ;;  %v3575_v34 = vld [vmem:[%s7969_s7 + $0x160] sm:$0xff] }
 0x39a   :  { %6000 = vmatprep.subr.bf16.mxu1 %v6372_v39 }
 0x39b   :  { %5979 = vmatpush3.bf16.msra.mxu0 %v6288_v7  ;;  %v3572_v7 = vld [vmem:[%s7969_s7 + $0x148] sm:$0xff] }
 0x39c   :  { %5980 = vmatprep.subr.bf16.mxu0 %v6372_v39 }
 0x39d   :  { %6001 = vmatpush3.bf16.msra.mxu1 %v6289_v18  ;;  %v3576_v18 = vld [vmem:[%s7969_s7 + $0x168] sm:$0xff] }
 0x39e   :  { %6002 = vmatprep.subr.bf16.mxu1 %v6372_v39 }
 0x39f   :  { %5981 = vmatpush3.bf16.msra.mxu0 %v6290_v35  ;;  %v5108_v35 = vcombine.low %v3563_v27, %v3567_v59 }
 0x3a0   :  { %5982 = vmatprep.subr.bf16.mxu0 %v6372_v39 }
 0x3a1   :  { %6003 = vmatpush3.bf16.msra.mxu1 %v6291_v36  ;;  %v5110_v36 = vcombine.low %v3564_v61, %v3568_v20 }
 0x3a2   :  { %6004 = vmatprep.subr.bf16.mxu1 %v6372_v39 }
 0x3a3   :  { %5983 = vmatpush3.bf16.msra.mxu0 %v6292_v38  ;;  %v5117_v38 = vcombine.high %v3571_v14, %v3575_v34 }
 0x3a4   :  { %5984 = vmatprep.subr.bf16.mxu0 %v6372_v39 }
 0x3a5   :  { %6005 = vmatpush3.bf16.msra.mxu1 %v6293_v44  ;;  %v5119_v44 = vcombine.high %v3572_v7, %v3576_v18 }
 0x3a6   :  { %6006 = vmatprep.subr.bf16.mxu1 %v6372_v39 }
 0x3a7   :  { %5985 = vmatpush3.bf16.msra.mxu0 %v6294_v28  ;;  %v5116_v28 = vcombine.low %v3571_v14, %v3575_v34 }
 0x3a8   :  { %5986 = vmatprep.subr.bf16.mxu0 %v6372_v39 }
 0x3a9   :  { %6007 = vmatpush3.bf16.msra.mxu1 %v6295_v55  ;;  %v5118_v55 = vcombine.low %v3572_v7, %v3576_v18 }
 0x3aa   :  { %6008 = vmatprep.subr.bf16.mxu1 %v6372_v39 }
 0x3ab   :  { %5987 = vmatpush3.bf16.msra.mxu0 %v6296_v6  ;;  %v3579_v6 = vld [vmem:[%s7969_s7 + $0x180] sm:$0xff] }
 0x3ac   :  { %5988 = vmatprep.subr.bf16.mxu0 %v6372_v39 }
 0x3ad   :  { %6009 = vmatpush3.bf16.msra.mxu1 %v6297_v51  ;;  %v3583_v51 = vld [vmem:[%s7969_s7 + $0x1a0] sm:$0xff] }
 0x3ae   :  { %3957 = vmatprep.subr.bf16.mxu1 %v5077_v58  ;;  %v3588_v58 = vld [vmem:[%s7969_s7 + $0x1c8] sm:$0xff] }
 0x3af   :  { %5989 = vmatpush3.bf16.msra.mxu0 %v6298_v42  ;;  %v3580_v42 = vld [vmem:[%s7969_s7 + $0x188] sm:$0xff] }
 0x3b0   :  { %6011 = vmatmul.mubr.bf16.vlgmr.msra.gmra.mrb[56].mxu1 %v3325_v46  ;;  %6014 = vmatprep.subr.bf16.mxu0 %v6372_v39 }
 0x3b1   :  { %3989 = vmatprep.mubr.bf16.mxu1 %v6371_v0  ;;  %3958 = vmatpush1.bf16.msra.mxu1 %v5076_v47  ;;  %v5133_v47 = vcombine.high %v3587_v56, %v3591_v29  ;;  %v3549_v56 = vld [vmem:[%s7969_s7 + $0x90] sm:$0xff] }
 0x3b2   :  { %5991 = vmatmul.mubr.bf16.vlgmr.msra.gmra.mrb[104].mxu0 %v3218_v40  ;;  %3959 = vmatprep.subr.bf16.mxu1 %v5085_v32  ;;  %v3584_v40 = vld [vmem:[%s7969_s7 + $0x1a8] sm:$0xff]  ;;  %v7626_v32 = vld [vmem:[%s7969_s7 + $0x10] sm:$0xff] }
 0x3b3   :  { %6015 = vmatpush3.bf16.msra.mxu0 %v6299_v45  ;;  %6030 = vmatprep.mubr.msk.bf16.mxu0 %vm6373_vm7, %v6372_v39  ;;  %v5125_v45 = vcombine.high %v3579_v6, %v3583_v51  ;;  %v5081_v11 = vcombine.high %v7626_v32, %v7631_v5  ;;  %v5080_v57 = vcombine.low %v7626_v32, %v7631_v5  ;;  %v3553_v29 = vld [vmem:[%s7969_s7 + $0xb0] sm:$0xff]  ;;  %v3558_v32 = vld [vmem:[%s7969_s7 + $0xd8] sm:$0xff] }
 0x3b4   :  { %6016 = vmatprep.subr.bf16.mxu0 %v6372_v39  ;;  %v3562_v5 = vld [vmem:[%s7969_s7 + $0xf8] sm:$0xff] }
 0x3b5   :  { %3960 = vmatpush1.bf16.msra.mxu1 %v5084_v13 }
 0x3b6   :  { %3961 = vmatprep.subr.bf16.mxu1 %v5093_v37 }
 0x3b7   :  { %6017 = vmatpush3.bf16.msra.mxu0 %v6300_v41 }
 0x3b8   :  { %6018 = vmatprep.subr.bf16.mxu0 %v6372_v39 }
 0x3b9   :  { %3962 = vmatpush1.bf16.msra.mxu1 %v5092_v23 }
 0x3ba   :  { %3963 = vmatprep.subr.bf16.mxu1 %v5101_v25 }
 0x3bb   :  { %6019 = vmatpush3.bf16.msra.mxu0 %v6301_v21  ;;  %v5124_v21 = vcombine.low %v3579_v6, %v3583_v51  ;;  %v5075_v51 = vld [vmem:[%s7971_s6] ss:$0 sm:$0xff] }
 0x3bc   :  { %6020 = vmatprep.subr.bf16.mxu0 %v6372_v39 }
 0x3bd   :  { %3964 = vmatpush1.bf16.msra.mxu1 %v5100_v30 }
 0x3be   :  { %3965 = vmatprep.subr.bf16.mxu1 %v5109_v3 }
 0x3bf   :  { %6021 = vmatpush3.bf16.msra.mxu0 %v6302_v49  ;;  %v5126_v49 = vcombine.low %v3580_v42, %v3584_v40 }
 0x3c0   :  { %6022 = vmatprep.subr.bf16.mxu0 %v6372_v39 }
 0x3c1   :  { %3966 = vmatpush1.bf16.msra.mxu1 %v5108_v35 }
 0x3c2   :  { %3967 = vmatprep.subr.bf16.mxu1 %v5117_v38 }
 0x3c3   :  { %6023 = vmatpush3.bf16.msra.mxu0 %v6303_v50  ;;  %v5127_v50 = vcombine.high %v3580_v42, %v3584_v40 }
 0x3c4   :  { %6024 = vmatprep.subr.bf16.mxu0 %v6372_v39 }
 0x3c5   :  { %3968 = vmatpush1.bf16.msra.mxu1 %v5116_v28 }
 0x3c6   :  { %3969 = vmatprep.subr.bf16.mxu1 %v5125_v45 }
 0x3c7   :  { %6025 = vmatpush3.bf16.msra.mxu0 %v6304_v43 }
 0x3c8   :  { %6026 = vmatprep.subr.bf16.mxu0 %v6372_v39 }
 0x3c9   :  { %3970 = vmatpush1.bf16.msra.mxu1 %v5124_v21  ;;  %v3541_v21 = vld [vmem:[%s7969_s7 + $0x50] sm:$0xff] }
 0x3ca   :  { %3971 = vmatprep.subr.bf16.mxu1 %v5133_v47  ;;  %v3554_v47 = vld [vmem:[%s7969_s7 + $0xb8] sm:$0xff] }
 0x3cb   :  { %6027 = vmatpush3.bf16.msra.mxu0 %v6305_v48 }
 0x3cc   :  { %6028 = vmatprep.subr.bf16.mxu0 %v6372_v39  ;;  %v3536_v39 = vld [vmem:[%s7969_s7 + $0x28] sm:$0xff] }
 0x3cd   :  { %v5078_v4 = vcombine.low %v3532_v31, %v3536_v39  ;;  %v5079_v63 = vcombine.high %v3532_v31, %v3536_v39  ;;  %v3592_v39 = vld [vmem:[%s7969_s7 + $0x1e8] sm:$0xff]  ;;  %3972 = vmatpush1.bf16.msra.mxu1 %v5132_v1 }
 0x3ce   :  { %4039 = vmatprep.subr.bf16.mxu1 %v5081_v11 }
 0x3cf   :  { %6029 = vmatpush3.bf16.msra.mxu0 %v6306_v52 }
 0x3d0   :  { %3998 = vmatprep.subr.bf16.mxu0 %v5079_v63  ;;  %v5135_v63 = vcombine.high %v3588_v58, %v3592_v39 }
 0x3d2   :  { %6031 = vmatmul.mubr.bf16.vlgmr.msra.gmra.mrb[108].mxu0 %v2562_v54 }
 0x3d3   :  { %4030 = vmatprep.mubr.bf16.mxu0 %v6371_v0  ;;  %3999 = vmatpush1.bf16.msra.mxu0 %v5078_v4  ;;  %v5134_v4 = vcombine.low %v3588_v58, %v3592_v39 }
 0x3d4   :  { %4000 = vmatprep.subr.bf16.mxu0 %v5087_v12  ;;  %v3538_v12 = vld [vmem:[%s7969_s7 + $0x38] sm:$0xff] }
 0x3d5   :  { %v5082_v62 = vcombine.low %v7636_v8, %v3538_v12  ;;  %v5083_v2 = vcombine.high %v7636_v8, %v3538_v12  ;;  %v5096_v8 = vcombine.low %v3549_v56, %v3553_v29 }
 0x3d7   :  { %4001 = vmatpush1.bf16.msra.mxu0 %v5086_v15 }
 0x3d8   :  { %4002 = vmatprep.subr.bf16.mxu0 %v5095_v16 }
 0x3db   :  { %4003 = vmatpush1.bf16.msra.mxu0 %v5094_v24 }
 0x3dc   :  { %4004 = vmatprep.subr.bf16.mxu0 %v5103_v26 }
 0x3df   :  { %4005 = vmatpush1.bf16.msra.mxu0 %v5102_v33 }
 0x3e0   :  { %4006 = vmatprep.subr.bf16.mxu0 %v5111_v9 }
 0x3e3   :  { %4007 = vmatpush1.bf16.msra.mxu0 %v5110_v36 }
 0x3e4   :  { %4008 = vmatprep.subr.bf16.mxu0 %v5119_v44 }
 0x3e7   :  { %4009 = vmatpush1.bf16.msra.mxu0 %v5118_v55 }
 0x3e8   :  { %4010 = vmatprep.subr.bf16.mxu0 %v5127_v50  ;;  %v3542_v50 = vld [vmem:[%s7969_s7 + $0x58] sm:$0xff] }
 0x3eb   :  { %4011 = vmatpush1.bf16.msra.mxu0 %v5126_v49  ;;  %v3545_v49 = vld [vmem:[%s7969_s7 + $0x70] sm:$0xff] }
 0x3ec   :  { %4012 = vmatprep.subr.bf16.mxu0 %v5135_v63  ;;  %v5088_v58 = vcombine.low %v3541_v21, %v3545_v49  ;;  %v3561_v63 = vld [vmem:[%s7969_s7 + $0xf0] sm:$0xff] }
 0x3ef   :  { %4013 = vmatpush1.bf16.msra.mxu0 %v5134_v4  ;;  %v3557_v4 = vld [vmem:[%s7969_s7 + $0xd0] sm:$0xff] }
 0x3f0   :  { %4080 = vmatprep.subr.bf16.mxu0 %v5083_v2  ;;  %v5105_v12 = vcombine.high %v3557_v4, %v3561_v63  ;;  %v3569_v2 = vld [vmem:[%s7969_s7 + $0x130] sm:$0xff] }
 0x423   :  { %v2768_v46 = vpop.f32.mrb[44].mxu1 }
 0x424   :  { %v5892_v41 = vpop.f32.mrb[45].mxu1 }
 0x425   :  { %v2680_v43 = vpop.f32.mrb[92].mxu0  ;;  %v2771_v48 = vpop.f32.mrb[46].mxu1 }
 0x426   :  { %v2769_v52 = vadd.f32 %v2768_v46, %v2680_v43  ;;  %v5872_v53 = vpop.f32.mrb[93].mxu0  ;;  %v5893_v54 = vpop.f32.mrb[47].mxu1  ;;  %v3546_v43 = vld [vmem:[%s7969_s7 + $0x78] sm:$0xff] }
 0x427   :  { %v2683_v31 = vpop.f32.mrb[94].mxu0  ;;  %v5089_v53 = vcombine.high %v3541_v21, %v3545_v49  ;;  %v5091_v54 = vcombine.high %v3542_v50, %v3546_v43  ;;  %v5090_v39 = vcombine.low %v3542_v50, %v3546_v43  ;;  %v6313_v21 = vld [vmem:[%s7970_s9 + $0x8] sm:$0xff]   ;;  %v6315_v50 = vld [vmem:[%s7970_s9 + $0x50] sm:$0xff]  }
 0x428   :  { %v5873_v60 = vpop.f32.mrb[95].mxu0  ;;  %v3550_v31 = vld [vmem:[%s7969_s7 + $0x98] sm:$0xff]  ;;  %v6314_v49 = vld [vmem:[%s7970_s9 + $0x88] sm:$0xff]   ;;  %v6316_v43 = vld [vmem:[%s7970_s9 + $0xd0] sm:$0xff]  }
 0x429   :  { %v5097_v60 = vcombine.high %v3549_v56, %v3553_v29  ;;  %v5099_v1 = vcombine.high %v3550_v31, %v3554_v47  ;;  %v5098_v11 = vcombine.low %v3550_v31, %v3554_v47  ;;  %v6321_v56 = vld [vmem:[%s7970_s9 + $0x18] sm:$0xff]   ;;  %v6323_v31 = vld [vmem:[%s7970_s9 + $0x60] sm:$0xff]  }
 0x42a   :  { %v6322_v29 = vld [vmem:[%s7970_s9 + $0x98] sm:$0xff]   ;;  %v6324_v47 = vld [vmem:[%s7970_s9 + $0xe0] sm:$0xff]  }
 0x443   :  { %v2981_v13 = vpop.f32.mrb[48].mxu1 }
 0x444   :  { %v5932_v15 = vpop.f32.mrb[49].mxu1 }
 0x445   :  { %v2874_v37 = vpop.f32.mrb[96].mxu0  ;;  %v2984_v16 = vpop.f32.mrb[50].mxu1  ;;  %v5104_v15 = vcombine.low %v3557_v4, %v3561_v63  ;;  %v6329_v4 = vld [vmem:[%s7970_s9 + $0x28] sm:$0xff]  }
 0x446   :  { %v2880_v17 = vadd.f32 %v2874_v37, %v2769_v52  ;;  %v5912_v10 = vpop.f32.mrb[97].mxu0  ;;  %v5933_v19 = vpop.f32.mrb[51].mxu1  ;;  %v5106_v37 = vcombine.low %v3558_v32, %v3562_v5  ;;  %v6330_v63 = vld [vmem:[%s7970_s9 + $0xa8] sm:$0xff]  }
 0x447   :  { %v2877_v22 = vpop.f32.mrb[98].mxu0  ;;  %v3573_v10 = vld [vmem:[%s7969_s7 + $0x150] sm:$0xff] }
 0x448   :  { %v5913_v23 = vpop.f32.mrb[99].mxu0  ;;  %v2987_v24 = vadd.f32 %v2981_v13, %v2880_v17  ;;  %v3570_v13 = vld [vmem:[%s7969_s7 + $0x138] sm:$0xff]  ;;  %v3577_v19 = vld [vmem:[%s7969_s7 + $0x170] sm:$0xff] }
 0x449   :  { %v3574_v22 = vld [vmem:[%s7969_s7 + $0x158] sm:$0xff] }
 0x44a   :  { %v3578_v23 = vld [vmem:[%s7969_s7 + $0x178] sm:$0xff] }
 0x463   :  { %v3195_v25 = vpop.f32.mrb[52].mxu1 }
 0x464   :  { %v5972_v26 = vpop.f32.mrb[53].mxu1 }
 0x465   :  { %v3088_v27 = vpop.f32.mrb[100].mxu0  ;;  %v3198_v59 = vpop.f32.mrb[54].mxu1  ;;  %v5121_v26 = vcombine.high %v3573_v10, %v3577_v19 }
 0x466   :  { %v3094_v61 = vadd.f32 %v3088_v27, %v2987_v24  ;;  %v5952_v20 = vpop.f32.mrb[101].mxu0  ;;  %v5973_v30 = vpop.f32.mrb[55].mxu1  ;;  %v5123_v27 = vcombine.high %v3574_v22, %v3578_v23  ;;  %v3581_v59 = vld [vmem:[%s7969_s7 + $0x190] sm:$0xff] }
 0x467   :  { %v3091_v33 = vpop.f32.mrb[102].mxu0  ;;  %v3582_v20 = vld [vmem:[%s7969_s7 + $0x198] sm:$0xff] }
 0x468   :  { %v5953_v3 = vpop.f32.mrb[103].mxu0  ;;  %v3201_v9 = vadd.f32 %v3195_v25, %v3094_v61  ;;  %v3585_v61 = vld [vmem:[%s7969_s7 + $0x1b0] sm:$0xff]  ;;  %v3586_v30 = vld [vmem:[%s7969_s7 + $0x1b8] sm:$0xff]  ;;  %v5120_v33 = vcombine.low %v3573_v10, %v3577_v19  ;;  %v7851_v10 = vld [vmem:[%s7972_s8] sm:$0xff] }
 0x469   :  { %v5122_v3 = vcombine.low %v3574_v22, %v3578_v23 }
 0x483   :  { %v3409_v14 = vpop.f32.mrb[56].mxu1 }
 0x484   :  { %v6012_v34 = vpop.f32.mrb[57].mxu1 }
 0x485   :  { %v3302_v7 = vpop.f32.mrb[104].mxu0  ;;  %v3412_v18 = vpop.f32.mrb[58].mxu1  ;;  %v3589_v34 = vld [vmem:[%s7969_s7 + $0x1d0] sm:$0xff] }
 0x486   :  { %v3308_v35 = vadd.f32 %v3302_v7, %v3201_v9  ;;  %v5992_v36 = vpop.f32.mrb[105].mxu0  ;;  %v6013_v38 = vpop.f32.mrb[59].mxu1  ;;  %v5129_v9 = vcombine.high %v3581_v59, %v3585_v61  ;;  %v3593_v7 = vld [vmem:[%s7969_s7 + $0x1f0] sm:$0xff]  ;;  %v3590_v18 = vld [vmem:[%s7969_s7 + $0x1d8] sm:$0xff] }
 0x487   :  { %v3305_v44 = vpop.f32.mrb[106].mxu0  ;;  %v5128_v36 = vcombine.low %v3581_v59, %v3585_v61  ;;  %v5130_v38 = vcombine.low %v3582_v20, %v3586_v30 }
 0x488   :  { %v5993_v28 = vpop.f32.mrb[107].mxu0  ;;  %v3415_v55 = vadd.f32 %v3409_v14, %v3308_v35  ;;  %v5131_v14 = vcombine.high %v3582_v20, %v3586_v30  ;;  %v3594_v35 = vld [vmem:[%s7969_s7 + $0x1f8] sm:$0xff]  ;;  %v5137_v44 = vcombine.high %v3589_v34, %v3593_v7 }
 0x489   :  { %v5139_v28 = vcombine.high %v3590_v18, %v3594_v35 }
 0x4a5   :  { %v3514_v6 = vpop.f32.mrb[108].mxu0 }
 0x4a6   :  { %v3520_v42 = vadd.f32 %v3514_v6, %v3415_v55  ;;  %v6032_v46 = vpop.f32.mrb[109].mxu0  ;;  %v5136_v55 = vcombine.low %v3589_v34, %v3593_v7  ;;  %v5138_v6 = vcombine.low %v3590_v18, %v3594_v35 }
 0x4a7   :  { %v3517_v45 = vpop.f32.mrb[110].mxu0  ;;  %v6309_v46 = vld [vmem:[%s7970_s9] sm:$0xff]  }
 0x4a8   :  { %v3528_v40 = vadd.f32 %v5075_v51, %v3520_v42  ;;  %v6033_v41 = vpop.f32.mrb[111].mxu0  ;;  %v6307_v51 = vld [vmem:[%s7970_s9 + $0x40] sm:$0xff]  }
 0x4a9   :  { %v6308_v42 = vld [vmem:[%s7970_s9 + $0xc0] sm:$0xff]   ;;  %v6312_v41 = vld [vmem:[%s7970_s9 + $0xc8] sm:$0xff]  }
 0x4aa   :  { %v3529_v48 = vmax.f32 %v3528_v40, 0.0  ;;  %v6310_v45 = vld [vmem:[%s7970_s9 + $0x80] sm:$0xff]   ;;  %v6311_v40 = vld [vmem:[%s7970_s9 + $0x48] sm:$0xff]  }
 0x4ac   :  { %v7662_v52 = vpack.c.bf16 %v3529_v48, %v3529_v48  ;;  %v6317_v48 = vld [vmem:[%s7970_s9 + $0x10] sm:$0xff]  }
 0x4ae   :  { %3990 = vmatmul.mubr.bf16.vlgmr.msra.gmra.mrb[60].mxu1 %v7662_v52  ;;  %4031 = vmatmul.mubr.bf16.vlgmr.msra.gmra.mrb[112].mxu0 %v7662_v52 }
 0x4af   :  { %4040 = vmatpush1.bf16.msra.mxu1 %v5080_v57  ;;  %4081 = vmatpush1.bf16.msra.mxu0 %v5082_v62  ;;  %v5107_v57 = vcombine.high %v3558_v32, %v3562_v5  ;;  %v3565_v62 = vld [vmem:[%s7969_s7 + $0x110] sm:$0xff] }
 0x4b0   :  { %4041 = vmatprep.subr.bf16.mxu1 %v5089_v53  ;;  %4082 = vmatprep.subr.bf16.mxu0 %v5091_v54  ;;  %v5113_v16 = vcombine.high %v3565_v62, %v3569_v2  ;;  %v5112_v24 = vcombine.low %v3565_v62, %v3569_v2  ;;  %v6319_v53 = vld [vmem:[%s7970_s9 + $0x58] sm:$0xff]   ;;  %v6331_v32 = vld [vmem:[%s7970_s9 + $0x70] sm:$0xff]  }
 0x4b1   :  { %4071 = vmatprep.mubr.bf16.mxu1 %v6371_v0  ;;  %4112 = vmatprep.mubr.bf16.mxu0 %v6371_v0  ;;  %v3566_v0 = vld [vmem:[%s7969_s7 + $0x118] sm:$0xff]  ;;  %v6332_v5 = vld [vmem:[%s7970_s9 + $0xf0] sm:$0xff]  }
 0x4b2   :  { %v5115_v17 = vcombine.high %v3566_v0, %v3570_v13  ;;  %v5114_v25 = vcombine.low %v3566_v0, %v3570_v13  ;;  %v6320_v54 = vld [vmem:[%s7970_s9 + $0xd8] sm:$0xff]   ;;  %v6339_v0 = vld [vmem:[%s7970_s9 + $0x140] sm:$0xff]  }
 0x4b3   :  { %4042 = vmatpush1.bf16.msra.mxu1 %v5088_v58  ;;  %4083 = vmatpush1.bf16.msra.mxu0 %v5090_v39  ;;  %v6325_v58 = vld [vmem:[%s7970_s9 + $0x20] sm:$0xff]   ;;  %v6337_v62 = vld [vmem:[%s7970_s9 + $0x38] sm:$0xff]  }
 0x4b4   :  { %4043 = vmatprep.subr.bf16.mxu1 %v5097_v60  ;;  %4084 = vmatprep.subr.bf16.mxu0 %v5099_v1  ;;  %v6326_v39 = vld [vmem:[%s7970_s9 + $0xa0] sm:$0xff]   ;;  %v6327_v60 = vld [vmem:[%s7970_s9 + $0x68] sm:$0xff]   ;;  %v6338_v2 = vld [vmem:[%s7970_s9 + $0xb8] sm:$0xff]  }
 0x4b5   :  { %v6328_v1 = vld [vmem:[%s7970_s9 + $0xe8] sm:$0xff]   ;;  %v6340_v13 = vld [vmem:[%s7970_s9 + $0x1c0] sm:$0xff]  }
 0x4b7   :  { %4044 = vmatpush1.bf16.msra.mxu1 %v5096_v8  ;;  %4085 = vmatpush1.bf16.msra.mxu0 %v5098_v11  ;;  %v6333_v8 = vld [vmem:[%s7970_s9 + $0x30] sm:$0xff]  }
 0x4b8   :  { %4045 = vmatprep.subr.bf16.mxu1 %v5105_v12  ;;  %4086 = vmatprep.subr.bf16.mxu0 %v5107_v57  ;;  %v6334_v11 = vld [vmem:[%s7970_s9 + $0xb0] sm:$0xff]   ;;  %v6335_v12 = vld [vmem:[%s7970_s9 + $0x78] sm:$0xff]  }
 0x4b9   :  { %v6336_v57 = vld [vmem:[%s7970_s9 + $0xf8] sm:$0xff]  }
 0x4bb   :  { %4046 = vmatpush1.bf16.msra.mxu1 %v5104_v15  ;;  %4087 = vmatpush1.bf16.msra.mxu0 %v5106_v37  ;;  %v3597_v15 = vlaneseq }
 0x4bc   :  { %4047 = vmatprep.subr.bf16.mxu1 %v5113_v16  ;;  %4088 = vmatprep.subr.bf16.mxu0 %v5115_v17 }
 0x4bd   :  { %v7844_v37 = vshrl.u32 %v3597_v15, 7  ;;  %v6366_v15 = vld [vmem:[%s7970_s9 + $0x1b0] sm:$0xff]  }
 0x4bf   :  { %4048 = vmatpush1.bf16.msra.mxu1 %v5112_v24  ;;  %4089 = vmatpush1.bf16.msra.mxu0 %v5114_v25  ;;  %v3599_v16 = vsub.s32 0, %v7844_v37  ;;  %v3607_v17 = vsub.s32 2, %v7844_v37  ;;  %v3603_v19 = vsub.s32 1, %v7844_v37  ;;  %v3611_v22 = vsub.s32 3, %v7844_v37 }
 0x4c0   :  { %4049 = vmatprep.subr.bf16.mxu1 %v5121_v26  ;;  %4090 = vmatprep.subr.bf16.mxu0 %v5123_v27 }
 0x4c1   :  { %v3600_v23 = vrot.slane %v7851_v10, %v3599_v16  ;;  %v3608_v24 = vrot.slane %v7851_v10, %v3607_v17  ;;  %v3604_v25 = vrot.slane %v7851_v10, %v3603_v19  ;;  %v3612_v26 = vrot.slane %v7851_v10, %v3611_v22  ;;  %v6368_v16 = vld [vmem:[%s7970_s9 + $0x1f8] sm:$0xff]  }
 0x4c3   :  { %4050 = vmatpush1.bf16.msra.mxu1 %v5120_v33  ;;  %4091 = vmatpush1.bf16.msra.mxu0 %v5122_v3 }
 0x4c4   :  { %4051 = vmatprep.subr.bf16.mxu1 %v5129_v9  ;;  %4092 = vmatprep.subr.bf16.mxu0 %v5131_v14 }
 0x4c7   :  { %4052 = vmatpush1.bf16.msra.mxu1 %v5128_v36  ;;  %4093 = vmatpush1.bf16.msra.mxu0 %v5130_v38 }
 0x4c8   :  { %4053 = vmatprep.subr.bf16.mxu1 %v5137_v44  ;;  %4094 = vmatprep.subr.bf16.mxu0 %v5139_v28 }
 0x4cb   :  { %4054 = vmatpush1.bf16.msra.mxu1 %v5136_v55  ;;  %4095 = vmatpush1.bf16.msra.mxu0 %v5138_v6  ;;  %v6341_v6 = vld [vmem:[%s7970_s9 + $0x100] sm:$0xff]  }
 0x4cc   :  { %5446 = vmatprep.subr.bf16.mxu1 %v6307_v51  ;;  %5468 = vmatprep.subr.bf16.mxu0 %v6308_v42  ;;  %v6342_v51 = vld [vmem:[%s7970_s9 + $0x180] sm:$0xff]  }
 0x4ce   :  { %4072 = vmatmul.mubr.bf16.vlgmr.msra.gmra.mrb[64].mxu1 %v7662_v52  ;;  %4113 = vmatmul.mubr.bf16.vlgmr.msra.gmra.mrb[116].mxu0 %v7662_v52  ;;  %v6318_v52 = vld [vmem:[%s7970_s9 + $0x90] sm:$0xff]  }
 0x4cf   :  { %5447 = vmatpush3.bf16.msra.mxu1 %v6309_v46  ;;  %5469 = vmatpush3.bf16.msra.mxu0 %v6310_v45  ;;  %v6343_v45 = vld [vmem:[%s7970_s9 + $0x148] sm:$0xff]  }
 0x4d0   :  { %5448 = vmatprep.subr.bf16.mxu1 %v6311_v40  ;;  %5470 = vmatprep.subr.bf16.mxu0 %v6312_v41  ;;  %v6344_v40 = vld [vmem:[%s7970_s9 + $0x1c8] sm:$0xff]  }
 0x4d1   :  { %v6345_v41 = vld [vmem:[%s7970_s9 + $0x108] sm:$0xff]  }
 0x4d3   :  { %5449 = vmatpush3.bf16.msra.mxu1 %v6313_v21  ;;  %5471 = vmatpush3.bf16.msra.mxu0 %v6314_v49  ;;  %v6346_v21 = vld [vmem:[%s7970_s9 + $0x188] sm:$0xff]   ;;  %v6347_v49 = vld [vmem:[%s7970_s9 + $0x150] sm:$0xff]  }
 0x4d4   :  { %5450 = vmatprep.subr.bf16.mxu1 %v6315_v50  ;;  %5472 = vmatprep.subr.bf16.mxu0 %v6316_v43  ;;  %v6348_v50 = vld [vmem:[%s7970_s9 + $0x1d0] sm:$0xff]  }
 0x4d5   :  { %v6349_v43 = vld [vmem:[%s7970_s9 + $0x110] sm:$0xff]  }
 0x4d7   :  { %5451 = vmatpush3.bf16.msra.mxu1 %v6317_v48  ;;  %5473 = vmatpush3.bf16.msra.mxu0 %v6318_v52  ;;  %v6350_v48 = vld [vmem:[%s7970_s9 + $0x190] sm:$0xff]   ;;  %v6351_v52 = vld [vmem:[%s7970_s9 + $0x158] sm:$0xff]  }
 0x4d8   :  { %5452 = vmatprep.subr.bf16.mxu1 %v6319_v53  ;;  %5474 = vmatprep.subr.bf16.mxu0 %v6320_v54  ;;  %v6352_v53 = vld [vmem:[%s7970_s9 + $0x1d8] sm:$0xff]  }
 0x4d9   :  { %v6353_v54 = vld [vmem:[%s7970_s9 + $0x118] sm:$0xff]  }
 0x4db   :  { %5453 = vmatpush3.bf16.msra.mxu1 %v6321_v56  ;;  %5475 = vmatpush3.bf16.msra.mxu0 %v6322_v29  ;;  %v6354_v56 = vld [vmem:[%s7970_s9 + $0x198] sm:$0xff]   ;;  %v6355_v29 = vld [vmem:[%s7970_s9 + $0x160] sm:$0xff]  }
 0x4dc   :  { %5454 = vmatprep.subr.bf16.mxu1 %v6323_v31  ;;  %5476 = vmatprep.subr.bf16.mxu0 %v6324_v47  ;;  %v6356_v31 = vld [vmem:[%s7970_s9 + $0x1e0] sm:$0xff]  }
 0x4dd   :  { %v6357_v47 = vld [vmem:[%s7970_s9 + $0x120] sm:$0xff]  }
 0x4df   :  { %5455 = vmatpush3.bf16.msra.mxu1 %v6325_v58  ;;  %5477 = vmatpush3.bf16.msra.mxu0 %v6326_v39  ;;  %v6358_v58 = vld [vmem:[%s7970_s9 + $0x1a0] sm:$0xff]   ;;  %v6359_v39 = vld [vmem:[%s7970_s9 + $0x168] sm:$0xff]  }
 0x4e0   :  { %5456 = vmatprep.subr.bf16.mxu1 %v6327_v60  ;;  %5478 = vmatprep.subr.bf16.mxu0 %v6328_v1  ;;  %v6360_v60 = vld [vmem:[%s7970_s9 + $0x1e8] sm:$0xff]   ;;  %v3615_v1 = vsub.s32 4, %v7844_v37 }
 0x4e3   :  { %5457 = vmatpush3.bf16.msra.mxu1 %v6329_v4  ;;  %5479 = vmatpush3.bf16.msra.mxu0 %v6330_v63  ;;  %v3623_v4 = vsub.s32 6, %v7844_v37  ;;  %v6361_v63 = vld [vmem:[%s7970_s9 + $0x128] sm:$0xff]  }
 0x4e4   :  { %5458 = vmatprep.subr.bf16.mxu1 %v6331_v32  ;;  %5480 = vmatprep.subr.bf16.mxu0 %v6332_v5  ;;  %v6362_v32 = vld [vmem:[%s7970_s9 + $0x1a8] sm:$0xff]   ;;  %v3619_v5 = vsub.s32 5, %v7844_v37 }
 0x4e7   :  { %5459 = vmatpush3.bf16.msra.mxu1 %v6333_v8  ;;  %5481 = vmatpush3.bf16.msra.mxu0 %v6334_v11  ;;  %v3627_v8 = vsub.s32 7, %v7844_v37  ;;  %v6363_v11 = vld [vmem:[%s7970_s9 + $0x170] sm:$0xff]   ;;  %v6367_v37 = vld [vmem:[%s7970_s9 + $0x178] sm:$0xff]  }
 0x4e8   :  { %5460 = vmatprep.subr.bf16.mxu1 %v6335_v12  ;;  %5482 = vmatprep.subr.bf16.mxu0 %v6336_v57  ;;  %v6364_v12 = vld [vmem:[%s7970_s9 + $0x1f0] sm:$0xff]   ;;  %v3616_v57 = vrot.slane %v7851_v10, %v3615_v1 }
 0x4eb   :  { %5461 = vmatpush3.bf16.msra.mxu1 %v6337_v62  ;;  %5483 = vmatpush3.bf16.msra.mxu0 %v6338_v2  ;;  %v3624_v62 = vrot.slane %v7851_v10, %v3623_v4  ;;  %v3620_v2 = vrot.slane %v7851_v10, %v3619_v5 }
 0x4ec   :  { %5490 = vmatprep.subr.bf16.mxu1 %v6339_v0  ;;  %5512 = vmatprep.subr.bf16.mxu0 %v6340_v13  ;;  %v3628_v0 = vrot.slane %v7851_v10, %v3627_v8  ;;  %v6365_v13 = vld [vmem:[%s7970_s9 + $0x130] sm:$0xff]  }
 0x581   :  { %v3991_v27 = vpop.f32.mrb[60].mxu1  ;;  %v4032_v59 = vpop.f32.mrb[112].mxu0 }
 0x582   :  { %v3992_v61 = vadd.f32 %v3991_v27, %v3600_v23  ;;  %v4033_v20 = vadd.f32 %v4032_v59, %v3608_v24  ;;  %v3993_v30 = vpop.f32.mrb[61].mxu1  ;;  %v4034_v33 = vpop.f32.mrb[113].mxu0 }
 0x583   :  { %v3994_v3 = vadd.f32 %v3993_v30, %v3604_v25  ;;  %v4035_v9 = vadd.f32 %v4034_v33, %v3612_v26  ;;  %v3995_v14 = vpop.f32.mrb[62].mxu1  ;;  %v4036_v34 = vpop.f32.mrb[114].mxu0 }
 0x584   :  { %v4121_v7 = vmax.f32 %v3992_v61, 0.0  ;;  %v4123_v18 = vmax.f32 %v4033_v20, 0.0  ;;  %v3996_v35 = vpop.f32.mrb[63].mxu1  ;;  %v4037_v36 = vpop.f32.mrb[115].mxu0  ;;  %v6369_v61 = vld [vmem:[%s7970_s9 + $0x138] sm:$0xff]  }
 0x585   :  { %v4122_v38 = vmax.f32 %v3994_v3, 0.0  ;;  %v4124_v44 = vmax.f32 %v4035_v9, 0.0  ;;  %v6370_v20 = vld [vmem:[%s7970_s9 + $0x1b8] sm:$0xff]  }
 0x586   :  { %v4129_v42 = vpack.c.bf16 %v4121_v7, %v4121_v7  ;;  %v4131_v46 = vpack.c.bf16 %v4123_v18, %v4123_v18 }
 0x587   :  { %v4130_v28 = vpack.c.bf16 %v4122_v38, %v4122_v38  ;;  %v4132_v55 = vpack.c.bf16 %v4124_v44, %v4124_v44 }
 0x589   :  { %4688 = vmatprep.mubr.bf16.mxu1 %v4130_v28  ;;  %4728 = vmatprep.mubr.bf16.mxu0 %v4132_v55  ;;  %v5140_v28 = vld [vmem:[%s7973_s10] ss:$0 sm:$0xff] }
 0x58a   :  { %4689 = vmatmul.mubr.bf16.vlgmr.msra.gmra.mrb[68].mxu1 %v4129_v42  ;;  %4729 = vmatmul.mubr.bf16.vlgmr.msra.gmra.mrb[120].mxu0 %v4131_v46 }
 0x58b   :  { %5491 = vmatpush3.bf16.msra.mxu1 %v6341_v6  ;;  %5513 = vmatpush3.bf16.msra.mxu0 %v6342_v51 }
 0x58c   :  { %5492 = vmatprep.subr.bf16.mxu1 %v6343_v45  ;;  %5514 = vmatprep.subr.bf16.mxu0 %v6344_v40 }
 0x58f   :  { %5493 = vmatpush3.bf16.msra.mxu1 %v6345_v41  ;;  %5515 = vmatpush3.bf16.msra.mxu0 %v6346_v21 }
 0x590   :  { %5494 = vmatprep.subr.bf16.mxu1 %v6347_v49  ;;  %5516 = vmatprep.subr.bf16.mxu0 %v6348_v50 }
 0x593   :  { %5495 = vmatpush3.bf16.msra.mxu1 %v6349_v43  ;;  %5517 = vmatpush3.bf16.msra.mxu0 %v6350_v48 }
 0x594   :  { %5496 = vmatprep.subr.bf16.mxu1 %v6351_v52  ;;  %5518 = vmatprep.subr.bf16.mxu0 %v6352_v53 }
 0x597   :  { %5497 = vmatpush3.bf16.msra.mxu1 %v6353_v54  ;;  %5519 = vmatpush3.bf16.msra.mxu0 %v6354_v56 }
 0x598   :  { %5498 = vmatprep.subr.bf16.mxu1 %v6355_v29  ;;  %5520 = vmatprep.subr.bf16.mxu0 %v6356_v31 }
 0x59b   :  { %5499 = vmatpush3.bf16.msra.mxu1 %v6357_v47  ;;  %5521 = vmatpush3.bf16.msra.mxu0 %v6358_v58 }
 0x59c   :  { %5500 = vmatprep.subr.bf16.mxu1 %v6359_v39  ;;  %5522 = vmatprep.subr.bf16.mxu0 %v6360_v60 }
 0x59f   :  { %5501 = vmatpush3.bf16.msra.mxu1 %v6361_v63  ;;  %5523 = vmatpush3.bf16.msra.mxu0 %v6362_v32 }
 0x5a0   :  { %5502 = vmatprep.subr.bf16.mxu1 %v6363_v11  ;;  %5524 = vmatprep.subr.bf16.mxu0 %v6364_v12 }
 0x5a1   :  { %v4073_v17 = vpop.f32.mrb[64].mxu1  ;;  %v4114_v10 = vpop.f32.mrb[116].mxu0 }
 0x5a2   :  { %v4074_v19 = vadd.f32 %v4073_v17, %v3616_v57  ;;  %v4115_v22 = vadd.f32 %v4114_v10, %v3624_v62  ;;  %v4075_v23 = vpop.f32.mrb[65].mxu1  ;;  %v4116_v24 = vpop.f32.mrb[117].mxu0 }
 0x5a3   :  { %v4076_v25 = vadd.f32 %v4075_v23, %v3620_v2  ;;  %v4117_v26 = vadd.f32 %v4116_v24, %v3628_v0  ;;  %v4077_v27 = vpop.f32.mrb[66].mxu1  ;;  %v4118_v59 = vpop.f32.mrb[118].mxu0  ;;  %5503 = vmatpush3.bf16.msra.mxu1 %v6365_v13  ;;  %5525 = vmatpush3.bf16.msra.mxu0 %v6366_v15 }
 0x5a4   :  { %v4125_v30 = vmax.f32 %v4074_v19, 0.0  ;;  %v4127_v33 = vmax.f32 %v4115_v22, 0.0  ;;  %v4078_v3 = vpop.f32.mrb[67].mxu1  ;;  %v4119_v9 = vpop.f32.mrb[119].mxu0  ;;  %5504 = vmatprep.subr.bf16.mxu1 %v6367_v37  ;;  %5526 = vmatprep.subr.bf16.mxu0 %v6368_v16 }
 0x5a5   :  { %v4126_v14 = vmax.f32 %v4076_v25, 0.0  ;;  %v4128_v34 = vmax.f32 %v4117_v26, 0.0 }
 0x5a6   :  { %v4133_v35 = vpack.c.bf16 %v4125_v30, %v4125_v30  ;;  %v4135_v36 = vpack.c.bf16 %v4127_v33, %v4127_v33 }
 0x5a7   :  { %v4134_v7 = vpack.c.bf16 %v4126_v14, %v4126_v14  ;;  %v4136_v18 = vpack.c.bf16 %v4128_v34, %v4128_v34  ;;  %5505 = vmatpush3.bf16.msra.mxu1 %v6369_v61  ;;  %5527 = vmatpush3.bf16.msra.mxu0 %v6370_v20 }
 0x5a9   :  { %4768 = vmatprep.mubr.bf16.mxu1 %v4134_v7  ;;  %4808 = vmatprep.mubr.bf16.mxu0 %v4136_v18 }
 0x5aa   :  { %4769 = vmatmul.mubr.bf16.vlgmr.msra.gmra.mrb[72].mxu1 %v4133_v35  ;;  %4809 = vmatmul.mubr.bf16.vlgmr.msra.gmra.mrb[124].mxu0 %v4135_v36 }
 0x65d   :  { %v5462_v38 = vpop.f32.mrb[68].mxu1  ;;  %v5484_v44 = vpop.f32.mrb[120].mxu0 }
 0x65e   :  { %v5463_v55 = vpop.f32.mrb[69].mxu1  ;;  %v5485_v6 = vpop.f32.mrb[121].mxu0 }
 0x65f   :  { %v5464_v51 = vadd.f32 %v5463_v55, %v5462_v38  ;;  %v5486_v42 = vadd.f32 %v5485_v6, %v5484_v44  ;;  %v5465_v46 = vpop.f32.mrb[70].mxu1  ;;  %v5487_v45 = vpop.f32.mrb[122].mxu0 }
 0x660   :  { %v5466_v40 = vpop.f32.mrb[71].mxu1  ;;  %v5488_v41 = vpop.f32.mrb[123].mxu0 }
 0x661   :  { %v4691_v21 = vadd.f32 %v5464_v51, %v5140_v28 }
 0x663   :  { %v4731_v49 = vadd.f32 %v5486_v42, %v4691_v21 }
 0x67d   :  { %v5506_v50 = vpop.f32.mrb[72].mxu1  ;;  %v5528_v43 = vpop.f32.mrb[124].mxu0 }
 0x67e   :  { %v5507_v48 = vpop.f32.mrb[73].mxu1  ;;  %v5529_v52 = vpop.f32.mrb[125].mxu0 }
 0x67f   :  { %v5508_v53 = vadd.f32 %v5507_v48, %v5506_v50  ;;  %v5530_v54 = vadd.f32 %v5529_v52, %v5528_v43  ;;  %v5509_v56 = vpop.f32.mrb[74].mxu1  ;;  %v5531_v29 = vpop.f32.mrb[126].mxu0 }
 0x680   :  { %v5510_v31 = vpop.f32.mrb[75].mxu1  ;;  %v5532_v47 = vpop.f32.mrb[127].mxu0 }
 0x681   :  { %v4771_v58 = vadd.f32 %v5508_v53, %v4731_v49 }
 0x683   :  { %v4811_v39 = vadd.f32 %v5530_v54, %v4771_v58 }
 0x685   :  { %4816 = vst [vmem:[%s7974_s11] sm:$0x3] %v4811_v39 }

</bundles_post_ra>
